<compile_context>
chip_gen: v7x
topology: tpu7x:2x2x1
jax: 0.10.0
libtpu: 0.0.40
codegen_flags: <defaults>
</compile_context>

<pallas_src>
import jax
import jax.numpy as jnp
from jax.experimental import pallas as pl
from jax.experimental.pallas import tpu as pltpu

N_ROWS = 5              # "batch" rows of the LSTMCell (out1.shape[1])
HID = 60                # LSTM hidden / feature size
HP = 128                # hidden size padded to one full lane register
GP = 4 * HP             # padded gate width (i|f|g|o, each 128-lane aligned)
FC_IN = N_ROWS * HID    # 300
FC_OUT = 60
OUT_PAD = 128           # padded FC output width used inside the kernel


def stgcn_kernel(x_ref, w_ih_ref, w_hh_ref, b_ref, w_fc_ref, b_fc_ref,
                 out_ref, gx_ref):
    """Full forward pass in one kernel invocation (everything fits in VMEM).

    x_ref:     (T*5, 60)     flattened input rows (no lane padding needed)
    w_ih_ref:  (60, 512)     W_ih^T, per-gate blocks aligned to 128 lanes
    w_hh_ref:  (128, 512)    W_hh^T, rows 60..127 zero, same gate layout
    b_ref:     (1, 512)      b_ih + b_hh, same gate layout
    w_fc_ref:  (5, 128, 128) Linear(300,60) weight, zero-padded per-row blocks
    b_fc_ref:  (1, 128)      Linear bias, zero-padded
    out_ref:   (T, 60)
    gx_ref:    (T*5, 512)    scratch: precomputed x @ W_ih + bias
    """
    T = out_ref.shape[0]

    # ---- Prologue: one batched input projection for all steps. --------------
    gx_ref[...] = (jnp.dot(x_ref[...], w_ih_ref[...],
                           preferred_element_type=jnp.float32) + b_ref[...])

    # ---- Hoisted loop invariants (single ref reads). ------------------------
    w_hh = w_hh_ref[...]                                  # (128, 512)
    b_fc = b_fc_ref[...]                                  # (1, 128)

    def sig(v):
        # sigmoid(x) == 0.5*tanh(0.5*x) + 0.5 : one EUP push, no exp/divide.
        return 0.5 * jnp.tanh(0.5 * v) + 0.5

    # ---- Serial recurrence with the FC head fused per step. -----------------
    # Padded lanes (60..127) of h/c stay exactly zero: gate pre-activations are
    # zero there (zero-padded weights/bias), so i=f=o=0.5, g=0 -> c_pad stays 0
    # and h_pad = tanh(0.5*tanh(0)) = 0.
    h = jnp.zeros((N_ROWS, HP), jnp.float32)
    c = jnp.zeros((N_ROWS, HP), jnp.float32)
    for t in range(T):                                    # static, small T
        gates = gx_ref[t * N_ROWS:(t + 1) * N_ROWS, :] + jnp.dot(
            h, w_hh, preferred_element_type=jnp.float32)  # (5, 512)
        # lane-aligned gate blocks (each starts at a multiple of 128)
        i_g = sig(gates[:, 0 * HP:1 * HP])
        f_g = sig(gates[:, 1 * HP:2 * HP])
        g_g = jnp.tanh(gates[:, 2 * HP:3 * HP])
        o_g = sig(gates[:, 3 * HP:4 * HP])
        c = f_g * c + i_g * g_g
        h = jnp.tanh(o_g * jnp.tanh(c))                   # extra tanh fed back

        # Fused FC head: independent of the recurrence -> hides under the slack
        # while the next step's h @ W_hh dependency drains.  Sum-of-dots form
        # lets Mosaic accumulate in the MXU result buffer where supported.
        a = jnp.maximum(h, 0.0)                           # relu, (5, 128)
        row = b_fc                                        # (1, 128)
        for n in range(N_ROWS):
            row = row + jnp.dot(a[n:n + 1, :], w_fc_ref[n],
                                preferred_element_type=jnp.float32)
        out_ref[t:t + 1, :] = row[:, :FC_OUT]


def pack_params(w_ih, w_hh, b_ih, b_hh, w_fc, b_fc):
    """Repack torch-layout weights into lane-aligned, zero-padded kernel layout.

    torch LSTMCell: W_ih (4H, in), W_hh (4H, H), biases (4H,), gate order i,f,g,o.
    torch Linear(300, 60): weight (60, 300), bias (60,).
    All padding is zero, chosen so padded columns of h/c stay exactly zero.
    """
    def pad_gate_weight(w, rows):           # w: (4H, K) -> (rows, 4*HP)
        wt = w.T                            # (K, 4H): columns = i|f|g|o
        out = jnp.zeros((rows, GP), jnp.float32)
        for g in range(4):
            out = out.at[:HID, g * HP:g * HP + HID].set(
                wt[:, g * HID:(g + 1) * HID])
        return out

    def pad_gate_bias(b):                   # (4H,) -> (1, 4*HP)
        out = jnp.zeros((1, GP), jnp.float32)
        for g in range(4):
            out = out.at[0, g * HP:g * HP + HID].set(b[g * HID:(g + 1) * HID])
        return out

    w_ih_p = pad_gate_weight(w_ih, HID)                   # (60, 512), K = 60
    w_hh_p = pad_gate_weight(w_hh, HP)                    # (128, 512), K = 128
    b_p = pad_gate_bias(b_ih) + pad_gate_bias(b_hh)       # combined bias

    w_fc_t = w_fc.T.reshape(N_ROWS, HID, FC_OUT)          # (5, 60, 60)
    w_fc_p = jnp.zeros((N_ROWS, HP, OUT_PAD), jnp.float32)
    w_fc_p = w_fc_p.at[:, :HID, :FC_OUT].set(w_fc_t)
    b_fc_p = jnp.zeros((1, OUT_PAD), jnp.float32).at[0, :FC_OUT].set(b_fc)

    return (w_ih_p, w_hh_p, b_p, w_fc_p, b_fc_p)


@jax.jit
def stgcn_forward(A_hat, X, packed):
    """Wrapper: reshape glue (under jit, no extra dispatches), Pallas hot path."""
    del A_hat  # unused, matching the PyTorch forward
    w_ih_p, w_hh_p, b_p, w_fc_p, b_fc_p = packed
    T = X.size // FC_IN
    x = X.reshape(T * N_ROWS, HID).astype(jnp.float32)    # (T*5, 60)

    vmem = pl.BlockSpec(memory_space=pltpu.MemorySpace.VMEM)
    out = pl.pallas_call(
        stgcn_kernel,
        out_shape=jax.ShapeDtypeStruct((T, FC_OUT), jnp.float32),
        in_specs=[vmem] * 6,
        out_specs=vmem,
        scratch_shapes=[
            pltpu.VMEM((T * N_ROWS, GP), jnp.float32),    # gx_ref
        ],
    )(x, w_ih_p, w_hh_p, b_p, w_fc_p, b_fc_p)
    return out.reshape(T, 1, FC_OUT)


def init_params(key):
    """Deterministic init mimicking PyTorch default uniform ranges (raw layout)."""
    k = jax.random.split(key, 6)
    s_lstm = 1.0 / jnp.sqrt(jnp.float32(HID))
    s_fc = 1.0 / jnp.sqrt(jnp.float32(FC_IN))
    w_ih = jax.random.uniform(k[0], (4 * HID, HID), jnp.float32, -s_lstm, s_lstm)
    w_hh = jax.random.uniform(k[1], (4 * HID, HID), jnp.float32, -s_lstm, s_lstm)
    b_ih = jax.random.uniform(k[2], (4 * HID,), jnp.float32, -s_lstm, s_lstm)
    b_hh = jax.random.uniform(k[3], (4 * HID,), jnp.float32, -s_lstm, s_lstm)
    w_fc = jax.random.uniform(k[4], (FC_OUT, FC_IN), jnp.float32, -s_fc, s_fc)
    b_fc = jax.random.uniform(k[5], (FC_OUT,), jnp.float32, -s_fc, s_fc)
    return (w_ih, w_hh, b_ih, b_hh, w_fc, b_fc)


def stgcn_reference(X, raw_params):
    """Pure-JAX reference of the PyTorch forward for verification."""
    w_ih, w_hh, b_ih, b_hh, w_fc, b_fc = raw_params
    T = X.size // FC_IN
    x = X.reshape(T, N_ROWS, HID).astype(jnp.float32)

    def step(carry, x_t):
        h, c = carry
        gates = x_t @ w_ih.T + h @ w_hh.T + b_ih + b_hh
        i_g = jax.nn.sigmoid(gates[:, 0 * HID:1 * HID])
        f_g = jax.nn.sigmoid(gates[:, 1 * HID:2 * HID])
        g_g = jnp.tanh(gates[:, 2 * HID:3 * HID])
        o_g = jax.nn.sigmoid(gates[:, 3 * HID:4 * HID])
        c_new = f_g * c + i_g * g_g
        h_new = jnp.tanh(o_g * jnp.tanh(c_new))
        return (h_new, c_new), h_new

    h0 = jnp.zeros((N_ROWS, HID), jnp.float32)
    c0 = jnp.zeros((N_ROWS, HID), jnp.float32)
    _, hs = jax.lax.scan(step, (h0, c0), x)               # (T, 5, 60)
    appen = jax.nn.relu(hs.reshape(T, FC_IN))             # (T, 300)
    out = appen @ w_fc.T + b_fc
    return out.reshape(T, 1, FC_OUT)


if __name__ == "__main__":
    key = jax.random.PRNGKey(0)
    kp, kx, ka = jax.random.split(key, 3)

    raw_params = init_params(kp)
    packed = pack_params(*raw_params)

    # X: (batch=8, num_nodes=5, num_timesteps=6, num_features=10)
    # -> total 2400 elements -> reshaped by the forward into (T=8, 5, 60)
    X = jax.random.normal(kx, (8, 5, 6, 10), dtype=jnp.float32)
    A_hat = jax.random.normal(ka, (5, 5), dtype=jnp.float32)  # unused by forward

    out = stgcn_forward(A_hat, X, packed)
    out = jax.block_until_ready(out)

    ref = stgcn_reference(X, raw_params)
    assert out.shape == (8, 1, 60), out.shape
    assert jnp.allclose(out, ref, atol=1e-4, rtol=1e-4), "mismatch vs JAX reference"

    print("KERNEL_OK")
</pallas_src>

<mosaic_0001>
module attributes {stable_mosaic.version = 11 : i64} {
  func.func @stgcn_kernel(%arg0: memref<40x60xf32, #tpu.memory_space<vmem>>, %arg1: memref<60x512xf32, #tpu.memory_space<vmem>>, %arg2: memref<128x512xf32, #tpu.memory_space<vmem>>, %arg3: memref<1x512xf32, #tpu.memory_space<vmem>>, %arg4: memref<5x128x128xf32, #tpu.memory_space<vmem>>, %arg5: memref<1x128xf32, #tpu.memory_space<vmem>>, %arg6: memref<8x60xf32, #tpu.memory_space<vmem>>, %arg7: memref<40x512xf32, #tpu.memory_space<vmem>>) attributes {dimension_semantics = [], scalar_prefetch = 0 : i64, scratch_operands = 1 : i64, tpu.core_type = #tpu.core_type<tc>} {
    %c0 = arith.constant 0 : index
    %c0_0 = arith.constant 0 : index
    %0 = vector.load %arg0[%c0, %c0_0] : memref<40x60xf32, #tpu.memory_space<vmem>>, vector<40x60xf32>
    %c0_1 = arith.constant 0 : index
    %c0_2 = arith.constant 0 : index
    %1 = vector.load %arg1[%c0_1, %c0_2] : memref<60x512xf32, #tpu.memory_space<vmem>>, vector<60x512xf32>
    %cst = arith.constant dense<0.000000e+00> : vector<40x512xf32>
    %2 = tpu.matmul %0, %1, %cst {dimension_numbers = #tpu.dot_dimension_numbers<[1], [0], [0], [1], [0, 0, 1, 1], [], []>} : vector<40x60xf32>, vector<60x512xf32>, vector<40x512xf32> -> vector<40x512xf32>
    %c0_3 = arith.constant 0 : index
    %c0_4 = arith.constant 0 : index
    %3 = vector.load %arg3[%c0_3, %c0_4] : memref<1x512xf32, #tpu.memory_space<vmem>>, vector<1x512xf32>
    %4 = vector.broadcast %3 : vector<1x512xf32> to vector<40x512xf32>
    %5 = arith.addf %2, %4 : vector<40x512xf32>
    %c0_5 = arith.constant 0 : index
    %c0_6 = arith.constant 0 : index
    %6 = vector.load %arg7[%c0_5, %c0_6] : memref<40x512xf32, #tpu.memory_space<vmem>>, vector<40x512xf32>
    tpu.vector_store %arg7[%c0_5, %c0_6], %5 {strides = array<i32>} : memref<40x512xf32, #tpu.memory_space<vmem>>, vector<40x512xf32>,
    %c0_7 = arith.constant 0 : index
    %c0_8 = arith.constant 0 : index
    %7 = vector.load %arg2[%c0_7, %c0_8] : memref<128x512xf32, #tpu.memory_space<vmem>>, vector<128x512xf32>
    %c0_9 = arith.constant 0 : index
    %c0_10 = arith.constant 0 : index
    %8 = vector.load %arg5[%c0_9, %c0_10] : memref<1x128xf32, #tpu.memory_space<vmem>>, vector<1x128xf32>
    %cst_11 = arith.constant 0.000000e+00 : f32
    %9 = vector.broadcast %cst_11 : f32 to vector<5x128xf32>
    %cst_12 = arith.constant 0.000000e+00 : f32
    %10 = vector.broadcast %cst_12 : f32 to vector<5x128xf32>
    %c0_13 = arith.constant 0 : index
    %c0_14 = arith.constant 0 : index
    %11 = vector.load %arg7[%c0_13, %c0_14] : memref<40x512xf32, #tpu.memory_space<vmem>>, vector<5x512xf32>
    %cst_15 = arith.constant dense<0.000000e+00> : vector<5x512xf32>
    %12 = tpu.matmul %9, %7, %cst_15 {dimension_numbers = #tpu.dot_dimension_numbers<[1], [0], [0], [1], [0, 0, 1, 1], [], []>} : vector<5x128xf32>, vector<128x512xf32>, vector<5x512xf32> -> vector<5x512xf32>
    %13 = arith.addf %11, %12 : vector<5x512xf32>
    %14 = vector.extract_strided_slice %13 {offsets = [0, 0], sizes = [5, 128], strides = [1, 1]} : vector<5x512xf32> to vector<5x128xf32>
    %cst_16 = arith.constant 5.000000e-01 : f32
    %15 = vector.broadcast %cst_16 : f32 to vector<5x128xf32>
    %16 = arith.mulf %15, %14 : vector<5x128xf32>
    %17 = math.tanh %16 : vector<5x128xf32>
    %cst_17 = arith.constant 5.000000e-01 : f32
    %18 = vector.broadcast %cst_17 : f32 to vector<5x128xf32>
    %19 = arith.mulf %18, %17 : vector<5x128xf32>
    %cst_18 = arith.constant 5.000000e-01 : f32
    %20 = vector.broadcast %cst_18 : f32 to vector<5x128xf32>
    %21 = arith.addf %19, %20 : vector<5x128xf32>
    %22 = vector.extract_strided_slice %13 {offsets = [0, 128], sizes = [5, 128], strides = [1, 1]} : vector<5x512xf32> to vector<5x128xf32>
    %cst_19 = arith.constant 5.000000e-01 : f32
    %23 = vector.broadcast %cst_19 : f32 to vector<5x128xf32>
    %24 = arith.mulf %23, %22 : vector<5x128xf32>
    %25 = math.tanh %24 : vector<5x128xf32>
    %cst_20 = arith.constant 5.000000e-01 : f32
    %26 = vector.broadcast %cst_20 : f32 to vector<5x128xf32>
    %27 = arith.mulf %26, %25 : vector<5x128xf32>
    %cst_21 = arith.constant 5.000000e-01 : f32
    %28 = vector.broadcast %cst_21 : f32 to vector<5x128xf32>
    %29 = arith.addf %27, %28 : vector<5x128xf32>
    %30 = vector.extract_strided_slice %13 {offsets = [0, 256], sizes = [5, 128], strides = [1, 1]} : vector<5x512xf32> to vector<5x128xf32>
    %31 = math.tanh %30 : vector<5x128xf32>
    %32 = vector.extract_strided_slice %13 {offsets = [0, 384], sizes = [5, 128], strides = [1, 1]} : vector<5x512xf32> to vector<5x128xf32>
    %cst_22 = arith.constant 5.000000e-01 : f32
    %33 = vector.broadcast %cst_22 : f32 to vector<5x128xf32>
    %34 = arith.mulf %33, %32 : vector<5x128xf32>
    %35 = math.tanh %34 : vector<5x128xf32>
    %cst_23 = arith.constant 5.000000e-01 : f32
    %36 = vector.broadcast %cst_23 : f32 to vector<5x128xf32>
    %37 = arith.mulf %36, %35 : vector<5x128xf32>
    %cst_24 = arith.constant 5.000000e-01 : f32
    %38 = vector.broadcast %cst_24 : f32 to vector<5x128xf32>
    %39 = arith.addf %37, %38 : vector<5x128xf32>
    %40 = arith.mulf %29, %10 : vector<5x128xf32>
    %41 = arith.mulf %21, %31 : vector<5x128xf32>
    %42 = arith.addf %40, %41 : vector<5x128xf32>
    %43 = math.tanh %42 : vector<5x128xf32>
    %44 = arith.mulf %39, %43 : vector<5x128xf32>
    %45 = math.tanh %44 : vector<5x128xf32>
    %cst_25 = arith.constant 0.000000e+00 : f32
    %46 = vector.broadcast %cst_25 : f32 to vector<5x128xf32>
    %47 = arith.maximumf %45, %46 : vector<5x128xf32>
    %48 = vector.extract_strided_slice %47 {offsets = [0, 0], sizes = [1, 128], strides = [1, 1]} : vector<5x128xf32> to vector<1x128xf32>
    %c0_26 = arith.constant 0 : index
    %c0_27 = arith.constant 0 : index
    %c0_28 = arith.constant 0 : index
    %49 = vector.load %arg4[%c0_26, %c0_27, %c0_28] : memref<5x128x128xf32, #tpu.memory_space<vmem>>, vector<1x128x128xf32>
    %50 = vector.shape_cast %49 : vector<1x128x128xf32> to vector<128x128xf32>
    %cst_29 = arith.constant dense<0.000000e+00> : vector<1x128xf32>
    %51 = tpu.matmul %48, %50, %cst_29 {dimension_numbers = #tpu.dot_dimension_numbers<[1], [0], [0], [1], [0, 0, 1, 1], [], []>} : vector<1x128xf32>, vector<128x128xf32>, vector<1x128xf32> -> vector<1x128xf32>
    %52 = arith.addf %8, %51 : vector<1x128xf32>
    %53 = vector.extract_strided_slice %47 {offsets = [1, 0], sizes = [1, 128], strides = [1, 1]} : vector<5x128xf32> to vector<1x128xf32>
    %c1 = arith.constant 1 : index
    %c0_30 = arith.constant 0 : index
    %c0_31 = arith.constant 0 : index
    %54 = vector.load %arg4[%c1, %c0_30, %c0_31] : memref<5x128x128xf32, #tpu.memory_space<vmem>>, vector<1x128x128xf32>
    %55 = vector.shape_cast %54 : vector<1x128x128xf32> to vector<128x128xf32>
    %cst_32 = arith.constant dense<0.000000e+00> : vector<1x128xf32>
    %56 = tpu.matmul %53, %55, %cst_32 {dimension_numbers = #tpu.dot_dimension_numbers<[1], [0], [0], [1], [0, 0, 1, 1], [], []>} : vector<1x128xf32>, vector<128x128xf32>, vector<1x128xf32> -> vector<1x128xf32>
    %57 = arith.addf %52, %56 : vector<1x128xf32>
    %58 = vector.extract_strided_slice %47 {offsets = [2, 0], sizes = [1, 128], strides = [1, 1]} : vector<5x128xf32> to vector<1x128xf32>
    %c2 = arith.constant 2 : index
    %c0_33 = arith.constant 0 : index
    %c0_34 = arith.constant 0 : index
    %59 = vector.load %arg4[%c2, %c0_33, %c0_34] : memref<5x128x128xf32, #tpu.memory_space<vmem>>, vector<1x128x128xf32>
    %60 = vector.shape_cast %59 : vector<1x128x128xf32> to vector<128x128xf32>
    %cst_35 = arith.constant dense<0.000000e+00> : vector<1x128xf32>
    %61 = tpu.matmul %58, %60, %cst_35 {dimension_numbers = #tpu.dot_dimension_numbers<[1], [0], [0], [1], [0, 0, 1, 1], [], []>} : vector<1x128xf32>, vector<128x128xf32>, vector<1x128xf32> -> vector<1x128xf32>
    %62 = arith.addf %57, %61 : vector<1x128xf32>
    %63 = vector.extract_strided_slice %47 {offsets = [3, 0], sizes = [1, 128], strides = [1, 1]} : vector<5x128xf32> to vector<1x128xf32>
    %c3 = arith.constant 3 : index
    %c0_36 = arith.constant 0 : index
    %c0_37 = arith.constant 0 : index
    %64 = vector.load %arg4[%c3, %c0_36, %c0_37] : memref<5x128x128xf32, #tpu.memory_space<vmem>>, vector<1x128x128xf32>
    %65 = vector.shape_cast %64 : vector<1x128x128xf32> to vector<128x128xf32>
    %cst_38 = arith.constant dense<0.000000e+00> : vector<1x128xf32>
    %66 = tpu.matmul %63, %65, %cst_38 {dimension_numbers = #tpu.dot_dimension_numbers<[1], [0], [0], [1], [0, 0, 1, 1], [], []>} : vector<1x128xf32>, vector<128x128xf32>, vector<1x128xf32> -> vector<1x128xf32>
    %67 = arith.addf %62, %66 : vector<1x128xf32>
    %68 = vector.extract_strided_slice %47 {offsets = [4, 0], sizes = [1, 128], strides = [1, 1]} : vector<5x128xf32> to vector<1x128xf32>
    %c4 = arith.constant 4 : index
    %c0_39 = arith.constant 0 : index
    %c0_40 = arith.constant 0 : index
    %69 = vector.load %arg4[%c4, %c0_39, %c0_40] : memref<5x128x128xf32, #tpu.memory_space<vmem>>, vector<1x128x128xf32>
    %70 = vector.shape_cast %69 : vector<1x128x128xf32> to vector<128x128xf32>
    %cst_41 = arith.constant dense<0.000000e+00> : vector<1x128xf32>
    %71 = tpu.matmul %68, %70, %cst_41 {dimension_numbers = #tpu.dot_dimension_numbers<[1], [0], [0], [1], [0, 0, 1, 1], [], []>} : vector<1x128xf32>, vector<128x128xf32>, vector<1x128xf32> -> vector<1x128xf32>
    %72 = arith.addf %67, %71 : vector<1x128xf32>
    %73 = vector.extract_strided_slice %72 {offsets = [0, 0], sizes = [1, 60], strides = [1, 1]} : vector<1x128xf32> to vector<1x60xf32>
    %c0_42 = arith.constant 0 : index
    %c0_43 = arith.constant 0 : index
    %74 = vector.load %arg6[%c0_42, %c0_43] : memref<8x60xf32, #tpu.memory_space<vmem>>, vector<1x60xf32>
    tpu.vector_store %arg6[%c0_42, %c0_43], %73 {strides = array<i32>} : memref<8x60xf32, #tpu.memory_space<vmem>>, vector<1x60xf32>,
    %c5 = arith.constant 5 : index
    %c0_44 = arith.constant 0 : index
    %75 = vector.load %arg7[%c5, %c0_44] : memref<40x512xf32, #tpu.memory_space<vmem>>, vector<5x512xf32>
    %cst_45 = arith.constant dense<0.000000e+00> : vector<5x512xf32>
    %76 = tpu.matmul %45, %7, %cst_45 {dimension_numbers = #tpu.dot_dimension_numbers<[1], [0], [0], [1], [0, 0, 1, 1], [], []>} : vector<5x128xf32>, vector<128x512xf32>, vector<5x512xf32> -> vector<5x512xf32>
    %77 = arith.addf %75, %76 : vector<5x512xf32>
    %78 = vector.extract_strided_slice %77 {offsets = [0, 0], sizes = [5, 128], strides = [1, 1]} : vector<5x512xf32> to vector<5x128xf32>
    %cst_46 = arith.constant 5.000000e-01 : f32
    %79 = vector.broadcast %cst_46 : f32 to vector<5x128xf32>
    %80 = arith.mulf %79, %78 : vector<5x128xf32>
    %81 = math.tanh %80 : vector<5x128xf32>
    %cst_47 = arith.constant 5.000000e-01 : f32
    %82 = vector.broadcast %cst_47 : f32 to vector<5x128xf32>
    %83 = arith.mulf %82, %81 : vector<5x128xf32>
    %cst_48 = arith.constant 5.000000e-01 : f32
    %84 = vector.broadcast %cst_48 : f32 to vector<5x128xf32>
    %85 = arith.addf %83, %84 : vector<5x128xf32>
    %86 = vector.extract_strided_slice %77 {offsets = [0, 128], sizes = [5, 128], strides = [1, 1]} : vector<5x512xf32> to vector<5x128xf32>
    %cst_49 = arith.constant 5.000000e-01 : f32
    %87 = vector.broadcast %cst_49 : f32 to vector<5x128xf32>
    %88 = arith.mulf %87, %86 : vector<5x128xf32>
    %89 = math.tanh %88 : vector<5x128xf32>
    %cst_50 = arith.constant 5.000000e-01 : f32
    %90 = vector.broadcast %cst_50 : f32 to vector<5x128xf32>
    %91 = arith.mulf %90, %89 : vector<5x128xf32>
    %cst_51 = arith.constant 5.000000e-01 : f32
    %92 = vector.broadcast %cst_51 : f32 to vector<5x128xf32>
    %93 = arith.addf %91, %92 : vector<5x128xf32>
    %94 = vector.extract_strided_slice %77 {offsets = [0, 256], sizes = [5, 128], strides = [1, 1]} : vector<5x512xf32> to vector<5x128xf32>
    %95 = math.tanh %94 : vector<5x128xf32>
    %96 = vector.extract_strided_slice %77 {offsets = [0, 384], sizes = [5, 128], strides = [1, 1]} : vector<5x512xf32> to vector<5x128xf32>
    %cst_52 = arith.constant 5.000000e-01 : f32
    %97 = vector.broadcast %cst_52 : f32 to vector<5x128xf32>
    %98 = arith.mulf %97, %96 : vector<5x128xf32>
    %99 = math.tanh %98 : vector<5x128xf32>
    %cst_53 = arith.constant 5.000000e-01 : f32
    %100 = vector.broadcast %cst_53 : f32 to vector<5x128xf32>
    %101 = arith.mulf %100, %99 : vector<5x128xf32>
    %cst_54 = arith.constant 5.000000e-01 : f32
    %102 = vector.broadcast %cst_54 : f32 to vector<5x128xf32>
    %103 = arith.addf %101, %102 : vector<5x128xf32>
    %104 = arith.mulf %93, %42 : vector<5x128xf32>
    %105 = arith.mulf %85, %95 : vector<5x128xf32>
    %106 = arith.addf %104, %105 : vector<5x128xf32>
    %107 = math.tanh %106 : vector<5x128xf32>
    %108 = arith.mulf %103, %107 : vector<5x128xf32>
    %109 = math.tanh %108 : vector<5x128xf32>
    %cst_55 = arith.constant 0.000000e+00 : f32
    %110 = vector.broadcast %cst_55 : f32 to vector<5x128xf32>
    %111 = arith.maximumf %109, %110 : vector<5x128xf32>
    %112 = vector.extract_strided_slice %111 {offsets = [0, 0], sizes = [1, 128], strides = [1, 1]} : vector<5x128xf32> to vector<1x128xf32>
    %c0_56 = arith.constant 0 : index
    %c0_57 = arith.constant 0 : index
    %c0_58 = arith.constant 0 : index
    %113 = vector.load %arg4[%c0_56, %c0_57, %c0_58] : memref<5x128x128xf32, #tpu.memory_space<vmem>>, vector<1x128x128xf32>
    %114 = vector.shape_cast %113 : vector<1x128x128xf32> to vector<128x128xf32>
    %cst_59 = arith.constant dense<0.000000e+00> : vector<1x128xf32>
    %115 = tpu.matmul %112, %114, %cst_59 {dimension_numbers = #tpu.dot_dimension_numbers<[1], [0], [0], [1], [0, 0, 1, 1], [], []>} : vector<1x128xf32>, vector<128x128xf32>, vector<1x128xf32> -> vector<1x128xf32>
    %116 = arith.addf %8, %115 : vector<1x128xf32>
    %117 = vector.extract_strided_slice %111 {offsets = [1, 0], sizes = [1, 128], strides = [1, 1]} : vector<5x128xf32> to vector<1x128xf32>
    %c1_60 = arith.constant 1 : index
    %c0_61 = arith.constant 0 : index
    %c0_62 = arith.constant 0 : index
    %118 = vector.load %arg4[%c1_60, %c0_61, %c0_62] : memref<5x128x128xf32, #tpu.memory_space<vmem>>, vector<1x128x128xf32>
    %119 = vector.shape_cast %118 : vector<1x128x128xf32> to vector<128x128xf32>
    %cst_63 = arith.constant dense<0.000000e+00> : vector<1x128xf32>
    %120 = tpu.matmul %117, %119, %cst_63 {dimension_numbers = #tpu.dot_dimension_numbers<[1], [0], [0], [1], [0, 0, 1, 1], [], []>} : vector<1x128xf32>, vector<128x128xf32>, vector<1x128xf32> -> vector<1x128xf32>
    %121 = arith.addf %116, %120 : vector<1x128xf32>
    %122 = vector.extract_strided_slice %111 {offsets = [2, 0], sizes = [1, 128], strides = [1, 1]} : vector<5x128xf32> to vector<1x128xf32>
    %c2_64 = arith.constant 2 : index
    %c0_65 = arith.constant 0 : index
    %c0_66 = arith.constant 0 : index
    %123 = vector.load %arg4[%c2_64, %c0_65, %c0_66] : memref<5x128x128xf32, #tpu.memory_space<vmem>>, vector<1x128x128xf32>
    %124 = vector.shape_cast %123 : vector<1x128x128xf32> to vector<128x128xf32>
    %cst_67 = arith.constant dense<0.000000e+00> : vector<1x128xf32>
    %125 = tpu.matmul %122, %124, %cst_67 {dimension_numbers = #tpu.dot_dimension_numbers<[1], [0], [0], [1], [0, 0, 1, 1], [], []>} : vector<1x128xf32>, vector<128x128xf32>, vector<1x128xf32> -> vector<1x128xf32>
    %126 = arith.addf %121, %125 : vector<1x128xf32>
    %127 = vector.extract_strided_slice %111 {offsets = [3, 0], sizes = [1, 128], strides = [1, 1]} : vector<5x128xf32> to vector<1x128xf32>
    %c3_68 = arith.constant 3 : index
    %c0_69 = arith.constant 0 : index
    %c0_70 = arith.constant 0 : index
    %128 = vector.load %arg4[%c3_68, %c0_69, %c0_70] : memref<5x128x128xf32, #tpu.memory_space<vmem>>, vector<1x128x128xf32>
    %129 = vector.shape_cast %128 : vector<1x128x128xf32> to vector<128x128xf32>
    %cst_71 = arith.constant dense<0.000000e+00> : vector<1x128xf32>
    %130 = tpu.matmul %127, %129, %cst_71 {dimension_numbers = #tpu.dot_dimension_numbers<[1], [0], [0], [1], [0, 0, 1, 1], [], []>} : vector<1x128xf32>, vector<128x128xf32>, vector<1x128xf32> -> vector<1x128xf32>
    %131 = arith.addf %126, %130 : vector<1x128xf32>
    %132 = vector.extract_strided_slice %111 {offsets = [4, 0], sizes = [1, 128], strides = [1, 1]} : vector<5x128xf32> to vector<1x128xf32>
    %c4_72 = arith.constant 4 : index
    %c0_73 = arith.constant 0 : index
    %c0_74 = arith.constant 0 : index
    %133 = vector.load %arg4[%c4_72, %c0_73, %c0_74] : memref<5x128x128xf32, #tpu.memory_space<vmem>>, vector<1x128x128xf32>
    %134 = vector.shape_cast %133 : vector<1x128x128xf32> to vector<128x128xf32>
    %cst_75 = arith.constant dense<0.000000e+00> : vector<1x128xf32>
    %135 = tpu.matmul %132, %134, %cst_75 {dimension_numbers = #tpu.dot_dimension_numbers<[1], [0], [0], [1], [0, 0, 1, 1], [], []>} : vector<1x128xf32>, vector<128x128xf32>, vector<1x128xf32> -> vector<1x128xf32>
    %136 = arith.addf %131, %135 : vector<1x128xf32>
    %137 = vector.extract_strided_slice %136 {offsets = [0, 0], sizes = [1, 60], strides = [1, 1]} : vector<1x128xf32> to vector<1x60xf32>
    %c1_76 = arith.constant 1 : index
    %c0_77 = arith.constant 0 : index
    %138 = vector.load %arg6[%c1_76, %c0_77] : memref<8x60xf32, #tpu.memory_space<vmem>>, vector<1x60xf32>
    tpu.vector_store %arg6[%c1_76, %c0_77], %137 {strides = array<i32>} : memref<8x60xf32, #tpu.memory_space<vmem>>, vector<1x60xf32>,
    %c10 = arith.constant 10 : index
    %c0_78 = arith.constant 0 : index
    %139 = vector.load %arg7[%c10, %c0_78] : memref<40x512xf32, #tpu.memory_space<vmem>>, vector<5x512xf32>
    %cst_79 = arith.constant dense<0.000000e+00> : vector<5x512xf32>
    %140 = tpu.matmul %109, %7, %cst_79 {dimension_numbers = #tpu.dot_dimension_numbers<[1], [0], [0], [1], [0, 0, 1, 1], [], []>} : vector<5x128xf32>, vector<128x512xf32>, vector<5x512xf32> -> vector<5x512xf32>
    %141 = arith.addf %139, %140 : vector<5x512xf32>
    %142 = vector.extract_strided_slice %141 {offsets = [0, 0], sizes = [5, 128], strides = [1, 1]} : vector<5x512xf32> to vector<5x128xf32>
    %cst_80 = arith.constant 5.000000e-01 : f32
    %143 = vector.broadcast %cst_80 : f32 to vector<5x128xf32>
    %144 = arith.mulf %143, %142 : vector<5x128xf32>
    %145 = math.tanh %144 : vector<5x128xf32>
    %cst_81 = arith.constant 5.000000e-01 : f32
    %146 = vector.broadcast %cst_81 : f32 to vector<5x128xf32>
    %147 = arith.mulf %146, %145 : vector<5x128xf32>
    %cst_82 = arith.constant 5.000000e-01 : f32
    %148 = vector.broadcast %cst_82 : f32 to vector<5x128xf32>
    %149 = arith.addf %147, %148 : vector<5x128xf32>
    %150 = vector.extract_strided_slice %141 {offsets = [0, 128], sizes = [5, 128], strides = [1, 1]} : vector<5x512xf32> to vector<5x128xf32>
    %cst_83 = arith.constant 5.000000e-01 : f32
    %151 = vector.broadcast %cst_83 : f32 to vector<5x128xf32>
    %152 = arith.mulf %151, %150 : vector<5x128xf32>
    %153 = math.tanh %152 : vector<5x128xf32>
    %cst_84 = arith.constant 5.000000e-01 : f32
    %154 = vector.broadcast %cst_84 : f32 to vector<5x128xf32>
    %155 = arith.mulf %154, %153 : vector<5x128xf32>
    %cst_85 = arith.constant 5.000000e-01 : f32
    %156 = vector.broadcast %cst_85 : f32 to vector<5x128xf32>
    %157 = arith.addf %155, %156 : vector<5x128xf32>
    %158 = vector.extract_strided_slice %141 {offsets = [0, 256], sizes = [5, 128], strides = [1, 1]} : vector<5x512xf32> to vector<5x128xf32>
    %159 = math.tanh %158 : vector<5x128xf32>
    %160 = vector.extract_strided_slice %141 {offsets = [0, 384], sizes = [5, 128], strides = [1, 1]} : vector<5x512xf32> to vector<5x128xf32>
    %cst_86 = arith.constant 5.000000e-01 : f32
    %161 = vector.broadcast %cst_86 : f32 to vector<5x128xf32>
    %162 = arith.mulf %161, %160 : vector<5x128xf32>
    %163 = math.tanh %162 : vector<5x128xf32>
    %cst_87 = arith.constant 5.000000e-01 : f32
    %164 = vector.broadcast %cst_87 : f32 to vector<5x128xf32>
    %165 = arith.mulf %164, %163 : vector<5x128xf32>
    %cst_88 = arith.constant 5.000000e-01 : f32
    %166 = vector.broadcast %cst_88 : f32 to vector<5x128xf32>
    %167 = arith.addf %165, %166 : vector<5x128xf32>
    %168 = arith.mulf %157, %106 : vector<5x128xf32>
    %169 = arith.mulf %149, %159 : vector<5x128xf32>
    %170 = arith.addf %168, %169 : vector<5x128xf32>
    %171 = math.tanh %170 : vector<5x128xf32>
    %172 = arith.mulf %167, %171 : vector<5x128xf32>
    %173 = math.tanh %172 : vector<5x128xf32>
    %cst_89 = arith.constant 0.000000e+00 : f32
    %174 = vector.broadcast %cst_89 : f32 to vector<5x128xf32>
    %175 = arith.maximumf %173, %174 : vector<5x128xf32>
    %176 = vector.extract_strided_slice %175 {offsets = [0, 0], sizes = [1, 128], strides = [1, 1]} : vector<5x128xf32> to vector<1x128xf32>
    %c0_90 = arith.constant 0 : index
    %c0_91 = arith.constant 0 : index
    %c0_92 = arith.constant 0 : index
    %177 = vector.load %arg4[%c0_90, %c0_91, %c0_92] : memref<5x128x128xf32, #tpu.memory_space<vmem>>, vector<1x128x128xf32>
    %178 = vector.shape_cast %177 : vector<1x128x128xf32> to vector<128x128xf32>
    %cst_93 = arith.constant dense<0.000000e+00> : vector<1x128xf32>
    %179 = tpu.matmul %176, %178, %cst_93 {dimension_numbers = #tpu.dot_dimension_numbers<[1], [0], [0], [1], [0, 0, 1, 1], [], []>} : vector<1x128xf32>, vector<128x128xf32>, vector<1x128xf32> -> vector<1x128xf32>
    %180 = arith.addf %8, %179 : vector<1x128xf32>
    %181 = vector.extract_strided_slice %175 {offsets = [1, 0], sizes = [1, 128], strides = [1, 1]} : vector<5x128xf32> to vector<1x128xf32>
    %c1_94 = arith.constant 1 : index
    %c0_95 = arith.constant 0 : index
    %c0_96 = arith.constant 0 : index
    %182 = vector.load %arg4[%c1_94, %c0_95, %c0_96] : memref<5x128x128xf32, #tpu.memory_space<vmem>>, vector<1x128x128xf32>
    %183 = vector.shape_cast %182 : vector<1x128x128xf32> to vector<128x128xf32>
    %cst_97 = arith.constant dense<0.000000e+00> : vector<1x128xf32>
    %184 = tpu.matmul %181, %183, %cst_97 {dimension_numbers = #tpu.dot_dimension_numbers<[1], [0], [0], [1], [0, 0, 1, 1], [], []>} : vector<1x128xf32>, vector<128x128xf32>, vector<1x128xf32> -> vector<1x128xf32>
    %185 = arith.addf %180, %184 : vector<1x128xf32>
    %186 = vector.extract_strided_slice %175 {offsets = [2, 0], sizes = [1, 128], strides = [1, 1]} : vector<5x128xf32> to vector<1x128xf32>
    %c2_98 = arith.constant 2 : index
    %c0_99 = arith.constant 0 : index
    %c0_100 = arith.constant 0 : index
    %187 = vector.load %arg4[%c2_98, %c0_99, %c0_100] : memref<5x128x128xf32, #tpu.memory_space<vmem>>, vector<1x128x128xf32>
    %188 = vector.shape_cast %187 : vector<1x128x128xf32> to vector<128x128xf32>
    %cst_101 = arith.constant dense<0.000000e+00> : vector<1x128xf32>
    %189 = tpu.matmul %186, %188, %cst_101 {dimension_numbers = #tpu.dot_dimension_numbers<[1], [0], [0], [1], [0, 0, 1, 1], [], []>} : vector<1x128xf32>, vector<128x128xf32>, vector<1x128xf32> -> vector<1x128xf32>
    %190 = arith.addf %185, %189 : vector<1x128xf32>
    %191 = vector.extract_strided_slice %175 {offsets = [3, 0], sizes = [1, 128], strides = [1, 1]} : vector<5x128xf32> to vector<1x128xf32>
    %c3_102 = arith.constant 3 : index
    %c0_103 = arith.constant 0 : index
    %c0_104 = arith.constant 0 : index
    %192 = vector.load %arg4[%c3_102, %c0_103, %c0_104] : memref<5x128x128xf32, #tpu.memory_space<vmem>>, vector<1x128x128xf32>
    %193 = vector.shape_cast %192 : vector<1x128x128xf32> to vector<128x128xf32>
    %cst_105 = arith.constant dense<0.000000e+00> : vector<1x128xf32>
    %194 = tpu.matmul %191, %193, %cst_105 {dimension_numbers = #tpu.dot_dimension_numbers<[1], [0], [0], [1], [0, 0, 1, 1], [], []>} : vector<1x128xf32>, vector<128x128xf32>, vector<1x128xf32> -> vector<1x128xf32>
    %195 = arith.addf %190, %194 : vector<1x128xf32>
    %196 = vector.extract_strided_slice %175 {offsets = [4, 0], sizes = [1, 128], strides = [1, 1]} : vector<5x128xf32> to vector<1x128xf32>
    %c4_106 = arith.constant 4 : index
    %c0_107 = arith.constant 0 : index
    %c0_108 = arith.constant 0 : index
    %197 = vector.load %arg4[%c4_106, %c0_107, %c0_108] : memref<5x128x128xf32, #tpu.memory_space<vmem>>, vector<1x128x128xf32>
    %198 = vector.shape_cast %197 : vector<1x128x128xf32> to vector<128x128xf32>
    %cst_109 = arith.constant dense<0.000000e+00> : vector<1x128xf32>
    %199 = tpu.matmul %196, %198, %cst_109 {dimension_numbers = #tpu.dot_dimension_numbers<[1], [0], [0], [1], [0, 0, 1, 1], [], []>} : vector<1x128xf32>, vector<128x128xf32>, vector<1x128xf32> -> vector<1x128xf32>
    %200 = arith.addf %195, %199 : vector<1x128xf32>
    %201 = vector.extract_strided_slice %200 {offsets = [0, 0], sizes = [1, 60], strides = [1, 1]} : vector<1x128xf32> to vector<1x60xf32>
    %c2_110 = arith.constant 2 : index
    %c0_111 = arith.constant 0 : index
    %202 = vector.load %arg6[%c2_110, %c0_111] : memref<8x60xf32, #tpu.memory_space<vmem>>, vector<1x60xf32>
    tpu.vector_store %arg6[%c2_110, %c0_111], %201 {strides = array<i32>} : memref<8x60xf32, #tpu.memory_space<vmem>>, vector<1x60xf32>,
    %c15 = arith.constant 15 : index
    %c0_112 = arith.constant 0 : index
    %203 = vector.load %arg7[%c15, %c0_112] : memref<40x512xf32, #tpu.memory_space<vmem>>, vector<5x512xf32>
    %cst_113 = arith.constant dense<0.000000e+00> : vector<5x512xf32>
    %204 = tpu.matmul %173, %7, %cst_113 {dimension_numbers = #tpu.dot_dimension_numbers<[1], [0], [0], [1], [0, 0, 1, 1], [], []>} : vector<5x128xf32>, vector<128x512xf32>, vector<5x512xf32> -> vector<5x512xf32>
    %205 = arith.addf %203, %204 : vector<5x512xf32>
    %206 = vector.extract_strided_slice %205 {offsets = [0, 0], sizes = [5, 128], strides = [1, 1]} : vector<5x512xf32> to vector<5x128xf32>
    %cst_114 = arith.constant 5.000000e-01 : f32
    %207 = vector.broadcast %cst_114 : f32 to vector<5x128xf32>
    %208 = arith.mulf %207, %206 : vector<5x128xf32>
    %209 = math.tanh %208 : vector<5x128xf32>
    %cst_115 = arith.constant 5.000000e-01 : f32
    %210 = vector.broadcast %cst_115 : f32 to vector<5x128xf32>
    %211 = arith.mulf %210, %209 : vector<5x128xf32>
    %cst_116 = arith.constant 5.000000e-01 : f32
    %212 = vector.broadcast %cst_116 : f32 to vector<5x128xf32>
    %213 = arith.addf %211, %212 : vector<5x128xf32>
    %214 = vector.extract_strided_slice %205 {offsets = [0, 128], sizes = [5, 128], strides = [1, 1]} : vector<5x512xf32> to vector<5x128xf32>
    %cst_117 = arith.constant 5.000000e-01 : f32
    %215 = vector.broadcast %cst_117 : f32 to vector<5x128xf32>
    %216 = arith.mulf %215, %214 : vector<5x128xf32>
    %217 = math.tanh %216 : vector<5x128xf32>
    %cst_118 = arith.constant 5.000000e-01 : f32
    %218 = vector.broadcast %cst_118 : f32 to vector<5x128xf32>
    %219 = arith.mulf %218, %217 : vector<5x128xf32>
    %cst_119 = arith.constant 5.000000e-01 : f32
    %220 = vector.broadcast %cst_119 : f32 to vector<5x128xf32>
    %221 = arith.addf %219, %220 : vector<5x128xf32>
    %222 = vector.extract_strided_slice %205 {offsets = [0, 256], sizes = [5, 128], strides = [1, 1]} : vector<5x512xf32> to vector<5x128xf32>
    %223 = math.tanh %222 : vector<5x128xf32>
    %224 = vector.extract_strided_slice %205 {offsets = [0, 384], sizes = [5, 128], strides = [1, 1]} : vector<5x512xf32> to vector<5x128xf32>
    %cst_120 = arith.constant 5.000000e-01 : f32
    %225 = vector.broadcast %cst_120 : f32 to vector<5x128xf32>
    %226 = arith.mulf %225, %224 : vector<5x128xf32>
    %227 = math.tanh %226 : vector<5x128xf32>
    %cst_121 = arith.constant 5.000000e-01 : f32
    %228 = vector.broadcast %cst_121 : f32 to vector<5x128xf32>
    %229 = arith.mulf %228, %227 : vector<5x128xf32>
    %cst_122 = arith.constant 5.000000e-01 : f32
    %230 = vector.broadcast %cst_122 : f32 to vector<5x128xf32>
    %231 = arith.addf %229, %230 : vector<5x128xf32>
    %232 = arith.mulf %221, %170 : vector<5x128xf32>
    %233 = arith.mulf %213, %223 : vector<5x128xf32>
    %234 = arith.addf %232, %233 : vector<5x128xf32>
    %235 = math.tanh %234 : vector<5x128xf32>
    %236 = arith.mulf %231, %235 : vector<5x128xf32>
    %237 = math.tanh %236 : vector<5x128xf32>
    %cst_123 = arith.constant 0.000000e+00 : f32
    %238 = vector.broadcast %cst_123 : f32 to vector<5x128xf32>
    %239 = arith.maximumf %237, %238 : vector<5x128xf32>
    %240 = vector.extract_strided_slice %239 {offsets = [0, 0], sizes = [1, 128], strides = [1, 1]} : vector<5x128xf32> to vector<1x128xf32>
    %c0_124 = arith.constant 0 : index
    %c0_125 = arith.constant 0 : index
    %c0_126 = arith.constant 0 : index
    %241 = vector.load %arg4[%c0_124, %c0_125, %c0_126] : memref<5x128x128xf32, #tpu.memory_space<vmem>>, vector<1x128x128xf32>
    %242 = vector.shape_cast %241 : vector<1x128x128xf32> to vector<128x128xf32>
    %cst_127 = arith.constant dense<0.000000e+00> : vector<1x128xf32>
    %243 = tpu.matmul %240, %242, %cst_127 {dimension_numbers = #tpu.dot_dimension_numbers<[1], [0], [0], [1], [0, 0, 1, 1], [], []>} : vector<1x128xf32>, vector<128x128xf32>, vector<1x128xf32> -> vector<1x128xf32>
    %244 = arith.addf %8, %243 : vector<1x128xf32>
    %245 = vector.extract_strided_slice %239 {offsets = [1, 0], sizes = [1, 128], strides = [1, 1]} : vector<5x128xf32> to vector<1x128xf32>
    %c1_128 = arith.constant 1 : index
    %c0_129 = arith.constant 0 : index
    %c0_130 = arith.constant 0 : index
    %246 = vector.load %arg4[%c1_128, %c0_129, %c0_130] : memref<5x128x128xf32, #tpu.memory_space<vmem>>, vector<1x128x128xf32>
    %247 = vector.shape_cast %246 : vector<1x128x128xf32> to vector<128x128xf32>
    %cst_131 = arith.constant dense<0.000000e+00> : vector<1x128xf32>
    %248 = tpu.matmul %245, %247, %cst_131 {dimension_numbers = #tpu.dot_dimension_numbers<[1], [0], [0], [1], [0, 0, 1, 1], [], []>} : vector<1x128xf32>, vector<128x128xf32>, vector<1x128xf32> -> vector<1x128xf32>
    %249 = arith.addf %244, %248 : vector<1x128xf32>
    %250 = vector.extract_strided_slice %239 {offsets = [2, 0], sizes = [1, 128], strides = [1, 1]} : vector<5x128xf32> to vector<1x128xf32>
    %c2_132 = arith.constant 2 : index
    %c0_133 = arith.constant 0 : index
    %c0_134 = arith.constant 0 : index
    %251 = vector.load %arg4[%c2_132, %c0_133, %c0_134] : memref<5x128x128xf32, #tpu.memory_space<vmem>>, vector<1x128x128xf32>
    %252 = vector.shape_cast %251 : vector<1x128x128xf32> to vector<128x128xf32>
    %cst_135 = arith.constant dense<0.000000e+00> : vector<1x128xf32>
    %253 = tpu.matmul %250, %252, %cst_135 {dimension_numbers = #tpu.dot_dimension_numbers<[1], [0], [0], [1], [0, 0, 1, 1], [], []>} : vector<1x128xf32>, vector<128x128xf32>, vector<1x128xf32> -> vector<1x128xf32>
    %254 = arith.addf %249, %253 : vector<1x128xf32>
    %255 = vector.extract_strided_slice %239 {offsets = [3, 0], sizes = [1, 128], strides = [1, 1]} : vector<5x128xf32> to vector<1x128xf32>
    %c3_136 = arith.constant 3 : index
    %c0_137 = arith.constant 0 : index
    %c0_138 = arith.constant 0 : index
    %256 = vector.load %arg4[%c3_136, %c0_137, %c0_138] : memref<5x128x128xf32, #tpu.memory_space<vmem>>, vector<1x128x128xf32>
    %257 = vector.shape_cast %256 : vector<1x128x128xf32> to vector<128x128xf32>
    %cst_139 = arith.constant dense<0.000000e+00> : vector<1x128xf32>
    %258 = tpu.matmul %255, %257, %cst_139 {dimension_numbers = #tpu.dot_dimension_numbers<[1], [0], [0], [1], [0, 0, 1, 1], [], []>} : vector<1x128xf32>, vector<128x128xf32>, vector<1x128xf32> -> vector<1x128xf32>
    %259 = arith.addf %254, %258 : vector<1x128xf32>
    %260 = vector.extract_strided_slice %239 {offsets = [4, 0], sizes = [1, 128], strides = [1, 1]} : vector<5x128xf32> to vector<1x128xf32>
    %c4_140 = arith.constant 4 : index
    %c0_141 = arith.constant 0 : index
    %c0_142 = arith.constant 0 : index
    %261 = vector.load %arg4[%c4_140, %c0_141, %c0_142] : memref<5x128x128xf32, #tpu.memory_space<vmem>>, vector<1x128x128xf32>
    %262 = vector.shape_cast %261 : vector<1x128x128xf32> to vector<128x128xf32>
    %cst_143 = arith.constant dense<0.000000e+00> : vector<1x128xf32>
    %263 = tpu.matmul %260, %262, %cst_143 {dimension_numbers = #tpu.dot_dimension_numbers<[1], [0], [0], [1], [0, 0, 1, 1], [], []>} : vector<1x128xf32>, vector<128x128xf32>, vector<1x128xf32> -> vector<1x128xf32>
    %264 = arith.addf %259, %263 : vector<1x128xf32>
    %265 = vector.extract_strided_slice %264 {offsets = [0, 0], sizes = [1, 60], strides = [1, 1]} : vector<1x128xf32> to vector<1x60xf32>
    %c3_144 = arith.constant 3 : index
    %c0_145 = arith.constant 0 : index
    %266 = vector.load %arg6[%c3_144, %c0_145] : memref<8x60xf32, #tpu.memory_space<vmem>>, vector<1x60xf32>
    tpu.vector_store %arg6[%c3_144, %c0_145], %265 {strides = array<i32>} : memref<8x60xf32, #tpu.memory_space<vmem>>, vector<1x60xf32>,
    %c20 = arith.constant 20 : index
    %c0_146 = arith.constant 0 : index
    %267 = vector.load %arg7[%c20, %c0_146] : memref<40x512xf32, #tpu.memory_space<vmem>>, vector<5x512xf32>
    %cst_147 = arith.constant dense<0.000000e+00> : vector<5x512xf32>
    %268 = tpu.matmul %237, %7, %cst_147 {dimension_numbers = #tpu.dot_dimension_numbers<[1], [0], [0], [1], [0, 0, 1, 1], [], []>} : vector<5x128xf32>, vector<128x512xf32>, vector<5x512xf32> -> vector<5x512xf32>
    %269 = arith.addf %267, %268 : vector<5x512xf32>
    %270 = vector.extract_strided_slice %269 {offsets = [0, 0], sizes = [5, 128], strides = [1, 1]} : vector<5x512xf32> to vector<5x128xf32>
    %cst_148 = arith.constant 5.000000e-01 : f32
    %271 = vector.broadcast %cst_148 : f32 to vector<5x128xf32>
    %272 = arith.mulf %271, %270 : vector<5x128xf32>
    %273 = math.tanh %272 : vector<5x128xf32>
    %cst_149 = arith.constant 5.000000e-01 : f32
    %274 = vector.broadcast %cst_149 : f32 to vector<5x128xf32>
    %275 = arith.mulf %274, %273 : vector<5x128xf32>
    %cst_150 = arith.constant 5.000000e-01 : f32
    %276 = vector.broadcast %cst_150 : f32 to vector<5x128xf32>
    %277 = arith.addf %275, %276 : vector<5x128xf32>
    %278 = vector.extract_strided_slice %269 {offsets = [0, 128], sizes = [5, 128], strides = [1, 1]} : vector<5x512xf32> to vector<5x128xf32>
    %cst_151 = arith.constant 5.000000e-01 : f32
    %279 = vector.broadcast %cst_151 : f32 to vector<5x128xf32>
    %280 = arith.mulf %279, %278 : vector<5x128xf32>
    %281 = math.tanh %280 : vector<5x128xf32>
    %cst_152 = arith.constant 5.000000e-01 : f32
    %282 = vector.broadcast %cst_152 : f32 to vector<5x128xf32>
    %283 = arith.mulf %282, %281 : vector<5x128xf32>
    %cst_153 = arith.constant 5.000000e-01 : f32
    %284 = vector.broadcast %cst_153 : f32 to vector<5x128xf32>
    %285 = arith.addf %283, %284 : vector<5x128xf32>
    %286 = vector.extract_strided_slice %269 {offsets = [0, 256], sizes = [5, 128], strides = [1, 1]} : vector<5x512xf32> to vector<5x128xf32>
    %287 = math.tanh %286 : vector<5x128xf32>
    %288 = vector.extract_strided_slice %269 {offsets = [0, 384], sizes = [5, 128], strides = [1, 1]} : vector<5x512xf32> to vector<5x128xf32>
    %cst_154 = arith.constant 5.000000e-01 : f32
    %289 = vector.broadcast %cst_154 : f32 to vector<5x128xf32>
    %290 = arith.mulf %289, %288 : vector<5x128xf32>
    %291 = math.tanh %290 : vector<5x128xf32>
    %cst_155 = arith.constant 5.000000e-01 : f32
    %292 = vector.broadcast %cst_155 : f32 to vector<5x128xf32>
    %293 = arith.mulf %292, %291 : vector<5x128xf32>
    %cst_156 = arith.constant 5.000000e-01 : f32
    %294 = vector.broadcast %cst_156 : f32 to vector<5x128xf32>
    %295 = arith.addf %293, %294 : vector<5x128xf32>
    %296 = arith.mulf %285, %234 : vector<5x128xf32>
    %297 = arith.mulf %277, %287 : vector<5x128xf32>
    %298 = arith.addf %296, %297 : vector<5x128xf32>
    %299 = math.tanh %298 : vector<5x128xf32>
    %300 = arith.mulf %295, %299 : vector<5x128xf32>
    %301 = math.tanh %300 : vector<5x128xf32>
    %cst_157 = arith.constant 0.000000e+00 : f32
    %302 = vector.broadcast %cst_157 : f32 to vector<5x128xf32>
    %303 = arith.maximumf %301, %302 : vector<5x128xf32>
    %304 = vector.extract_strided_slice %303 {offsets = [0, 0], sizes = [1, 128], strides = [1, 1]} : vector<5x128xf32> to vector<1x128xf32>
    %c0_158 = arith.constant 0 : index
    %c0_159 = arith.constant 0 : index
    %c0_160 = arith.constant 0 : index
    %305 = vector.load %arg4[%c0_158, %c0_159, %c0_160] : memref<5x128x128xf32, #tpu.memory_space<vmem>>, vector<1x128x128xf32>
    %306 = vector.shape_cast %305 : vector<1x128x128xf32> to vector<128x128xf32>
    %cst_161 = arith.constant dense<0.000000e+00> : vector<1x128xf32>
    %307 = tpu.matmul %304, %306, %cst_161 {dimension_numbers = #tpu.dot_dimension_numbers<[1], [0], [0], [1], [0, 0, 1, 1], [], []>} : vector<1x128xf32>, vector<128x128xf32>, vector<1x128xf32> -> vector<1x128xf32>
    %308 = arith.addf %8, %307 : vector<1x128xf32>
    %309 = vector.extract_strided_slice %303 {offsets = [1, 0], sizes = [1, 128], strides = [1, 1]} : vector<5x128xf32> to vector<1x128xf32>
    %c1_162 = arith.constant 1 : index
    %c0_163 = arith.constant 0 : index
    %c0_164 = arith.constant 0 : index
    %310 = vector.load %arg4[%c1_162, %c0_163, %c0_164] : memref<5x128x128xf32, #tpu.memory_space<vmem>>, vector<1x128x128xf32>
    %311 = vector.shape_cast %310 : vector<1x128x128xf32> to vector<128x128xf32>
    %cst_165 = arith.constant dense<0.000000e+00> : vector<1x128xf32>
    %312 = tpu.matmul %309, %311, %cst_165 {dimension_numbers = #tpu.dot_dimension_numbers<[1], [0], [0], [1], [0, 0, 1, 1], [], []>} : vector<1x128xf32>, vector<128x128xf32>, vector<1x128xf32> -> vector<1x128xf32>
    %313 = arith.addf %308, %312 : vector<1x128xf32>
    %314 = vector.extract_strided_slice %303 {offsets = [2, 0], sizes = [1, 128], strides = [1, 1]} : vector<5x128xf32> to vector<1x128xf32>
    %c2_166 = arith.constant 2 : index
    %c0_167 = arith.constant 0 : index
    %c0_168 = arith.constant 0 : index
    %315 = vector.load %arg4[%c2_166, %c0_167, %c0_168] : memref<5x128x128xf32, #tpu.memory_space<vmem>>, vector<1x128x128xf32>
    %316 = vector.shape_cast %315 : vector<1x128x128xf32> to vector<128x128xf32>
    %cst_169 = arith.constant dense<0.000000e+00> : vector<1x128xf32>
    %317 = tpu.matmul %314, %316, %cst_169 {dimension_numbers = #tpu.dot_dimension_numbers<[1], [0], [0], [1], [0, 0, 1, 1], [], []>} : vector<1x128xf32>, vector<128x128xf32>, vector<1x128xf32> -> vector<1x128xf32>
    %318 = arith.addf %313, %317 : vector<1x128xf32>
    %319 = vector.extract_strided_slice %303 {offsets = [3, 0], sizes = [1, 128], strides = [1, 1]} : vector<5x128xf32> to vector<1x128xf32>
    %c3_170 = arith.constant 3 : index
    %c0_171 = arith.constant 0 : index
    %c0_172 = arith.constant 0 : index
    %320 = vector.load %arg4[%c3_170, %c0_171, %c0_172] : memref<5x128x128xf32, #tpu.memory_space<vmem>>, vector<1x128x128xf32>
    %321 = vector.shape_cast %320 : vector<1x128x128xf32> to vector<128x128xf32>
    %cst_173 = arith.constant dense<0.000000e+00> : vector<1x128xf32>
    %322 = tpu.matmul %319, %321, %cst_173 {dimension_numbers = #tpu.dot_dimension_numbers<[1], [0], [0], [1], [0, 0, 1, 1], [], []>} : vector<1x128xf32>, vector<128x128xf32>, vector<1x128xf32> -> vector<1x128xf32>
    %323 = arith.addf %318, %322 : vector<1x128xf32>
    %324 = vector.extract_strided_slice %303 {offsets = [4, 0], sizes = [1, 128], strides = [1, 1]} : vector<5x128xf32> to vector<1x128xf32>
    %c4_174 = arith.constant 4 : index
    %c0_175 = arith.constant 0 : index
    %c0_176 = arith.constant 0 : index
    %325 = vector.load %arg4[%c4_174, %c0_175, %c0_176] : memref<5x128x128xf32, #tpu.memory_space<vmem>>, vector<1x128x128xf32>
    %326 = vector.shape_cast %325 : vector<1x128x128xf32> to vector<128x128xf32>
    %cst_177 = arith.constant dense<0.000000e+00> : vector<1x128xf32>
    %327 = tpu.matmul %324, %326, %cst_177 {dimension_numbers = #tpu.dot_dimension_numbers<[1], [0], [0], [1], [0, 0, 1, 1], [], []>} : vector<1x128xf32>, vector<128x128xf32>, vector<1x128xf32> -> vector<1x128xf32>
    %328 = arith.addf %323, %327 : vector<1x128xf32>
    %329 = vector.extract_strided_slice %328 {offsets = [0, 0], sizes = [1, 60], strides = [1, 1]} : vector<1x128xf32> to vector<1x60xf32>
    %c4_178 = arith.constant 4 : index
    %c0_179 = arith.constant 0 : index
    %330 = vector.load %arg6[%c4_178, %c0_179] : memref<8x60xf32, #tpu.memory_space<vmem>>, vector<1x60xf32>
    tpu.vector_store %arg6[%c4_178, %c0_179], %329 {strides = array<i32>} : memref<8x60xf32, #tpu.memory_space<vmem>>, vector<1x60xf32>,
    %c25 = arith.constant 25 : index
    %c0_180 = arith.constant 0 : index
    %331 = vector.load %arg7[%c25, %c0_180] : memref<40x512xf32, #tpu.memory_space<vmem>>, vector<5x512xf32>
    %cst_181 = arith.constant dense<0.000000e+00> : vector<5x512xf32>
    %332 = tpu.matmul %301, %7, %cst_181 {dimension_numbers = #tpu.dot_dimension_numbers<[1], [0], [0], [1], [0, 0, 1, 1], [], []>} : vector<5x128xf32>, vector<128x512xf32>, vector<5x512xf32> -> vector<5x512xf32>
    %333 = arith.addf %331, %332 : vector<5x512xf32>
    %334 = vector.extract_strided_slice %333 {offsets = [0, 0], sizes = [5, 128], strides = [1, 1]} : vector<5x512xf32> to vector<5x128xf32>
    %cst_182 = arith.constant 5.000000e-01 : f32
    %335 = vector.broadcast %cst_182 : f32 to vector<5x128xf32>
    %336 = arith.mulf %335, %334 : vector<5x128xf32>
    %337 = math.tanh %336 : vector<5x128xf32>
    %cst_183 = arith.constant 5.000000e-01 : f32
    %338 = vector.broadcast %cst_183 : f32 to vector<5x128xf32>
    %339 = arith.mulf %338, %337 : vector<5x128xf32>
    %cst_184 = arith.constant 5.000000e-01 : f32
    %340 = vector.broadcast %cst_184 : f32 to vector<5x128xf32>
    %341 = arith.addf %339, %340 : vector<5x128xf32>
    %342 = vector.extract_strided_slice %333 {offsets = [0, 128], sizes = [5, 128], strides = [1, 1]} : vector<5x512xf32> to vector<5x128xf32>
    %cst_185 = arith.constant 5.000000e-01 : f32
    %343 = vector.broadcast %cst_185 : f32 to vector<5x128xf32>
    %344 = arith.mulf %343, %342 : vector<5x128xf32>
    %345 = math.tanh %344 : vector<5x128xf32>
    %cst_186 = arith.constant 5.000000e-01 : f32
    %346 = vector.broadcast %cst_186 : f32 to vector<5x128xf32>
    %347 = arith.mulf %346, %345 : vector<5x128xf32>
    %cst_187 = arith.constant 5.000000e-01 : f32
    %348 = vector.broadcast %cst_187 : f32 to vector<5x128xf32>
    %349 = arith.addf %347, %348 : vector<5x128xf32>
    %350 = vector.extract_strided_slice %333 {offsets = [0, 256], sizes = [5, 128], strides = [1, 1]} : vector<5x512xf32> to vector<5x128xf32>
    %351 = math.tanh %350 : vector<5x128xf32>
    %352 = vector.extract_strided_slice %333 {offsets = [0, 384], sizes = [5, 128], strides = [1, 1]} : vector<5x512xf32> to vector<5x128xf32>
    %cst_188 = arith.constant 5.000000e-01 : f32
    %353 = vector.broadcast %cst_188 : f32 to vector<5x128xf32>
    %354 = arith.mulf %353, %352 : vector<5x128xf32>
    %355 = math.tanh %354 : vector<5x128xf32>
    %cst_189 = arith.constant 5.000000e-01 : f32
    %356 = vector.broadcast %cst_189 : f32 to vector<5x128xf32>
    %357 = arith.mulf %356, %355 : vector<5x128xf32>
    %cst_190 = arith.constant 5.000000e-01 : f32
    %358 = vector.broadcast %cst_190 : f32 to vector<5x128xf32>
    %359 = arith.addf %357, %358 : vector<5x128xf32>
    %360 = arith.mulf %349, %298 : vector<5x128xf32>
    %361 = arith.mulf %341, %351 : vector<5x128xf32>
    %362 = arith.addf %360, %361 : vector<5x128xf32>
    %363 = math.tanh %362 : vector<5x128xf32>
    %364 = arith.mulf %359, %363 : vector<5x128xf32>
    %365 = math.tanh %364 : vector<5x128xf32>
    %cst_191 = arith.constant 0.000000e+00 : f32
    %366 = vector.broadcast %cst_191 : f32 to vector<5x128xf32>
    %367 = arith.maximumf %365, %366 : vector<5x128xf32>
    %368 = vector.extract_strided_slice %367 {offsets = [0, 0], sizes = [1, 128], strides = [1, 1]} : vector<5x128xf32> to vector<1x128xf32>
    %c0_192 = arith.constant 0 : index
    %c0_193 = arith.constant 0 : index
    %c0_194 = arith.constant 0 : index
    %369 = vector.load %arg4[%c0_192, %c0_193, %c0_194] : memref<5x128x128xf32, #tpu.memory_space<vmem>>, vector<1x128x128xf32>
    %370 = vector.shape_cast %369 : vector<1x128x128xf32> to vector<128x128xf32>
    %cst_195 = arith.constant dense<0.000000e+00> : vector<1x128xf32>
    %371 = tpu.matmul %368, %370, %cst_195 {dimension_numbers = #tpu.dot_dimension_numbers<[1], [0], [0], [1], [0, 0, 1, 1], [], []>} : vector<1x128xf32>, vector<128x128xf32>, vector<1x128xf32> -> vector<1x128xf32>
    %372 = arith.addf %8, %371 : vector<1x128xf32>
    %373 = vector.extract_strided_slice %367 {offsets = [1, 0], sizes = [1, 128], strides = [1, 1]} : vector<5x128xf32> to vector<1x128xf32>
    %c1_196 = arith.constant 1 : index
    %c0_197 = arith.constant 0 : index
    %c0_198 = arith.constant 0 : index
    %374 = vector.load %arg4[%c1_196, %c0_197, %c0_198] : memref<5x128x128xf32, #tpu.memory_space<vmem>>, vector<1x128x128xf32>
    %375 = vector.shape_cast %374 : vector<1x128x128xf32> to vector<128x128xf32>
    %cst_199 = arith.constant dense<0.000000e+00> : vector<1x128xf32>
    %376 = tpu.matmul %373, %375, %cst_199 {dimension_numbers = #tpu.dot_dimension_numbers<[1], [0], [0], [1], [0, 0, 1, 1], [], []>} : vector<1x128xf32>, vector<128x128xf32>, vector<1x128xf32> -> vector<1x128xf32>
    %377 = arith.addf %372, %376 : vector<1x128xf32>
    %378 = vector.extract_strided_slice %367 {offsets = [2, 0], sizes = [1, 128], strides = [1, 1]} : vector<5x128xf32> to vector<1x128xf32>
    %c2_200 = arith.constant 2 : index
    %c0_201 = arith.constant 0 : index
    %c0_202 = arith.constant 0 : index
    %379 = vector.load %arg4[%c2_200, %c0_201, %c0_202] : memref<5x128x128xf32, #tpu.memory_space<vmem>>, vector<1x128x128xf32>
    %380 = vector.shape_cast %379 : vector<1x128x128xf32> to vector<128x128xf32>
    %cst_203 = arith.constant dense<0.000000e+00> : vector<1x128xf32>
    %381 = tpu.matmul %378, %380, %cst_203 {dimension_numbers = #tpu.dot_dimension_numbers<[1], [0], [0], [1], [0, 0, 1, 1], [], []>} : vector<1x128xf32>, vector<128x128xf32>, vector<1x128xf32> -> vector<1x128xf32>
    %382 = arith.addf %377, %381 : vector<1x128xf32>
    %383 = vector.extract_strided_slice %367 {offsets = [3, 0], sizes = [1, 128], strides = [1, 1]} : vector<5x128xf32> to vector<1x128xf32>
    %c3_204 = arith.constant 3 : index
    %c0_205 = arith.constant 0 : index
    %c0_206 = arith.constant 0 : index
    %384 = vector.load %arg4[%c3_204, %c0_205, %c0_206] : memref<5x128x128xf32, #tpu.memory_space<vmem>>, vector<1x128x128xf32>
    %385 = vector.shape_cast %384 : vector<1x128x128xf32> to vector<128x128xf32>
    %cst_207 = arith.constant dense<0.000000e+00> : vector<1x128xf32>
    %386 = tpu.matmul %383, %385, %cst_207 {dimension_numbers = #tpu.dot_dimension_numbers<[1], [0], [0], [1], [0, 0, 1, 1], [], []>} : vector<1x128xf32>, vector<128x128xf32>, vector<1x128xf32> -> vector<1x128xf32>
    %387 = arith.addf %382, %386 : vector<1x128xf32>
    %388 = vector.extract_strided_slice %367 {offsets = [4, 0], sizes = [1, 128], strides = [1, 1]} : vector<5x128xf32> to vector<1x128xf32>
    %c4_208 = arith.constant 4 : index
    %c0_209 = arith.constant 0 : index
    %c0_210 = arith.constant 0 : index
    %389 = vector.load %arg4[%c4_208, %c0_209, %c0_210] : memref<5x128x128xf32, #tpu.memory_space<vmem>>, vector<1x128x128xf32>
    %390 = vector.shape_cast %389 : vector<1x128x128xf32> to vector<128x128xf32>
    %cst_211 = arith.constant dense<0.000000e+00> : vector<1x128xf32>
    %391 = tpu.matmul %388, %390, %cst_211 {dimension_numbers = #tpu.dot_dimension_numbers<[1], [0], [0], [1], [0, 0, 1, 1], [], []>} : vector<1x128xf32>, vector<128x128xf32>, vector<1x128xf32> -> vector<1x128xf32>
    %392 = arith.addf %387, %391 : vector<1x128xf32>
    %393 = vector.extract_strided_slice %392 {offsets = [0, 0], sizes = [1, 60], strides = [1, 1]} : vector<1x128xf32> to vector<1x60xf32>
    %c5_212 = arith.constant 5 : index
    %c0_213 = arith.constant 0 : index
    %394 = vector.load %arg6[%c5_212, %c0_213] : memref<8x60xf32, #tpu.memory_space<vmem>>, vector<1x60xf32>
    tpu.vector_store %arg6[%c5_212, %c0_213], %393 {strides = array<i32>} : memref<8x60xf32, #tpu.memory_space<vmem>>, vector<1x60xf32>,
    %c30 = arith.constant 30 : index
    %c0_214 = arith.constant 0 : index
    %395 = vector.load %arg7[%c30, %c0_214] : memref<40x512xf32, #tpu.memory_space<vmem>>, vector<5x512xf32>
    %cst_215 = arith.constant dense<0.000000e+00> : vector<5x512xf32>
    %396 = tpu.matmul %365, %7, %cst_215 {dimension_numbers = #tpu.dot_dimension_numbers<[1], [0], [0], [1], [0, 0, 1, 1], [], []>} : vector<5x128xf32>, vector<128x512xf32>, vector<5x512xf32> -> vector<5x512xf32>
    %397 = arith.addf %395, %396 : vector<5x512xf32>
    %398 = vector.extract_strided_slice %397 {offsets = [0, 0], sizes = [5, 128], strides = [1, 1]} : vector<5x512xf32> to vector<5x128xf32>
    %cst_216 = arith.constant 5.000000e-01 : f32
    %399 = vector.broadcast %cst_216 : f32 to vector<5x128xf32>
    %400 = arith.mulf %399, %398 : vector<5x128xf32>
    %401 = math.tanh %400 : vector<5x128xf32>
    %cst_217 = arith.constant 5.000000e-01 : f32
    %402 = vector.broadcast %cst_217 : f32 to vector<5x128xf32>
    %403 = arith.mulf %402, %401 : vector<5x128xf32>
    %cst_218 = arith.constant 5.000000e-01 : f32
    %404 = vector.broadcast %cst_218 : f32 to vector<5x128xf32>
    %405 = arith.addf %403, %404 : vector<5x128xf32>
    %406 = vector.extract_strided_slice %397 {offsets = [0, 128], sizes = [5, 128], strides = [1, 1]} : vector<5x512xf32> to vector<5x128xf32>
    %cst_219 = arith.constant 5.000000e-01 : f32
    %407 = vector.broadcast %cst_219 : f32 to vector<5x128xf32>
    %408 = arith.mulf %407, %406 : vector<5x128xf32>
    %409 = math.tanh %408 : vector<5x128xf32>
    %cst_220 = arith.constant 5.000000e-01 : f32
    %410 = vector.broadcast %cst_220 : f32 to vector<5x128xf32>
    %411 = arith.mulf %410, %409 : vector<5x128xf32>
    %cst_221 = arith.constant 5.000000e-01 : f32
    %412 = vector.broadcast %cst_221 : f32 to vector<5x128xf32>
    %413 = arith.addf %411, %412 : vector<5x128xf32>
    %414 = vector.extract_strided_slice %397 {offsets = [0, 256], sizes = [5, 128], strides = [1, 1]} : vector<5x512xf32> to vector<5x128xf32>
    %415 = math.tanh %414 : vector<5x128xf32>
    %416 = vector.extract_strided_slice %397 {offsets = [0, 384], sizes = [5, 128], strides = [1, 1]} : vector<5x512xf32> to vector<5x128xf32>
    %cst_222 = arith.constant 5.000000e-01 : f32
    %417 = vector.broadcast %cst_222 : f32 to vector<5x128xf32>
    %418 = arith.mulf %417, %416 : vector<5x128xf32>
    %419 = math.tanh %418 : vector<5x128xf32>
    %cst_223 = arith.constant 5.000000e-01 : f32
    %420 = vector.broadcast %cst_223 : f32 to vector<5x128xf32>
    %421 = arith.mulf %420, %419 : vector<5x128xf32>
    %cst_224 = arith.constant 5.000000e-01 : f32
    %422 = vector.broadcast %cst_224 : f32 to vector<5x128xf32>
    %423 = arith.addf %421, %422 : vector<5x128xf32>
    %424 = arith.mulf %413, %362 : vector<5x128xf32>
    %425 = arith.mulf %405, %415 : vector<5x128xf32>
    %426 = arith.addf %424, %425 : vector<5x128xf32>
    %427 = math.tanh %426 : vector<5x128xf32>
    %428 = arith.mulf %423, %427 : vector<5x128xf32>
    %429 = math.tanh %428 : vector<5x128xf32>
    %cst_225 = arith.constant 0.000000e+00 : f32
    %430 = vector.broadcast %cst_225 : f32 to vector<5x128xf32>
    %431 = arith.maximumf %429, %430 : vector<5x128xf32>
    %432 = vector.extract_strided_slice %431 {offsets = [0, 0], sizes = [1, 128], strides = [1, 1]} : vector<5x128xf32> to vector<1x128xf32>
    %c0_226 = arith.constant 0 : index
    %c0_227 = arith.constant 0 : index
    %c0_228 = arith.constant 0 : index
    %433 = vector.load %arg4[%c0_226, %c0_227, %c0_228] : memref<5x128x128xf32, #tpu.memory_space<vmem>>, vector<1x128x128xf32>
    %434 = vector.shape_cast %433 : vector<1x128x128xf32> to vector<128x128xf32>
    %cst_229 = arith.constant dense<0.000000e+00> : vector<1x128xf32>
    %435 = tpu.matmul %432, %434, %cst_229 {dimension_numbers = #tpu.dot_dimension_numbers<[1], [0], [0], [1], [0, 0, 1, 1], [], []>} : vector<1x128xf32>, vector<128x128xf32>, vector<1x128xf32> -> vector<1x128xf32>
    %436 = arith.addf %8, %435 : vector<1x128xf32>
    %437 = vector.extract_strided_slice %431 {offsets = [1, 0], sizes = [1, 128], strides = [1, 1]} : vector<5x128xf32> to vector<1x128xf32>
    %c1_230 = arith.constant 1 : index
    %c0_231 = arith.constant 0 : index
    %c0_232 = arith.constant 0 : index
    %438 = vector.load %arg4[%c1_230, %c0_231, %c0_232] : memref<5x128x128xf32, #tpu.memory_space<vmem>>, vector<1x128x128xf32>
    %439 = vector.shape_cast %438 : vector<1x128x128xf32> to vector<128x128xf32>
    %cst_233 = arith.constant dense<0.000000e+00> : vector<1x128xf32>
    %440 = tpu.matmul %437, %439, %cst_233 {dimension_numbers = #tpu.dot_dimension_numbers<[1], [0], [0], [1], [0, 0, 1, 1], [], []>} : vector<1x128xf32>, vector<128x128xf32>, vector<1x128xf32> -> vector<1x128xf32>
    %441 = arith.addf %436, %440 : vector<1x128xf32>
    %442 = vector.extract_strided_slice %431 {offsets = [2, 0], sizes = [1, 128], strides = [1, 1]} : vector<5x128xf32> to vector<1x128xf32>
    %c2_234 = arith.constant 2 : index
    %c0_235 = arith.constant 0 : index
    %c0_236 = arith.constant 0 : index
    %443 = vector.load %arg4[%c2_234, %c0_235, %c0_236] : memref<5x128x128xf32, #tpu.memory_space<vmem>>, vector<1x128x128xf32>
    %444 = vector.shape_cast %443 : vector<1x128x128xf32> to vector<128x128xf32>
    %cst_237 = arith.constant dense<0.000000e+00> : vector<1x128xf32>
    %445 = tpu.matmul %442, %444, %cst_237 {dimension_numbers = #tpu.dot_dimension_numbers<[1], [0], [0], [1], [0, 0, 1, 1], [], []>} : vector<1x128xf32>, vector<128x128xf32>, vector<1x128xf32> -> vector<1x128xf32>
    %446 = arith.addf %441, %445 : vector<1x128xf32>
    %447 = vector.extract_strided_slice %431 {offsets = [3, 0], sizes = [1, 128], strides = [1, 1]} : vector<5x128xf32> to vector<1x128xf32>
    %c3_238 = arith.constant 3 : index
    %c0_239 = arith.constant 0 : index
    %c0_240 = arith.constant 0 : index
    %448 = vector.load %arg4[%c3_238, %c0_239, %c0_240] : memref<5x128x128xf32, #tpu.memory_space<vmem>>, vector<1x128x128xf32>
    %449 = vector.shape_cast %448 : vector<1x128x128xf32> to vector<128x128xf32>
    %cst_241 = arith.constant dense<0.000000e+00> : vector<1x128xf32>
    %450 = tpu.matmul %447, %449, %cst_241 {dimension_numbers = #tpu.dot_dimension_numbers<[1], [0], [0], [1], [0, 0, 1, 1], [], []>} : vector<1x128xf32>, vector<128x128xf32>, vector<1x128xf32> -> vector<1x128xf32>
    %451 = arith.addf %446, %450 : vector<1x128xf32>
    %452 = vector.extract_strided_slice %431 {offsets = [4, 0], sizes = [1, 128], strides = [1, 1]} : vector<5x128xf32> to vector<1x128xf32>
    %c4_242 = arith.constant 4 : index
    %c0_243 = arith.constant 0 : index
    %c0_244 = arith.constant 0 : index
    %453 = vector.load %arg4[%c4_242, %c0_243, %c0_244] : memref<5x128x128xf32, #tpu.memory_space<vmem>>, vector<1x128x128xf32>
    %454 = vector.shape_cast %453 : vector<1x128x128xf32> to vector<128x128xf32>
    %cst_245 = arith.constant dense<0.000000e+00> : vector<1x128xf32>
    %455 = tpu.matmul %452, %454, %cst_245 {dimension_numbers = #tpu.dot_dimension_numbers<[1], [0], [0], [1], [0, 0, 1, 1], [], []>} : vector<1x128xf32>, vector<128x128xf32>, vector<1x128xf32> -> vector<1x128xf32>
    %456 = arith.addf %451, %455 : vector<1x128xf32>
    %457 = vector.extract_strided_slice %456 {offsets = [0, 0], sizes = [1, 60], strides = [1, 1]} : vector<1x128xf32> to vector<1x60xf32>
    %c6 = arith.constant 6 : index
    %c0_246 = arith.constant 0 : index
    %458 = vector.load %arg6[%c6, %c0_246] : memref<8x60xf32, #tpu.memory_space<vmem>>, vector<1x60xf32>
    tpu.vector_store %arg6[%c6, %c0_246], %457 {strides = array<i32>} : memref<8x60xf32, #tpu.memory_space<vmem>>, vector<1x60xf32>,
    %c35 = arith.constant 35 : index
    %c0_247 = arith.constant 0 : index
    %459 = vector.load %arg7[%c35, %c0_247] : memref<40x512xf32, #tpu.memory_space<vmem>>, vector<5x512xf32>
    %cst_248 = arith.constant dense<0.000000e+00> : vector<5x512xf32>
    %460 = tpu.matmul %429, %7, %cst_248 {dimension_numbers = #tpu.dot_dimension_numbers<[1], [0], [0], [1], [0, 0, 1, 1], [], []>} : vector<5x128xf32>, vector<128x512xf32>, vector<5x512xf32> -> vector<5x512xf32>
    %461 = arith.addf %459, %460 : vector<5x512xf32>
    %462 = vector.extract_strided_slice %461 {offsets = [0, 0], sizes = [5, 128], strides = [1, 1]} : vector<5x512xf32> to vector<5x128xf32>
    %cst_249 = arith.constant 5.000000e-01 : f32
    %463 = vector.broadcast %cst_249 : f32 to vector<5x128xf32>
    %464 = arith.mulf %463, %462 : vector<5x128xf32>
    %465 = math.tanh %464 : vector<5x128xf32>
    %cst_250 = arith.constant 5.000000e-01 : f32
    %466 = vector.broadcast %cst_250 : f32 to vector<5x128xf32>
    %467 = arith.mulf %466, %465 : vector<5x128xf32>
    %cst_251 = arith.constant 5.000000e-01 : f32
    %468 = vector.broadcast %cst_251 : f32 to vector<5x128xf32>
    %469 = arith.addf %467, %468 : vector<5x128xf32>
    %470 = vector.extract_strided_slice %461 {offsets = [0, 128], sizes = [5, 128], strides = [1, 1]} : vector<5x512xf32> to vector<5x128xf32>
    %cst_252 = arith.constant 5.000000e-01 : f32
    %471 = vector.broadcast %cst_252 : f32 to vector<5x128xf32>
    %472 = arith.mulf %471, %470 : vector<5x128xf32>
    %473 = math.tanh %472 : vector<5x128xf32>
    %cst_253 = arith.constant 5.000000e-01 : f32
    %474 = vector.broadcast %cst_253 : f32 to vector<5x128xf32>
    %475 = arith.mulf %474, %473 : vector<5x128xf32>
    %cst_254 = arith.constant 5.000000e-01 : f32
    %476 = vector.broadcast %cst_254 : f32 to vector<5x128xf32>
    %477 = arith.addf %475, %476 : vector<5x128xf32>
    %478 = vector.extract_strided_slice %461 {offsets = [0, 256], sizes = [5, 128], strides = [1, 1]} : vector<5x512xf32> to vector<5x128xf32>
    %479 = math.tanh %478 : vector<5x128xf32>
    %480 = vector.extract_strided_slice %461 {offsets = [0, 384], sizes = [5, 128], strides = [1, 1]} : vector<5x512xf32> to vector<5x128xf32>
    %cst_255 = arith.constant 5.000000e-01 : f32
    %481 = vector.broadcast %cst_255 : f32 to vector<5x128xf32>
    %482 = arith.mulf %481, %480 : vector<5x128xf32>
    %483 = math.tanh %482 : vector<5x128xf32>
    %cst_256 = arith.constant 5.000000e-01 : f32
    %484 = vector.broadcast %cst_256 : f32 to vector<5x128xf32>
    %485 = arith.mulf %484, %483 : vector<5x128xf32>
    %cst_257 = arith.constant 5.000000e-01 : f32
    %486 = vector.broadcast %cst_257 : f32 to vector<5x128xf32>
    %487 = arith.addf %485, %486 : vector<5x128xf32>
    %488 = arith.mulf %477, %426 : vector<5x128xf32>
    %489 = arith.mulf %469, %479 : vector<5x128xf32>
    %490 = arith.addf %488, %489 : vector<5x128xf32>
    %491 = math.tanh %490 : vector<5x128xf32>
    %492 = arith.mulf %487, %491 : vector<5x128xf32>
    %493 = math.tanh %492 : vector<5x128xf32>
    %cst_258 = arith.constant 0.000000e+00 : f32
    %494 = vector.broadcast %cst_258 : f32 to vector<5x128xf32>
    %495 = arith.maximumf %493, %494 : vector<5x128xf32>
    %496 = vector.extract_strided_slice %495 {offsets = [0, 0], sizes = [1, 128], strides = [1, 1]} : vector<5x128xf32> to vector<1x128xf32>
    %c0_259 = arith.constant 0 : index
    %c0_260 = arith.constant 0 : index
    %c0_261 = arith.constant 0 : index
    %497 = vector.load %arg4[%c0_259, %c0_260, %c0_261] : memref<5x128x128xf32, #tpu.memory_space<vmem>>, vector<1x128x128xf32>
    %498 = vector.shape_cast %497 : vector<1x128x128xf32> to vector<128x128xf32>
    %cst_262 = arith.constant dense<0.000000e+00> : vector<1x128xf32>
    %499 = tpu.matmul %496, %498, %cst_262 {dimension_numbers = #tpu.dot_dimension_numbers<[1], [0], [0], [1], [0, 0, 1, 1], [], []>} : vector<1x128xf32>, vector<128x128xf32>, vector<1x128xf32> -> vector<1x128xf32>
    %500 = arith.addf %8, %499 : vector<1x128xf32>
    %501 = vector.extract_strided_slice %495 {offsets = [1, 0], sizes = [1, 128], strides = [1, 1]} : vector<5x128xf32> to vector<1x128xf32>
    %c1_263 = arith.constant 1 : index
    %c0_264 = arith.constant 0 : index
    %c0_265 = arith.constant 0 : index
    %502 = vector.load %arg4[%c1_263, %c0_264, %c0_265] : memref<5x128x128xf32, #tpu.memory_space<vmem>>, vector<1x128x128xf32>
    %503 = vector.shape_cast %502 : vector<1x128x128xf32> to vector<128x128xf32>
    %cst_266 = arith.constant dense<0.000000e+00> : vector<1x128xf32>
    %504 = tpu.matmul %501, %503, %cst_266 {dimension_numbers = #tpu.dot_dimension_numbers<[1], [0], [0], [1], [0, 0, 1, 1], [], []>} : vector<1x128xf32>, vector<128x128xf32>, vector<1x128xf32> -> vector<1x128xf32>
    %505 = arith.addf %500, %504 : vector<1x128xf32>
    %506 = vector.extract_strided_slice %495 {offsets = [2, 0], sizes = [1, 128], strides = [1, 1]} : vector<5x128xf32> to vector<1x128xf32>
    %c2_267 = arith.constant 2 : index
    %c0_268 = arith.constant 0 : index
    %c0_269 = arith.constant 0 : index
    %507 = vector.load %arg4[%c2_267, %c0_268, %c0_269] : memref<5x128x128xf32, #tpu.memory_space<vmem>>, vector<1x128x128xf32>
    %508 = vector.shape_cast %507 : vector<1x128x128xf32> to vector<128x128xf32>
    %cst_270 = arith.constant dense<0.000000e+00> : vector<1x128xf32>
    %509 = tpu.matmul %506, %508, %cst_270 {dimension_numbers = #tpu.dot_dimension_numbers<[1], [0], [0], [1], [0, 0, 1, 1], [], []>} : vector<1x128xf32>, vector<128x128xf32>, vector<1x128xf32> -> vector<1x128xf32>
    %510 = arith.addf %505, %509 : vector<1x128xf32>
    %511 = vector.extract_strided_slice %495 {offsets = [3, 0], sizes = [1, 128], strides = [1, 1]} : vector<5x128xf32> to vector<1x128xf32>
    %c3_271 = arith.constant 3 : index
    %c0_272 = arith.constant 0 : index
    %c0_273 = arith.constant 0 : index
    %512 = vector.load %arg4[%c3_271, %c0_272, %c0_273] : memref<5x128x128xf32, #tpu.memory_space<vmem>>, vector<1x128x128xf32>
    %513 = vector.shape_cast %512 : vector<1x128x128xf32> to vector<128x128xf32>
    %cst_274 = arith.constant dense<0.000000e+00> : vector<1x128xf32>
    %514 = tpu.matmul %511, %513, %cst_274 {dimension_numbers = #tpu.dot_dimension_numbers<[1], [0], [0], [1], [0, 0, 1, 1], [], []>} : vector<1x128xf32>, vector<128x128xf32>, vector<1x128xf32> -> vector<1x128xf32>
    %515 = arith.addf %510, %514 : vector<1x128xf32>
    %516 = vector.extract_strided_slice %495 {offsets = [4, 0], sizes = [1, 128], strides = [1, 1]} : vector<5x128xf32> to vector<1x128xf32>
    %c4_275 = arith.constant 4 : index
    %c0_276 = arith.constant 0 : index
    %c0_277 = arith.constant 0 : index
    %517 = vector.load %arg4[%c4_275, %c0_276, %c0_277] : memref<5x128x128xf32, #tpu.memory_space<vmem>>, vector<1x128x128xf32>
    %518 = vector.shape_cast %517 : vector<1x128x128xf32> to vector<128x128xf32>
    %cst_278 = arith.constant dense<0.000000e+00> : vector<1x128xf32>
    %519 = tpu.matmul %516, %518, %cst_278 {dimension_numbers = #tpu.dot_dimension_numbers<[1], [0], [0], [1], [0, 0, 1, 1], [], []>} : vector<1x128xf32>, vector<128x128xf32>, vector<1x128xf32> -> vector<1x128xf32>
    %520 = arith.addf %515, %519 : vector<1x128xf32>
    %521 = vector.extract_strided_slice %520 {offsets = [0, 0], sizes = [1, 60], strides = [1, 1]} : vector<1x128xf32> to vector<1x60xf32>
    %c7 = arith.constant 7 : index
    %c0_279 = arith.constant 0 : index
    %522 = vector.load %arg6[%c7, %c0_279] : memref<8x60xf32, #tpu.memory_space<vmem>>, vector<1x60xf32>
    tpu.vector_store %arg6[%c7, %c0_279], %521 {strides = array<i32>} : memref<8x60xf32, #tpu.memory_space<vmem>>, vector<1x60xf32>,
    return
  }
}

</mosaic_0001>

<bundles_post_ra>
// kernel: stgcn_forward.1
= control target key start
LH: loop header
LB: loop body
LE: loop exit
PB: predicated region body
PF: predicated region fallthrough
CT: control target
= control target key end

     0   :  { %11 = vsyncpa [#allocation4], 0  ;;  %s12742_s0 = inlined_call_operand.vmem [shape: f32[40,60], index: 0, kind: input, shape index: {}]   ;;  %s12743_s1 = inlined_call_operand.vmem [shape: f32[60,512], index: 1, kind: input, shape index: {}]   ;;  %s12744_s2 = inlined_call_operand.hbm [shape: f32[128,512], index: 2, kind: input, shape index: {}]   ;;  %s12745_s3 = inlined_call_operand.vmem [shape: f32[1,512], index: 3, kind: input, shape index: {}]   ;;  %s12746_s4 = inlined_call_operand.vmem [shape: f32[5,128,128], index: 4, kind: input, shape index: {}]   ;;  %s12747_s5 = inlined_call_operand.vmem [shape: f32[1,128], index: 5, kind: input, shape index: {}]   ;;  %s12748_s6 = inlined_call_operand.hbm [shape: f32[8,60], index: 6, kind: output, shape index: {}]  }
   0x1   :  { %12 = vsyncpa [#allocation5], 0  ;;  %s10003_s21 = smov [#allocation3]   ;;  %s9955_s25 = scalar_lea.hbm %s12744_s2, 8192 }
   0x2   :  { %s22_s22 = sshll.u32 %s10003_s21, 4  ;;  %p9956_p0 = scmp.ne.s32.totalorder %s12744_s2, %s9955_s25  ;;  %s23_s22 = int_to_ptr.vmem [resolvable:$true] %s22_s22 }
   0x3   :  { %p9959_p1 = scmp.lt.u32.totalorder %s9955_s25, %s12744_s2 }
   0x5   :  { %p9961_p2 = pnand %p9959_p1, %p9956_p0 }
   0x7   :  { %9964 = shalt.err (!%p9961_p2)
}
   0x8   :  { %s9965_s30 = scalar_lea.vmem %s23_s22, 8192  ;;  %p9970_p4 = scmp.lt.s32.totalorder %s23_s22, %s23_s22 }
   0x9   :  { %p9966_p3 = scmp.ne.s32.totalorder %s23_s22, %s9965_s30  ;;  %p9971_p5 = scmp.lt.s32.totalorder %s9965_s30, %s9965_s30 }
   0xb   :  { %p9972_p6 = por %p9971_p5, %p9970_p4 }
   0xd   :  { %p9973_p7 = pnand %p9972_p6, %p9966_p3 }
   0xf   :  { %9976 = shalt.err (!%p9973_p7)
}
  0x10   :  { %s10004_s7 = smov 512   ;;  %s10005_s8 = smov 32  }
  0x11   :  { %28 = dma.hbm_to_vmem [thread:$0]  %s12744_s2, 8192, %s23_s22, [#allocation4], %s10004_s7, %s10004_s7, %s10005_s8  }
  0x12   :  { %9999 = dma.done.wait [#allocation4], 8192  }
  0x13   :  { %10000 = vsyncadd [#allocation4], 4294959104  ;;  %v12749_v0 = vmov 0.0   ;;  %v44_v1 = vld [vmem:[%s12743_s1 + $0x8] sm:$0xff]  ;;  %v43_v3 = vld [vmem:[%s12743_s1] sm:$0xff]  ;;  %vm113_vm0 = vcmask 1043456  }
  0x14   :  { %190 = vmatprep.mubr.f32.mxu0 %v12749_v0  ;;  %285 = vmatprep.mubr.f32.mxu1 %v12749_v0  ;;  %v48_v2 = vld [vmem:[%s12743_s1 + $0x28] sm:$0xff]  ;;  %v47_v5 = vld [vmem:[%s12743_s1 + $0x20] sm:$0xff]  ;;  %vm10007_vm1 = vmmov 1   ;;  %vm97_vm3 = vcmask 490496   ;;  %v46_v41 = vld [vmem:[%s12743_s1 + $0x18] sm:$0xff]  ;;  %vm10009_vm4 = vmmov 0  }
  0x15   :  { %v8220_v4 = vpack.c.bf16 %v48_v2, %v44_v1  ;;  %v52_v6 = vld [vmem:[%s12743_s1 + $0x48] sm:$0xff]  ;;  %v8222_v8 = vpack.c.bf16 %v47_v5, %v43_v3  ;;  %v51_v10 = vld [vmem:[%s12743_s1 + $0x40] sm:$0xff]  ;;  %vm10109_vm2 = vmpackc.low %vm113_vm0, %vm10007_vm1  ;;  %vm1864_vm5 = vcmask 1044480   ;;  %vm1686_vm6 = vcmask 1042432  }
  0x16   :  { %v56_v7 = vld [vmem:[%s12743_s1 + $0x68] sm:$0xff]  ;;  %v55_v11 = vld [vmem:[%s12743_s1 + $0x60] sm:$0xff]  ;;  %v50_v45 = vld [vmem:[%s12743_s1 + $0x38] sm:$0xff]  ;;  %vm1019_vm7 = vcmask 483328   ;;  %vm2995_vm8 = vcmask 1040384   ;;  %vm4963_vm9 = vcmask 1041408  }
  0x17   :  { %v8224_v9 = vpack.c.bf16 %v56_v7, %v52_v6  ;;  %v60_v12 = vld [vmem:[%s12743_s1 + $0x88] sm:$0xff]  ;;  %8221 = vmatprep.subr.bf16.mxu0 %v8220_v4  ;;  %v8226_v14 = vpack.c.bf16 %v55_v11, %v51_v10  ;;  %v59_v16 = vld [vmem:[%s12743_s1 + $0x80] sm:$0xff]  ;;  %v8238_v48 = vpack.c.bf16 %v50_v45, %v46_v41  ;;  %v45_v49 = vld [vmem:[%s12743_s1 + $0x10] sm:$0xff] }
  0x18   :  { %v64_v13 = vld [vmem:[%s12743_s1 + $0xa8] sm:$0xff]  ;;  %8223 = vmatpush1.bf16.msra.mxu0 %v8222_v8  ;;  %v63_v17 = vld [vmem:[%s12743_s1 + $0xa0] sm:$0xff]  ;;  %v49_v50 = vld [vmem:[%s12743_s1 + $0x30] sm:$0xff] }
  0x19   :  { %8225 = vmatprep.subr.bf16.mxu0 %v8224_v9  ;;  %v8228_v15 = vpack.c.bf16 %v64_v13, %v60_v12  ;;  %v68_v18 = vld [vmem:[%s12743_s1 + $0xc8] sm:$0xff]  ;;  %v8230_v20 = vpack.c.bf16 %v63_v17, %v59_v16  ;;  %v67_v22 = vld [vmem:[%s12743_s1 + $0xc0] sm:$0xff]  ;;  %v8240_v52 = vpack.c.bf16 %v49_v50, %v45_v49  ;;  %v54_v53 = vld [vmem:[%s12743_s1 + $0x58] sm:$0xff]  ;;  %8239 = vmatprep.subr.bf16.mxu1 %v8238_v48 }
  0x1a   :  { %v72_v19 = vld [vmem:[%s12743_s1 + $0xe8] sm:$0xf]  ;;  %v71_v23 = vld [vmem:[%s12743_s1 + $0xe0] sm:$0xf]  ;;  %v58_v54 = vld [vmem:[%s12743_s1 + $0x78] sm:$0xff] }
  0x1b   :  { %v8232_v21 = vpack.c.bf16 %v72_v19, %v68_v18  ;;  %v337_v25 = vld [vmem:[#allocation3 + $0x8] sm:$0xff]  ;;  %v8235_v27 = vpack.c.bf16 %v71_v23, %v67_v22  ;;  %v336_v29 = vld [vmem:[#allocation3] sm:$0xff]  ;;  %v8242_v56 = vpack.c.bf16 %v58_v54, %v54_v53  ;;  %v53_v57 = vld [vmem:[%s12743_s1 + $0x50] sm:$0xff]  ;;  %8241 = vmatpush1.bf16.msra.mxu1 %v8240_v52 }
  0x1c   :  { %8227 = vmatpush1.bf16.msra.mxu0 %v8226_v14  ;;  %v341_v26 = vld [vmem:[#allocation3 + $0x28] sm:$0xff]  ;;  %v340_v30 = vld [vmem:[#allocation3 + $0x20] sm:$0xff]  ;;  %v10173_v60 = vld [vmem:[%s12742_s0 + $0x10] sm:$0xff] }
  0x1d   :  { %8229 = vmatprep.subr.bf16.mxu0 %v8228_v15  ;;  %v10115_v28 = vpack.c.bf16 %v341_v26, %v337_v25  ;;  %v345_v31 = vld [vmem:[#allocation3 + $0x48] sm:$0xff]  ;;  %v10122_v33 = vld [vmem:[%s12742_s0] sm:$0xff]  ;;  %v10124_v34 = vpack.c.bf16 %v340_v30, %v336_v29  ;;  %v57_v61 = vld [vmem:[%s12743_s1 + $0x70] sm:$0xff]  ;;  %8243 = vmatprep.subr.bf16.mxu1 %v8242_v56 }
  0x1e   :  { %v349_v32 = vld [vmem:[#allocation3 + $0x68] sm:$0xff]  ;;  %v344_v36 = vld [vmem:[#allocation3 + $0x40] sm:$0xff]  ;;  %v8244_v1 = vpack.c.bf16 %v57_v61, %v53_v57  ;;  %v62_v2 = vld [vmem:[%s12743_s1 + $0x98] sm:$0xff] }
  0x1f   :  { %12843 = vst [vmem:[#allocation9_spill] sm:$0xff] %v10115_v28  ;;  %12844 = vst [vmem:[#allocation10_spill] sm:$0xff] %v10124_v34  ;;  %v10127_v35 = vpack.c.bf16 %v349_v32, %v345_v31  ;;  %v348_v37 = vld [vmem:[#allocation3 + $0x60] sm:$0xff]  ;;  %v353_v38 = vld [vmem:[#allocation3 + $0x88] sm:$0xff] }
  0x20   :  { %8231 = vmatpush1.bf16.msra.mxu0 %v8230_v20  ;;  %v357_v39 = vld [vmem:[#allocation3 + $0xa8] sm:$0xff]  ;;  %v352_v40 = vld [vmem:[#allocation3 + $0x80] sm:$0xff]  ;;  %v10135_v42 = vpack.c.bf16 %v348_v37, %v344_v36  ;;  %v66_v3 = vld [vmem:[%s12743_s1 + $0xb8] sm:$0xff]  ;;  %8245 = vmatpush1.bf16.msra.mxu1 %v8244_v1 }
  0x21   :  { %8234 = vmatprep.subr.msk.bf16.mxu0 %vm10109_vm2, %v8232_v21  ;;  %12845 = vst [vmem:[#allocation11_spill] sm:$0xff] %v10127_v35  ;;  %v356_v43 = vld [vmem:[#allocation3 + $0xa0] sm:$0xff]  ;;  %v10141_v44 = vld [vmem:[%s12742_s0 + $0x8] sm:$0xff]  ;;  %v10147_v46 = vpack.c.bf16 %v357_v39, %v353_v38  ;;  %v8246_v5 = vpack.c.bf16 %v66_v3, %v62_v2  ;;  %v61_v6 = vld [vmem:[%s12743_s1 + $0x90] sm:$0xff] }
  0x22   :  { %12846 = vst [vmem:[#allocation12_spill] sm:$0xff] %v10135_v42  ;;  %v361_v47 = vld [vmem:[#allocation3 + $0xc8] sm:$0xff]  ;;  %v360_v55 = vld [vmem:[#allocation3 + $0xc0] sm:$0xff]  ;;  %v10167_v58 = vpack.c.bf16 %v356_v43, %v352_v40  ;;  %v65_v7 = vld [vmem:[%s12743_s1 + $0xb0] sm:$0xff] }
  0x23   :  { %12847 = vst [vmem:[#allocation13_spill] sm:$0xff] %v10147_v46  ;;  %v365_v51 = vld [vmem:[#allocation3 + $0xe8] sm:$0xff]  ;;  %v364_v59 = vld [vmem:[#allocation3 + $0xe0] sm:$0xff]  ;;  %v70_v8 = vld [vmem:[%s12743_s1 + $0xd8] sm:$0xff]  ;;  %v8248_v16 = vpack.c.bf16 %v65_v7, %v61_v6  ;;  %8247 = vmatprep.subr.bf16.mxu1 %v8246_v5 }
  0x24   :  { %8237 = vmatpush1.bf16.msk.msra.mxu0 %vm10109_vm2, %v8235_v27  ;;  %12848 = vst [vmem:[#allocation14_spill] sm:$0xff] %v10167_v58  ;;  %v10179_v62 = vpack.c.bf16 %v365_v51, %v361_v47  ;;  %v369_v63 = vld [vmem:[#allocation3 + $0x108] sm:$0xff]  ;;  %v10199_v9 = vpack.c.bf16 %v364_v59, %v360_v55  ;;  %v10205_v10 = vld [vmem:[%s12742_s0 + $0x18] sm:$0xff]  ;;  %v368_v13 = vld [vmem:[#allocation3 + $0x100] sm:$0xff] }
  0x25   :  { %8257 = vmatprep.subr.bf16.mxu0 %v10115_v28  ;;  %v373_v4 = vld [vmem:[#allocation3 + $0x128] sm:$0xff]  ;;  %v74_v11 = vld [vmem:[%s12743_s1 + $0xf8] sm:$0xf]  ;;  %v372_v14 = vld [vmem:[#allocation3 + $0x120] sm:$0xff]  ;;  %8249 = vmatpush1.bf16.msra.mxu1 %v8248_v16 }
  0x26   :  { %12849 = vst [vmem:[#allocation15_spill] sm:$0xff] %v10179_v62  ;;  %12850 = vst [vmem:[#allocation16_spill] sm:$0xff] %v10199_v9  ;;  %v10211_v12 = vpack.c.bf16 %v373_v4, %v369_v63  ;;  %v377_v15 = vld [vmem:[#allocation3 + $0x148] sm:$0xff]  ;;  %v8250_v18 = vpack.c.bf16 %v74_v11, %v70_v8  ;;  %v69_v19 = vld [vmem:[%s12743_s1 + $0xd0] sm:$0xff]  ;;  %v10222_v21 = vpack.c.bf16 %v372_v14, %v368_v13 }
  0x27   :  { %5616 = vmatmul.mubr.msk.f32.vlgmr.msra.gmra.mrb[0].mxu0 %vm97_vm3, %v10122_v33  ;;  %v381_v17 = vld [vmem:[#allocation3 + $0x168] sm:$0xff]  ;;  %v73_v20 = vld [vmem:[%s12743_s1 + $0xf0] sm:$0xf]  ;;  %v10228_v22 = vld [vmem:[%s12742_s0 + $0x20] sm:$0xff] }
  0x28   :  { %8259 = vmatpush1.bf16.msra.mxu0 %v10124_v34  ;;  %196 = vmatprep.mubr.f32.mxu0 %v12749_v0  ;;  %12851 = vst [vmem:[#allocation17_spill] sm:$0xff] %v10211_v12  ;;  %12852 = vst [vmem:[#allocation18_spill] sm:$0xff] %v10222_v21  ;;  %v10231_v23 = vpack.c.bf16 %v381_v17, %v377_v15  ;;  %v376_v25 = vld [vmem:[#allocation3 + $0x140] sm:$0xff]  ;;  %v8253_v27 = vpack.c.bf16 %v73_v20, %v69_v19  ;;  %v385_v29 = vld [vmem:[#allocation3 + $0x188] sm:$0xff] }
  0x29   :  { %8261 = vmatprep.subr.bf16.mxu0 %v10127_v35  ;;  %v380_v26 = vld [vmem:[#allocation3 + $0x160] sm:$0xff]  ;;  %v389_v30 = vld [vmem:[#allocation3 + $0x1a8] sm:$0xff]  ;;  %8252 = vmatprep.subr.msk.bf16.mxu1 %vm10109_vm2, %v8250_v18  ;;  %v339_v24 = vld [vmem:[#allocation3 + $0x18] sm:$0xff] }
  0x2a   :  { %12853 = vst [vmem:[#allocation19_spill] sm:$0xff] %v10231_v23  ;;  %v10238_v31 = vpack.c.bf16 %v380_v26, %v376_v25  ;;  %v10242_v32 = vpack.c.bf16 %v389_v30, %v385_v29  ;;  %v384_v36 = vld [vmem:[#allocation3 + $0x180] sm:$0xff]  ;;  %8255 = vmatpush1.bf16.msk.msra.mxu1 %vm10109_vm2, %v8253_v27  ;;  %v393_v38 = vld [vmem:[#allocation3 + $0x1c8] sm:$0xff]  ;;  %v343_v47 = vld [vmem:[#allocation3 + $0x38] sm:$0xff] }
  0x2b   :  { %5617 = vmatmul.mubr.msk.f32.gmra.mrb[2].mxu0 %vm97_vm3, %v10141_v44  ;;  %v388_v37 = vld [vmem:[#allocation3 + $0x1a0] sm:$0xff]  ;;  %v397_v39 = vld [vmem:[#allocation3 + $0x1e8] sm:$0xff]  ;;  %8441 = vmatprep.subr.bf16.mxu1 %v10115_v28  ;;  %v338_v49 = vld [vmem:[#allocation3 + $0x10] sm:$0xff] }
  0x2c   :  { %8263 = vmatpush1.bf16.msra.mxu0 %v10135_v42  ;;  %202 = vmatprep.mubr.f32.mxu0 %v12749_v0  ;;  %12854 = vst [vmem:[#allocation20_spill] sm:$0xff] %v10238_v31  ;;  %12855 = vst [vmem:[#allocation21_spill] sm:$0xff] %v10242_v32  ;;  %v10248_v40 = vpack.c.bf16 %v388_v37, %v384_v36  ;;  %v10253_v41 = vpack.c.bf16 %v397_v39, %v393_v38  ;;  %v392_v43 = vld [vmem:[#allocation3 + $0x1c0] sm:$0xff]  ;;  %v342_v50 = vld [vmem:[#allocation3 + $0x30] sm:$0xff] }
  0x2d   :  { %8265 = vmatprep.subr.bf16.mxu0 %v10147_v46  ;;  %5623 = vmatmul.mubr.msk.f32.vlgmr.msra.gmra.mrb[0].mxu1 %vm97_vm3, %v10122_v33  ;;  %v396_v45 = vld [vmem:[#allocation3 + $0x1e0] sm:$0xff]  ;;  %v10264_v33 = vpack.c.bf16 %v343_v47, %v339_v24  ;;  %v347_v51 = vld [vmem:[#allocation3 + $0x58] sm:$0xff]  ;;  %v10270_v53 = vpack.c.bf16 %v342_v50, %v338_v49  ;;  %v346_v54 = vld [vmem:[#allocation3 + $0x50] sm:$0xff] }
  0x2e   :  { %12856 = vst [vmem:[#allocation22_spill] sm:$0xff] %v10248_v40  ;;  %12857 = vst [vmem:[#allocation23_spill] sm:$0xff] %v10253_v41  ;;  %8443 = vmatpush1.bf16.msra.mxu1 %v10124_v34  ;;  %291 = vmatprep.mubr.f32.mxu1 %v12749_v0  ;;  %v10259_v48 = vpack.c.bf16 %v396_v45, %v392_v43  ;;  %v351_v52 = vld [vmem:[#allocation3 + $0x78] sm:$0xff]  ;;  %v350_v55 = vld [vmem:[#allocation3 + $0x70] sm:$0xff] }
  0x2f   :  { %5618 = vmatmul.mubr.msk.f32.gmra.mrb[4].mxu0 %vm97_vm3, %v10173_v60  ;;  %8445 = vmatprep.subr.bf16.mxu1 %v10127_v35  ;;  %12859 = vst [vmem:[#allocation25_spill] sm:$0xff] %v10264_v33  ;;  %v355_v56 = vld [vmem:[#allocation3 + $0x98] sm:$0xff]  ;;  %v10282_v59 = vpack.c.bf16 %v350_v55, %v346_v54  ;;  %v354_v61 = vld [vmem:[#allocation3 + $0x90] sm:$0xff]  ;;  %v571_v47 = vld [vmem:[%s12746_s4] sm:$0xff] }
  0x30   :  { %8267 = vmatpush1.bf16.msra.mxu0 %v10167_v58  ;;  %208 = vmatprep.mubr.f32.mxu0 %v12749_v0  ;;  %12858 = vst [vmem:[#allocation24_spill] sm:$0xff] %v10259_v48  ;;  %v359_v57 = vld [vmem:[#allocation3 + $0xb8] sm:$0xff]  ;;  %v358_v63 = vld [vmem:[#allocation3 + $0xb0] sm:$0xff]  ;;  %v572_v49 = vld [vmem:[%s12746_s4 + $0x8] sm:$0xff] }
  0x31   :  { %8269 = vmatprep.subr.bf16.mxu0 %v10179_v62  ;;  %5624 = vmatmul.mubr.msk.f32.gmra.mrb[2].mxu1 %vm97_vm3, %v10141_v44  ;;  %v10275_v44 = vpack.c.bf16 %v351_v52, %v347_v51  ;;  %v363_v1 = vld [vmem:[#allocation3 + $0xd8] sm:$0xff]  ;;  %v10294_v3 = vpack.c.bf16 %v358_v63, %v354_v61  ;;  %v362_v5 = vld [vmem:[#allocation3 + $0xd0] sm:$0xff]  ;;  %v10346_v50 = vpack.c.bf16 %v572_v49, %v571_v47  ;;  %v12759_v51 = vmov 0.0|0.0  }
  0x32   :  { %8447 = vmatpush1.bf16.msra.mxu1 %v10135_v42  ;;  %297 = vmatprep.mubr.f32.mxu1 %v12749_v0  ;;  %v367_v2 = vld [vmem:[#allocation3 + $0xf8] sm:$0xff]  ;;  %v366_v6 = vld [vmem:[#allocation3 + $0xf0] sm:$0xff] }
  0x33   :  { %5619 = vmatmul.mubr.msk.f32.gmra.mrb[6].mxu0 %vm97_vm3, %v10205_v10  ;;  %8449 = vmatprep.subr.bf16.mxu1 %v10147_v46  ;;  %v10297_v4 = vpack.c.bf16 %v367_v2, %v363_v1  ;;  %v371_v7 = vld [vmem:[#allocation3 + $0x118] sm:$0xff]  ;;  %v370_v13 = vld [vmem:[#allocation3 + $0x110] sm:$0xff] }
  0x34   :  { %8271 = vmatpush1.bf16.msra.mxu0 %v10199_v9  ;;  %214 = vmatprep.mubr.f32.mxu0 %v12749_v0  ;;  %v375_v8 = vld [vmem:[#allocation3 + $0x138] sm:$0xff]  ;;  %v374_v14 = vld [vmem:[#allocation3 + $0x130] sm:$0xff] }
  0x35   :  { %8273 = vmatprep.subr.bf16.mxu0 %v10211_v12  ;;  %5625 = vmatmul.mubr.msk.f32.gmra.mrb[4].mxu1 %vm97_vm3, %v10173_v60  ;;  %v10286_v60 = vpack.c.bf16 %v359_v57, %v355_v56  ;;  %v10308_v11 = vpack.c.bf16 %v375_v8, %v371_v7  ;;  %v379_v15 = vld [vmem:[#allocation3 + $0x158] sm:$0xff]  ;;  %v10313_v17 = vpack.c.bf16 %v374_v14, %v370_v13  ;;  %v378_v19 = vld [vmem:[#allocation3 + $0x150] sm:$0xff]  ;;  %v575_v56 = vld [vmem:[%s12746_s4 + $0x20] sm:$0xff] }
  0x36   :  { %8451 = vmatpush1.bf16.msra.mxu1 %v10167_v58  ;;  %303 = vmatprep.mubr.f32.mxu1 %v12749_v0  ;;  %v383_v16 = vld [vmem:[#allocation3 + $0x178] sm:$0xff]  ;;  %v382_v20 = vld [vmem:[#allocation3 + $0x170] sm:$0xff]  ;;  %v576_v57 = vld [vmem:[%s12746_s4 + $0x28] sm:$0xff] }
  0x37   :  { %5620 = vmatmul.mubr.msk.f32.gmra.mrb[8].mxu0 %vm97_vm3, %v10228_v22  ;;  %8453 = vmatprep.subr.bf16.mxu1 %v10179_v62  ;;  %v10316_v18 = vpack.c.bf16 %v383_v16, %v379_v15  ;;  %v391_v25 = vld [vmem:[#allocation3 + $0x1b8] sm:$0xff]  ;;  %v10321_v26 = vpack.c.bf16 %v382_v20, %v378_v19  ;;  %v386_v29 = vld [vmem:[#allocation3 + $0x190] sm:$0xff]  ;;  %v10367_v61 = vpack.c.bf16 %v576_v57, %v575_v56  ;;  %v583_v15 = vld [vmem:[%s12746_s4 + $0x60] sm:$0xff] }
  0x38   :  { %8275 = vmatpush1.bf16.msra.mxu0 %v10222_v21  ;;  %469 = vmatprep.mubr.f32.mxu0 %v12749_v0  ;;  %v390_v30 = vld [vmem:[#allocation3 + $0x1b0] sm:$0xff]  ;;  %v395_v36 = vld [vmem:[#allocation3 + $0x1d8] sm:$0xff]  ;;  %v584_v16 = vld [vmem:[%s12746_s4 + $0x68] sm:$0xff] }
  0x39   :  { %8277 = vmatprep.subr.bf16.mxu0 %v10231_v23  ;;  %5626 = vmatmul.mubr.msk.f32.gmra.mrb[6].mxu1 %vm97_vm3, %v10205_v10  ;;  %v10305_v10 = vpack.c.bf16 %v366_v6, %v362_v5  ;;  %v399_v37 = vld [vmem:[#allocation3 + $0x1f8] sm:$0xff]  ;;  %v10329_v38 = vpack.c.bf16 %v390_v30, %v386_v29  ;;  %v394_v43 = vld [vmem:[#allocation3 + $0x1d0] sm:$0xff]  ;;  %v579_v5 = vld [vmem:[%s12746_s4 + $0x40] sm:$0xff]  ;;  %v10406_v19 = vpack.c.bf16 %v584_v16, %v583_v15  ;;  %v77_v29 = vlaneseq }
  0x3a   :  { %8455 = vmatpush1.bf16.msra.mxu1 %v10199_v9  ;;  %309 = vmatprep.mubr.f32.mxu1 %v12749_v0  ;;  %v10332_v39 = vpack.c.bf16 %v399_v37, %v395_v36  ;;  %v398_v45 = vld [vmem:[#allocation3 + $0x1f0] sm:$0xff]  ;;  %v574_v54 = vld [vmem:[%s12746_s4 + $0x18] sm:$0xff]  ;;  %v580_v6 = vld [vmem:[%s12746_s4 + $0x48] sm:$0xff] }
  0x3b   :  { %8457 = vmatprep.subr.bf16.mxu1 %v10211_v12  ;;  %v10335_v24 = vpack.c.bf16 %v398_v45, %v394_v43  ;;  %v573_v52 = vld [vmem:[%s12746_s4 + $0x10] sm:$0xff]  ;;  %v578_v1 = vld [vmem:[%s12746_s4 + $0x38] sm:$0xff]  ;;  %v10387_v7 = vpack.c.bf16 %v580_v6, %v579_v5  ;;  %v78_v30 = vshrl.u32 %v77_v29, 7  ;;  %v75_v37 = vld [vmem:[%s12745_s3] sm:$0xf] }
  0x3c   :  { %8279 = vmatpush1.bf16.msra.mxu0 %v10238_v31  ;;  %v10357_v55 = vpack.c.bf16 %v574_v54, %v573_v52  ;;  %v577_v63 = vld [vmem:[%s12746_s4 + $0x30] sm:$0xff]  ;;  %v582_v13 = vld [vmem:[%s12746_s4 + $0x58] sm:$0xff] }
  0x3d   :  { %8281 = vmatprep.subr.bf16.mxu0 %v10242_v32  ;;  %5627 = vmatmul.mubr.msk.f32.gmra.mrb[8].mxu1 %vm97_vm3, %v10228_v22  ;;  %v387_v22 = vld [vmem:[#allocation3 + $0x198] sm:$0xff]  ;;  %v10377_v2 = vpack.c.bf16 %v578_v1, %v577_v63  ;;  %v581_v8 = vld [vmem:[%s12746_s4 + $0x50] sm:$0xff]  ;;  %v79_v36 = vsub.s32 0, %v78_v30  ;;  %v83_v43 = vsub.s32 1, %v78_v30 }
  0x3e   :  { %8459 = vmatpush1.bf16.msra.mxu1 %v10222_v21  ;;  %1093 = vmatprep.mubr.f32.mxu1 %v12749_v0  ;;  %v10324_v27 = vpack.c.bf16 %v391_v25, %v387_v22  ;;  %v10397_v14 = vpack.c.bf16 %v582_v13, %v581_v8  ;;  %v585_v20 = vld [vmem:[%s12746_s4 + $0x70] sm:$0xff]  ;;  %v586_v22 = vld [vmem:[%s12746_s4 + $0x78] sm:$0xff] }
  0x3f   :  { %8461 = vmatprep.subr.bf16.mxu1 %v10231_v23  ;;  %v10416_v25 = vpack.c.bf16 %v586_v22, %v585_v20  ;;  %v80_v45 = vrot.slane %v75_v37, %v79_v36  ;;  %v84_v47 = vrot.slane %v75_v37, %v83_v43  ;;  %v87_v36 = vsub.s32 2, %v78_v30 }
  0x40   :  { %8283 = vmatpush1.bf16.msra.mxu0 %v10248_v40  ;;  %v91_v43 = vsub.s32 3, %v78_v30 }
  0x41   :  { %8285 = vmatprep.subr.bf16.mxu0 %v10253_v41 }
  0x42   :  { %8463 = vmatpush1.bf16.msra.mxu1 %v10238_v31 }
  0x43   :  { %8465 = vmatprep.subr.bf16.mxu1 %v10242_v32 }
  0x44   :  { %8287 = vmatpush1.bf16.msra.mxu0 %v10259_v48 }
  0x45   :  { %8289 = vmatprep.subr.bf16.mxu0 %v10264_v33 }
  0x46   :  { %8467 = vmatpush1.bf16.msra.mxu1 %v10248_v40 }
  0x47   :  { %470 = vmatmul.mubr.f32.vlgmr.msra.gmra.mrb[10].mxu0 %v12749_v0  ;;  %8469 = vmatprep.subr.bf16.mxu1 %v10253_v41 }
  0x48   :  { %8291 = vmatpush1.bf16.msra.mxu0 %v10270_v53  ;;  %540 = vmatprep.mubr.f32.mxu0 %v12749_v0 }
  0x49   :  { %8293 = vmatprep.subr.bf16.mxu0 %v10275_v44 }
  0x4a   :  { %8471 = vmatpush1.bf16.msra.mxu1 %v10259_v48 }
  0x4b   :  { %8473 = vmatprep.subr.bf16.mxu1 %v10264_v33 }
  0x4c   :  { %8295 = vmatpush1.bf16.msra.mxu0 %v10282_v59 }
  0x4d   :  { %8297 = vmatprep.subr.bf16.mxu0 %v10286_v60 }
  0x50   :  { %8299 = vmatpush1.bf16.msra.mxu0 %v10294_v3 }
  0x51   :  { %8301 = vmatprep.subr.bf16.mxu0 %v10297_v4 }
  0x54   :  { %8303 = vmatpush1.bf16.msra.mxu0 %v10305_v10 }
  0x55   :  { %8305 = vmatprep.subr.bf16.mxu0 %v10308_v11 }
  0x58   :  { %8307 = vmatpush1.bf16.msra.mxu0 %v10313_v17 }
  0x59   :  { %8309 = vmatprep.subr.bf16.mxu0 %v10316_v18 }
  0x5c   :  { %8311 = vmatpush1.bf16.msra.mxu0 %v10321_v26 }
  0x5d   :  { %8313 = vmatprep.subr.bf16.mxu0 %v10324_v27 }
  0x60   :  { %8315 = vmatpush1.bf16.msra.mxu0 %v10329_v38 }
  0x61   :  { %8317 = vmatprep.subr.bf16.mxu0 %v10332_v39 }
  0x64   :  { %8319 = vmatpush1.bf16.msra.mxu0 %v10335_v24 }
  0x65   :  { %8320 = vmatprep.subr.bf16.mxu0 %v12759_v51 }
  0x67   :  { %541 = vmatmul.mubr.f32.vlgmr.msra.gmra.mrb[12].mxu0 %v12749_v0 }
  0x68   :  { %8322 = vmatpush3.bf16.msra.mxu0 %v10346_v50  ;;  %6852 = vmatprep.mubr.msk.f32.mxu0 %vm10009_vm4, %v12749_v0 }
  0x69   :  { %8323 = vmatprep.subr.bf16.mxu0 %v12759_v51 }
  0x6c   :  { %8325 = vmatpush3.bf16.msra.mxu0 %v10357_v55 }
  0x6d   :  { %8326 = vmatprep.subr.bf16.mxu0 %v12759_v51 }
  0x70   :  { %8328 = vmatpush3.bf16.msra.mxu0 %v10367_v61 }
  0x71   :  { %8329 = vmatprep.subr.bf16.mxu0 %v12759_v51 }
  0x74   :  { %8331 = vmatpush3.bf16.msra.mxu0 %v10377_v2 }
  0x75   :  { %8332 = vmatprep.subr.bf16.mxu0 %v12759_v51 }
  0x78   :  { %8334 = vmatpush3.bf16.msra.mxu0 %v10387_v7 }
  0x79   :  { %8335 = vmatprep.subr.bf16.mxu0 %v12759_v51 }
  0x7c   :  { %8337 = vmatpush3.bf16.msra.mxu0 %v10397_v14 }
  0x7d   :  { %8338 = vmatprep.subr.bf16.mxu0 %v12759_v51 }
  0x80   :  { %8340 = vmatpush3.bf16.msra.mxu0 %v10406_v19 }
  0x81   :  { %8341 = vmatprep.subr.bf16.mxu0 %v12759_v51 }
  0x84   :  { %8343 = vmatpush3.bf16.msra.mxu0 %v10416_v25 }
  0x85   :  { %8344 = vmatprep.subr.bf16.mxu0 %v12759_v51 }
  0xfa   :  { %v192_v49 = vpop.f32.mrb[0].mxu0 }
  0xfb   :  { %v193_v52 = vadd.f32 %v192_v49, %v80_v45  ;;  %v194_v54 = vpop.f32.mrb[1].mxu0 }
  0xfc   :  { %v195_v56 = vadd.f32 %v194_v54, %v84_v47 }
  0xfd   :  { %316 = vst [vmem:[#allocation2] sm:$0xff] %v193_v52 }
  0xfe   :  { %317 = vst [vmem:[#allocation2 + $0x8] sm:$0xff] %v195_v56  ;;  %v198_v57 = vpop.f32.mrb[2].mxu0 }
  0xff   :  { %v199_v63 = vadd.f32 %v198_v57, %v80_v45  ;;  %v200_v1 = vpop.f32.mrb[3].mxu0  ;;  %v10426_v57 = vrot.slane %v75_v37, %v87_v36 }
 0x100   :  { %v201_v5 = vadd.f32 %v200_v1, %v84_v47  ;;  %v287_v1 = vpop.f32.mrb[0].mxu1 }
 0x101   :  { %320 = vst [vmem:[#allocation2 + $0x20] sm:$0xff] %v199_v63  ;;  %v10428_v63 = vrot.slane %v75_v37, %v91_v43 }
 0x102   :  { %321 = vst [vmem:[#allocation2 + $0x28] sm:$0xff] %v201_v5  ;;  %v204_v6 = vpop.f32.mrb[4].mxu0  ;;  %v288_v5 = vadd.f32 %v287_v1, %v10426_v57 }
 0x103   :  { %v205_v8 = vadd.f32 %v204_v6, %v80_v45  ;;  %v206_v13 = vpop.f32.mrb[5].mxu0  ;;  %v289_v6 = vpop.f32.mrb[1].mxu1 }
 0x104   :  { %v207_v15 = vadd.f32 %v206_v13, %v84_v47  ;;  %318 = vst [vmem:[#allocation2 + $0x10] sm:$0xff] %v288_v5 }
 0x105   :  { %324 = vst [vmem:[#allocation2 + $0x40] sm:$0xff] %v205_v8  ;;  %v290_v8 = vadd.f32 %v289_v6, %v10428_v63 }
 0x106   :  { %325 = vst [vmem:[#allocation2 + $0x48] sm:$0xff] %v207_v15  ;;  %v210_v16 = vpop.f32.mrb[6].mxu0  ;;  %v402_v15 = vld [vmem:[#allocation2 + $0x8] sm:$0x1f] }
 0x107   :  { %v211_v20 = vadd.f32 %v210_v16, %v80_v45  ;;  %v212_v22 = vpop.f32.mrb[7].mxu0  ;;  %319 = vst [vmem:[#allocation2 + $0x18] sm:$0xff] %v290_v8  ;;  %v401_v16 = vld [vmem:[#allocation2] sm:$0x1f] }
 0x108   :  { %v213_v29 = vadd.f32 %v212_v22, %v84_v47 }
 0x109   :  { %328 = vst [vmem:[#allocation2 + $0x60] sm:$0xff] %v211_v20 }
 0x10a   :  { %329 = vst [vmem:[#allocation2 + $0x68] sm:$0xff] %v213_v29  ;;  %v216_v49 = vpop.f32.mrb[8].mxu0 }
 0x10b   :  { %v217_v52 = vadd.f32 %v216_v49, %v80_v45  ;;  %v218_v54 = vpop.f32.mrb[9].mxu0  ;;  %v403_v37 = vld [vmem:[#allocation2 + $0x10] sm:$0x1f] }
 0x10c   :  { %v219_v56 = vadd.f32 %v218_v54, %v84_v47 }
 0x10d   :  { %332 = vst [vmem:[#allocation2 + $0x80] sm:$0xff] %v217_v52 }
 0x10e   :  { %333 = vst [vmem:[#allocation2 + $0x88] sm:$0xff] %v219_v56  ;;  %v404_v29 = vld [vmem:[#allocation2 + $0x18] sm:$0x1f] }
 0x11a   :  { %v471_v30 = vpop.f32.mrb[10].mxu0 }
 0x11b   :  { %v473_v13 = vpop.f32.mrb[11].mxu0  ;;  %v547_v47 = vadd.f32 %v471_v30, %v401_v16 }
 0x11c   :  { %v548_v45 = vadd.f32 %v473_v13, %v402_v15 }
 0x11d   :  { %v551_v22 = vmul.f32 0.5, %v547_v47 }
 0x11e   :  { %v555_v20 = vmul.f32 0.5, %v548_v45 }
 0x120   :  { %9808 = vtanh.f32 %v555_v20 }
 0x121   :  { %9810 = vtanh.f32 %v551_v22 }
 0x12a   :  { %v9809_v54 = vpop.eup %9808 }
 0x12b   :  { %v9811_v56 = vpop.eup %9810  ;;  %v557_v1 = vmul.f32 0.5, %v9809_v54 }
 0x12c   :  { %v553_v6 = vmul.f32 0.5, %v9811_v56  ;;  %v5630_v56 = vld [vmem:[%s12746_s4 + $0x90] sm:$0xff] }
 0x12d   :  { %v558_v8 = vadd.f32 0.5, %v557_v1  ;;  %v5631_v1 = vld [vmem:[%s12746_s4 + $0x98] sm:$0xff] }
 0x12e   :  { %v554_v13 = vadd.f32 0.5, %v553_v6  ;;  %v10460_v6 = vpack.c.bf16 %v5631_v1, %v5630_v56  ;;  %v5634_v1 = vld [vmem:[%s12746_s4 + $0xb0] sm:$0xff] }
 0x12f   :  { %v564_v15 = vmul.f32 0.0, %v558_v8 }
 0x13a   :  { %v542_v36 = vpop.f32.mrb[12].mxu0 }
 0x13b   :  { %v549_v43 = vadd.f32 %v542_v36, %v403_v37  ;;  %v544_v49 = vpop.f32.mrb[13].mxu0  ;;  %v5628_v36 = vld [vmem:[%s12746_s4 + $0x80] sm:$0xff] }
 0x13c   :  { %v550_v52 = vadd.f32 %v544_v49, %v404_v29 }
 0x13d   :  { %9812 = vtanh.f32 %v549_v43  ;;  %v5629_v43 = vld [vmem:[%s12746_s4 + $0x88] sm:$0xff] }
 0x13e   :  { %v560_v5 = vmul.f32 0.5, %v550_v52  ;;  %v10443_v52 = vpack.c.bf16 %v5629_v43, %v5628_v36 }
 0x140   :  { %9814 = vtanh.f32 %v560_v5  ;;  %v293_v5 = vpop.f32.mrb[2].mxu1 }
 0x141   :  { %v294_v8 = vadd.f32 %v293_v5, %v10426_v57  ;;  %v5635_v5 = vld [vmem:[%s12746_s4 + $0xb8] sm:$0xff] }
 0x143   :  { %322 = vst [vmem:[#allocation2 + $0x30] sm:$0xff] %v294_v8 }
 0x147   :  { %v9813_v30 = vpop.eup %9812 }
 0x148   :  { %v565_v45 = vmul.f32 %v9813_v30, %v554_v13  ;;  %v295_v13 = vpop.f32.mrb[3].mxu1  ;;  %v5632_v30 = vld [vmem:[%s12746_s4 + $0xa0] sm:$0xff] }
 0x14a   :  { %v10432_v16 = vadd.f32 %v565_v45, %v564_v15  ;;  %v9815_v47 = vpop.eup %9814  ;;  %v5633_v15 = vld [vmem:[%s12746_s4 + $0xa8] sm:$0xff]  ;;  %v296_v45 = vadd.f32 %v295_v13, %v10428_v63 }
 0x14b   :  { %v562_v20 = vmul.f32 0.5, %v9815_v47  ;;  %v299_v47 = vpop.f32.mrb[4].mxu1  ;;  %v10478_v36 = vpack.c.bf16 %v5633_v15, %v5632_v30 }
 0x14c   :  { %9816 = vtanh.f32 %v10432_v16  ;;  %323 = vst [vmem:[#allocation2 + $0x38] sm:$0xff] %v296_v45 }
 0x14d   :  { %v563_v22 = vadd.f32 0.5, %v562_v20  ;;  %v300_v20 = vadd.f32 %v299_v47, %v10426_v57  ;;  %v10494_v47 = vpack.c.bf16 %v5635_v5, %v5634_v1  ;;  %v5642_v5 = vld [vmem:[%s12746_s4 + $0xf0] sm:$0xff] }
 0x14f   :  { %326 = vst [vmem:[#allocation2 + $0x50] sm:$0xff] %v300_v20  ;;  %v5636_v20 = vld [vmem:[%s12746_s4 + $0xc0] sm:$0xff] }
 0x156   :  { %v9817_v37 = vpop.eup %9816 }
 0x157   :  { %v568_v29 = vmul.f32 %v9817_v37, %v563_v22  ;;  %v301_v22 = vpop.f32.mrb[5].mxu1 }
 0x158   :  { %v302_v37 = vadd.f32 %v301_v22, %v10428_v63  ;;  %v5638_v22 = vld [vmem:[%s12746_s4 + $0xd0] sm:$0xff] }
 0x159   :  { %9818 = vtanh.f32 %v568_v29  ;;  %v305_v29 = vpop.f32.mrb[6].mxu1 }
 0x15a   :  { %v306_v43 = vadd.f32 %v305_v29, %v10426_v57  ;;  %v307_v56 = vpop.f32.mrb[7].mxu1  ;;  %327 = vst [vmem:[#allocation2 + $0x58] sm:$0xff] %v302_v37  ;;  %v5639_v37 = vld [vmem:[%s12746_s4 + $0xd8] sm:$0xff] }
 0x15b   :  { %v308_v8 = vadd.f32 %v307_v56, %v10428_v63  ;;  %v311_v13 = vpop.f32.mrb[8].mxu1  ;;  %v10518_v29 = vpack.c.bf16 %v5639_v37, %v5638_v22  ;;  %v5641_v56 = vld [vmem:[%s12746_s4 + $0xe8] sm:$0xff]  ;;  %v5647_v22 = vld [vmem:[%s12746_s4 + $0x118] sm:$0xff]  ;;  %v5648_v37 = vld [vmem:[%s12746_s4 + $0x120] sm:$0xff] }
 0x15c   :  { %330 = vst [vmem:[#allocation2 + $0x70] sm:$0xff] %v306_v43  ;;  %v312_v30 = vadd.f32 %v311_v13, %v10426_v57  ;;  %v313_v15 = vpop.f32.mrb[9].mxu1  ;;  %v5637_v57 = vld [vmem:[%s12746_s4 + $0xc8] sm:$0xff]  ;;  %v5640_v43 = vld [vmem:[%s12746_s4 + $0xe0] sm:$0xff] }
 0x15d   :  { %331 = vst [vmem:[#allocation2 + $0x78] sm:$0xff] %v308_v8  ;;  %v314_v45 = vadd.f32 %v313_v15, %v10428_v63  ;;  %v10506_v63 = vpack.c.bf16 %v5637_v57, %v5636_v20  ;;  %v10530_v1 = vpack.c.bf16 %v5641_v56, %v5640_v43  ;;  %v5643_v8 = vld [vmem:[%s12746_s4 + $0xf8] sm:$0xff]  ;;  %v5645_v15 = vld [vmem:[%s12746_s4 + $0x108] sm:$0xff]  ;;  %v5646_v57 = vld [vmem:[%s12746_s4 + $0x110] sm:$0xff] }
 0x15e   :  { %334 = vst [vmem:[#allocation2 + $0x90] sm:$0xff] %v312_v30  ;;  %v10542_v13 = vpack.c.bf16 %v5643_v8, %v5642_v5  ;;  %v5644_v30 = vld [vmem:[%s12746_s4 + $0x100] sm:$0xff]  ;;  %v5650_v56 = vld [vmem:[%s12746_s4 + $0x130] sm:$0xff]  ;;  %v5651_v5 = vld [vmem:[%s12746_s4 + $0x138] sm:$0xff] }
 0x15f   :  { %335 = vst [vmem:[#allocation2 + $0x98] sm:$0xff] %v314_v45  ;;  %v10554_v45 = vpack.c.bf16 %v5645_v15, %v5644_v30  ;;  %v5652_v8 = vld [vmem:[%s12746_s4 + $0x140] sm:$0xff]  ;;  %v5653_v30 = vld [vmem:[%s12746_s4 + $0x148] sm:$0xff]  ;;  %v5654_v15 = vld [vmem:[%s12746_s4 + $0x150] sm:$0xff] }
 0x163   :  { %v10441_v49 = vpop.eup %9818 }
 0x164   :  { %1094 = vmatmul.mubr.f32.vlgmr.msra.gmra.mrb[10].mxu1 %v10441_v49  ;;  %v10447_v54 = vmax.f32 %v10441_v49, 0.0 }
 0x165   :  { %8475 = vmatpush1.bf16.msra.mxu1 %v10270_v53  ;;  %1164 = vmatprep.mubr.f32.mxu1 %v12749_v0 }
 0x166   :  { %6853 = vmatmul.mubr.f32.vlgmr.msra.gmra.mrb[14].mxu0 %v10447_v54  ;;  %8477 = vmatprep.subr.bf16.mxu1 %v10275_v44  ;;  %v676_v20 = vrot.slane %v10447_v54, 1 }
 0x167   :  { %8346 = vmatpush3.bf16.msra.mxu0 %v10443_v52  ;;  %6887 = vmatprep.mubr.msk.f32.mxu0 %vm10009_vm4, %v12749_v0 }
 0x168   :  { %8347 = vmatprep.subr.bf16.mxu0 %v12759_v51 }
 0x169   :  { %8479 = vmatpush1.bf16.msra.mxu1 %v10282_v59 }
 0x16a   :  { %8481 = vmatprep.subr.bf16.mxu1 %v10286_v60 }
 0x16b   :  { %8349 = vmatpush3.bf16.msra.mxu0 %v10460_v6 }
 0x16c   :  { %8350 = vmatprep.subr.bf16.mxu0 %v12759_v51 }
 0x16d   :  { %8483 = vmatpush1.bf16.msra.mxu1 %v10294_v3 }
 0x16e   :  { %8485 = vmatprep.subr.bf16.mxu1 %v10297_v4 }
 0x16f   :  { %8352 = vmatpush3.bf16.msra.mxu0 %v10478_v36 }
 0x170   :  { %8353 = vmatprep.subr.bf16.mxu0 %v12759_v51 }
 0x171   :  { %8487 = vmatpush1.bf16.msra.mxu1 %v10305_v10 }
 0x172   :  { %8489 = vmatprep.subr.bf16.mxu1 %v10308_v11 }
 0x173   :  { %8355 = vmatpush3.bf16.msra.mxu0 %v10494_v47 }
 0x174   :  { %8356 = vmatprep.subr.bf16.mxu0 %v12759_v51 }
 0x175   :  { %8491 = vmatpush1.bf16.msra.mxu1 %v10313_v17 }
 0x176   :  { %8493 = vmatprep.subr.bf16.mxu1 %v10316_v18 }
 0x177   :  { %8358 = vmatpush3.bf16.msra.mxu0 %v10506_v63 }
 0x178   :  { %8359 = vmatprep.subr.bf16.mxu0 %v12759_v51 }
 0x179   :  { %8495 = vmatpush1.bf16.msra.mxu1 %v10321_v26 }
 0x17a   :  { %8497 = vmatprep.subr.bf16.mxu1 %v10324_v27 }
 0x17b   :  { %8361 = vmatpush3.bf16.msra.mxu0 %v10518_v29 }
 0x17c   :  { %8362 = vmatprep.subr.bf16.mxu0 %v12759_v51 }
 0x17d   :  { %8499 = vmatpush1.bf16.msra.mxu1 %v10329_v38 }
 0x17e   :  { %8501 = vmatprep.subr.bf16.mxu1 %v10332_v39 }
 0x17f   :  { %8364 = vmatpush3.bf16.msra.mxu0 %v10530_v1 }
 0x180   :  { %8365 = vmatprep.subr.bf16.mxu0 %v12759_v51 }
 0x181   :  { %8503 = vmatpush1.bf16.msra.mxu1 %v10335_v24 }
 0x182   :  { %8504 = vmatprep.subr.bf16.mxu1 %v12759_v51 }
 0x183   :  { %8367 = vmatpush3.bf16.msra.mxu0 %v10542_v13 }
 0x184   :  { %1165 = vmatmul.mubr.f32.vlgmr.msra.gmra.mrb[12].mxu1 %v10441_v49  ;;  %8368 = vmatprep.subr.bf16.mxu0 %v12759_v51  ;;  %v10570_v49 = vpack.c.bf16 %v5647_v22, %v5646_v57  ;;  %v5656_v57 = vld [vmem:[%s12746_s4 + $0x160] sm:$0xff]  ;;  %v5657_v22 = vld [vmem:[%s12746_s4 + $0x168] sm:$0xff] }
 0x185   :  { %8506 = vmatpush3.bf16.msra.mxu1 %v10346_v50  ;;  %7027 = vmatprep.mubr.msk.f32.mxu1 %vm10009_vm4, %v12749_v0  ;;  %v5649_v50 = vld [vmem:[%s12746_s4 + $0x128] sm:$0xff] }
 0x186   :  { %6888 = vmatmul.mubr.f32.vlgmr.msra.gmra.mrb[14].mxu0 %v676_v20  ;;  %8507 = vmatprep.subr.bf16.mxu1 %v12759_v51  ;;  %v10584_v43 = vpack.c.bf16 %v5649_v50, %v5648_v37  ;;  %v5655_v20 = vld [vmem:[%s12746_s4 + $0x158] sm:$0xff]  ;;  %v5658_v37 = vld [vmem:[%s12746_s4 + $0x170] sm:$0xff] }
 0x187   :  { %8370 = vmatpush3.bf16.msra.mxu0 %v10554_v45  ;;  %6922 = vmatprep.mubr.msk.f32.mxu0 %vm10009_vm4, %v12749_v0  ;;  %v5659_v50 = vld [vmem:[%s12746_s4 + $0x178] sm:$0xff] }
 0x188   :  { %8371 = vmatprep.subr.bf16.mxu0 %v12759_v51 }
 0x189   :  { %8509 = vmatpush3.bf16.msra.mxu1 %v10357_v55  ;;  %v10596_v55 = vpack.c.bf16 %v5651_v5, %v5650_v56  ;;  %v5660_v56 = vld [vmem:[%s12746_s4 + $0x180] sm:$0xff]  ;;  %v5661_v5 = vld [vmem:[%s12746_s4 + $0x188] sm:$0xff] }
 0x18a   :  { %8510 = vmatprep.subr.bf16.mxu1 %v12759_v51 }
 0x18b   :  { %8373 = vmatpush3.bf16.msra.mxu0 %v10570_v49 }
 0x18c   :  { %8374 = vmatprep.subr.bf16.mxu0 %v12759_v51 }
 0x18d   :  { %8512 = vmatpush3.bf16.msra.mxu1 %v10367_v61  ;;  %v10608_v61 = vpack.c.bf16 %v5653_v30, %v5652_v8  ;;  %v766_v8 = vrot.slane %v10447_v54, 2  ;;  %v5662_v30 = vld [vmem:[%s12746_s4 + $0x190] sm:$0xff] }
 0x18e   :  { %8513 = vmatprep.subr.bf16.mxu1 %v12759_v51 }
 0x18f   :  { %8376 = vmatpush3.bf16.msra.mxu0 %v10584_v43 }
 0x190   :  { %8377 = vmatprep.subr.bf16.mxu0 %v12759_v51 }
 0x191   :  { %8515 = vmatpush3.bf16.msra.mxu1 %v10377_v2  ;;  %v10620_v2 = vpack.c.bf16 %v5655_v20, %v5654_v15  ;;  %v5663_v15 = vld [vmem:[%s12746_s4 + $0x198] sm:$0xff]  ;;  %v5664_v20 = vld [vmem:[%s12746_s4 + $0x1a0] sm:$0xff] }
 0x192   :  { %8516 = vmatprep.subr.bf16.mxu1 %v12759_v51 }
 0x193   :  { %8379 = vmatpush3.bf16.msra.mxu0 %v10596_v55 }
 0x194   :  { %8380 = vmatprep.subr.bf16.mxu0 %v12759_v51 }
 0x195   :  { %8518 = vmatpush3.bf16.msra.mxu1 %v10387_v7  ;;  %v10632_v7 = vpack.c.bf16 %v5657_v22, %v5656_v57  ;;  %v5665_v57 = vld [vmem:[%s12746_s4 + $0x1a8] sm:$0xff] }
 0x196   :  { %8519 = vmatprep.subr.bf16.mxu1 %v12759_v51  ;;  %v10679_v22 = vpack.c.bf16 %v5665_v57, %v5664_v20  ;;  %v5671_v20 = vld [vmem:[%s12746_s4 + $0x1d8] sm:$0xff] }
 0x197   :  { %8382 = vmatpush3.bf16.msra.mxu0 %v10608_v61 }
 0x198   :  { %8383 = vmatprep.subr.bf16.mxu0 %v12759_v51 }
 0x199   :  { %8521 = vmatpush3.bf16.msra.mxu1 %v10397_v14  ;;  %v10644_v14 = vpack.c.bf16 %v5659_v50, %v5658_v37  ;;  %v5666_v37 = vld [vmem:[%s12746_s4 + $0x1b0] sm:$0xff]  ;;  %v5667_v50 = vld [vmem:[%s12746_s4 + $0x1b8] sm:$0xff] }
 0x19a   :  { %8522 = vmatprep.subr.bf16.mxu1 %v12759_v51 }
 0x19b   :  { %8385 = vmatpush3.bf16.msra.mxu0 %v10620_v2 }
 0x19c   :  { %8386 = vmatprep.subr.bf16.mxu0 %v12759_v51 }
 0x19d   :  { %8524 = vmatpush3.bf16.msra.mxu1 %v10406_v19  ;;  %v10656_v19 = vpack.c.bf16 %v5661_v5, %v5660_v56  ;;  %v10689_v56 = vpack.c.bf16 %v5667_v50, %v5666_v37  ;;  %v5668_v5 = vld [vmem:[%s12746_s4 + $0x1c0] sm:$0xff]  ;;  %v5673_v50 = vld [vmem:[%s12746_s4 + $0x1e8] sm:$0xff] }
 0x19e   :  { %8525 = vmatprep.subr.bf16.mxu1 %v12759_v51  ;;  %v5672_v37 = vld [vmem:[%s12746_s4 + $0x1e0] sm:$0xff] }
 0x19f   :  { %8388 = vmatpush3.bf16.msra.mxu0 %v10632_v7 }
 0x1a0   :  { %8389 = vmatprep.subr.bf16.mxu0 %v12759_v51 }
 0x1a1   :  { %8527 = vmatpush3.bf16.msra.mxu1 %v10416_v25  ;;  %v10667_v25 = vpack.c.bf16 %v5663_v15, %v5662_v30  ;;  %v5670_v15 = vld [vmem:[%s12746_s4 + $0x1d0] sm:$0xff] }
 0x1a2   :  { %8528 = vmatprep.subr.bf16.mxu1 %v12759_v51  ;;  %v10709_v57 = vpack.c.bf16 %v5671_v20, %v5670_v15  ;;  %v5675_v15 = vld [vmem:[%s12746_s4 + $0x1f8] sm:$0xff] }
 0x1a3   :  { %8391 = vmatpush3.bf16.msra.mxu0 %v10644_v14 }
 0x1a4   :  { %8392 = vmatprep.subr.bf16.mxu0 %v12759_v51  ;;  %12860 = vst [vmem:[#allocation26_spill] sm:$0xff] %v10709_v57 }
 0x1a6   :  { %6923 = vmatmul.mubr.f32.vlgmr.msra.gmra.mrb[14].mxu0 %v766_v8  ;;  %v5669_v8 = vld [vmem:[%s12746_s4 + $0x1c8] sm:$0xff] }
 0x1a7   :  { %8394 = vmatpush3.bf16.msra.mxu0 %v10656_v19  ;;  %6957 = vmatprep.mubr.msk.f32.mxu0 %vm10009_vm4, %v12749_v0  ;;  %v10699_v30 = vpack.c.bf16 %v5669_v8, %v5668_v5  ;;  %v10719_v5 = vpack.c.bf16 %v5673_v50, %v5672_v37  ;;  %v5674_v8 = vld [vmem:[%s12746_s4 + $0x1f0] sm:$0xff]  ;;  %v5676_v37 = vld [vmem:[%s12746_s4 + $0x200] sm:$0xff]  ;;  %v5677_v50 = vld [vmem:[%s12746_s4 + $0x208] sm:$0xff] }
 0x1a8   :  { %8395 = vmatprep.subr.bf16.mxu0 %v12759_v51  ;;  %v10729_v20 = vpack.c.bf16 %v5675_v15, %v5674_v8  ;;  %v10739_v0 = vpack.c.bf16 %v5677_v50, %v5676_v37  ;;  %v5678_v8 = vld [vmem:[%s12746_s4 + $0x210] sm:$0xff]  ;;  %v5679_v15 = vld [vmem:[%s12746_s4 + $0x218] sm:$0xff]  ;;  %v5680_v37 = vld [vmem:[%s12746_s4 + $0x220] sm:$0xff] }
 0x1a9   :  { %12861 = vst [vmem:[#allocation27_spill] sm:$0xff] %v10719_v5  ;;  %v5681_v50 = vld [vmem:[%s12746_s4 + $0x228] sm:$0xff] }
 0x1aa   :  { %12862 = vst [vmem:[#allocation28_spill] sm:$0xff] %v10729_v20  ;;  %12863 = vst [vmem:[#allocation29_spill] sm:$0xff] %v10739_v0 }
 0x1ab   :  { %8397 = vmatpush3.bf16.msra.mxu0 %v10667_v25 }
 0x1ac   :  { %8398 = vmatprep.subr.bf16.mxu0 %v12759_v51 }
 0x1af   :  { %8400 = vmatpush3.bf16.msra.mxu0 %v10679_v22 }
 0x1b0   :  { %8401 = vmatprep.subr.bf16.mxu0 %v12759_v51 }
 0x1b3   :  { %8403 = vmatpush3.bf16.msra.mxu0 %v10689_v56 }
 0x1b4   :  { %8404 = vmatprep.subr.bf16.mxu0 %v12759_v51 }
 0x1b7   :  { %8406 = vmatpush3.bf16.msra.mxu0 %v10699_v30 }
 0x1b8   :  { %8407 = vmatprep.subr.bf16.mxu0 %v12759_v51 }
 0x1bb   :  { %8409 = vmatpush3.bf16.msra.mxu0 %v10709_v57  ;;  %v856_v57 = vrot.slane %v10447_v54, 3 }
 0x1bc   :  { %8410 = vmatprep.subr.bf16.mxu0 %v12759_v51 }
 0x1bf   :  { %8412 = vmatpush3.bf16.msra.mxu0 %v10719_v5  ;;  %v10750_v5 = vpack.c.bf16 %v5679_v15, %v5678_v8  ;;  %v5682_v8 = vld [vmem:[%s12746_s4 + $0x230] sm:$0xff]  ;;  %v5683_v15 = vld [vmem:[%s12746_s4 + $0x238] sm:$0xff] }
 0x1c0   :  { %8413 = vmatprep.subr.bf16.mxu0 %v12759_v51 }
 0x1c1   :  { %12864 = vst [vmem:[#allocation30_spill] sm:$0xff] %v10750_v5 }
 0x1c3   :  { %8415 = vmatpush3.bf16.msra.mxu0 %v10729_v20  ;;  %v12865_v20 = vmov 0.0  }
 0x1c4   :  { %8416 = vmatprep.subr.bf16.mxu0 %v12759_v51 }
 0x1c6   :  { %6958 = vmatmul.mubr.f32.vlgmr.msra.gmra.mrb[14].mxu0 %v856_v57  ;;  %v10762_v57 = vpack.c.bf16 %v5681_v50, %v5680_v37  ;;  %v5684_v37 = vld [vmem:[%s12746_s4 + $0x240] sm:$0xff]  ;;  %v5685_v50 = vld [vmem:[%s12746_s4 + $0x248] sm:$0xff] }
 0x1c7   :  { %8418 = vmatpush3.bf16.msra.mxu0 %v10739_v0  ;;  %6992 = vmatprep.mubr.msk.f32.mxu0 %vm10009_vm4, %v12865_v20  ;;  %v10772_v0 = vpack.c.bf16 %v5683_v15, %v5682_v8  ;;  %v5686_v8 = vld [vmem:[%s12746_s4 + $0x250] sm:$0xff]  ;;  %v5687_v15 = vld [vmem:[%s12746_s4 + $0x258] sm:$0xff] }
 0x1c8   :  { %8419 = vmatprep.subr.bf16.mxu0 %v12759_v51  ;;  %12866 = vst [vmem:[#allocation31_spill] sm:$0xff] %v10762_v57 }
 0x1c9   :  { %12867 = vst [vmem:[#allocation32_spill] sm:$0xff] %v10772_v0 }
 0x1cb   :  { %8421 = vmatpush3.bf16.msra.mxu0 %v10750_v5  ;;  %v10782_v5 = vpack.c.bf16 %v5685_v50, %v5684_v37  ;;  %v5688_v37 = vld [vmem:[%s12746_s4 + $0x260] sm:$0xff]  ;;  %v5689_v50 = vld [vmem:[%s12746_s4 + $0x268] sm:$0xff] }
 0x1cc   :  { %8422 = vmatprep.subr.bf16.mxu0 %v12759_v51 }
 0x1cd   :  { %12868 = vst [vmem:[#allocation33_spill] sm:$0xff] %v10782_v5 }
 0x1cf   :  { %8424 = vmatpush3.bf16.msra.mxu0 %v10762_v57  ;;  %v10792_v57 = vpack.c.bf16 %v5687_v15, %v5686_v8  ;;  %v5690_v8 = vld [vmem:[%s12746_s4 + $0x270] sm:$0xff]  ;;  %v5691_v15 = vld [vmem:[%s12746_s4 + $0x278] sm:$0xff] }
 0x1d0   :  { %8425 = vmatprep.subr.bf16.mxu0 %v12759_v51 }
 0x1d3   :  { %8427 = vmatpush3.bf16.msra.mxu0 %v10772_v0  ;;  %v10802_v0 = vpack.c.bf16 %v5689_v50, %v5688_v37  ;;  %v946_v37 = vrot.slane %v10447_v54, 4 }
 0x1d4   :  { %8428 = vmatprep.subr.bf16.mxu0 %v12759_v51 }
 0x1d7   :  { %8430 = vmatpush3.bf16.msra.mxu0 %v10782_v5  ;;  %v10812_v5 = vpack.c.bf16 %v5691_v15, %v5690_v8  ;;  %v1022_v15 = vld [vmem:[#allocation2 + $0x8] sm:$0xe0] }
 0x1d8   :  { %8431 = vmatprep.subr.bf16.mxu0 %v12759_v51 }
 0x1db   :  { %8433 = vmatpush3.bf16.msra.mxu0 %v10792_v57 }
 0x1dc   :  { %8434 = vmatprep.subr.bf16.mxu0 %v12759_v51 }
 0x1df   :  { %8436 = vmatpush3.bf16.msra.mxu0 %v10802_v0 }
 0x1e0   :  { %8437 = vmatprep.subr.bf16.mxu0 %v12759_v51 }
 0x1e3   :  { %8439 = vmatpush3.bf16.msra.mxu0 %v10812_v5 }
 0x1e4   :  { %8625 = vmatprep.subr.bf16.mxu0 %v10115_v28 }
 0x1e6   :  { %6993 = vmatmul.mubr.f32.vlgmr.msra.gmra.mrb[14].mxu0 %v946_v37  ;;  %v1026_v37 = vld [vmem:[#allocation2 + $0x28] sm:$0x3] }
 0x1e7   :  { %8627 = vmatpush1.bf16.msra.mxu0 %v10124_v34  ;;  %1755 = vmatprep.mubr.f32.mxu0 %v12865_v20 }
 0x1e8   :  { %8629 = vmatprep.subr.bf16.mxu0 %v10127_v35 }
 0x1eb   :  { %8631 = vmatpush1.bf16.msra.mxu0 %v10135_v42 }
 0x1ec   :  { %8633 = vmatprep.subr.bf16.mxu0 %v10147_v46 }
 0x1ef   :  { %8635 = vmatpush1.bf16.msra.mxu0 %v10167_v58 }
 0x1f0   :  { %8637 = vmatprep.subr.bf16.mxu0 %v10179_v62  ;;  %v1025_v62 = vld [vmem:[#allocation2 + $0x20] sm:$0x3] }
 0x1f3   :  { %8639 = vmatpush1.bf16.msra.mxu0 %v10199_v9  ;;  %v1021_v9 = vld [vmem:[#allocation2] sm:$0xe0] }
 0x1f4   :  { %8641 = vmatprep.subr.bf16.mxu0 %v10211_v12 }
 0x1f7   :  { %8643 = vmatpush1.bf16.msra.mxu0 %v10222_v21 }
 0x1f8   :  { %8645 = vmatprep.subr.bf16.mxu0 %v10231_v23 }
 0x1fb   :  { %8647 = vmatpush1.bf16.msra.mxu0 %v10238_v31 }
 0x1fc   :  { %8649 = vmatprep.subr.bf16.mxu0 %v10242_v32 }
 0x1ff   :  { %8651 = vmatpush1.bf16.msra.mxu0 %v10248_v40 }
 0x200   :  { %8653 = vmatprep.subr.bf16.mxu0 %v10253_v41 }
 0x203   :  { %8655 = vmatpush1.bf16.msra.mxu0 %v10259_v48 }
 0x204   :  { %8657 = vmatprep.subr.bf16.mxu0 %v10264_v33 }
 0x237   :  { %v1095_v54 = vpop.f32.mrb[10].mxu1 }
 0x238   :  { %v1097_v50 = vpop.f32.mrb[11].mxu1  ;;  %v1175_v32 = vrot.slane %v1095_v54, 3  ;;  %v1023_v54 = vld [vmem:[#allocation2 + $0x10] sm:$0xe0] }
 0x239   :  { %v1176_v8 = vrot.slane %v1097_v50, 3  ;;  %v1218_v50 = vrot.slane %v10432_v16, 3 }
 0x23a   :  { %v1183_v48 = vadd.f32 %v1175_v32, %v1021_v9  ;;  %v1187_v33 = vadd.f32 %v1175_v32, %v1025_v62  ;;  %v1028_v62 = vld [vmem:[#allocation2 + $0x38] sm:$0x3] }
 0x23b   :  { %v1184_v51 = vadd.f32 %v1176_v8, %v1022_v15  ;;  %v1188_v21 = vadd.f32 %v1176_v8, %v1026_v37  ;;  %v1027_v37 = vld [vmem:[#allocation2 + $0x30] sm:$0x3] }
 0x23c   :  { %v1191_v15 = vmul.f32 0.5, %v1183_v48 }
 0x23d   :  { %v1199_v23 = vmul.f32 0.5, %v1184_v51  ;;  %v1200_v12 = vmul.f32 0.5, %v1188_v21  ;;  %v1192_v51 = vmul.f32 0.5, %v1187_v33 }
 0x23f   :  { %9820 = vtanh.f32 %v1199_v23 }
 0x240   :  { %9822 = vtanh.f32 %v1200_v12 }
 0x241   :  { %9824 = vtanh.f32 %v1191_v15 }
 0x242   :  { %9826 = vtanh.f32 %v1192_v51 }
 0x249   :  { %v9821_v31 = vpop.eup %9820 }
 0x24a   :  { %v9823_v40 = vpop.eup %9822  ;;  %v1203_v41 = vmul.f32 0.5, %v9821_v31 }
 0x24b   :  { %v1204_v58 = vmul.f32 0.5, %v9823_v40  ;;  %v1024_v40 = vld [vmem:[#allocation2 + $0x18] sm:$0xe0] }
 0x24c   :  { %v1205_v46 = vadd.f32 0.5, %v1203_v41 }
 0x24d   :  { %v1206_v42 = vadd.f32 0.5, %v1204_v58 }
 0x24e   :  { %v1220_v35 = vmul.f32 %v1218_v50, %v1205_v46  ;;  %v9825_v46 = vpop.eup %9824 }
 0x24f   :  { %v1221_v8 = vmul.f32 %v1218_v50, %v1206_v42  ;;  %v9827_v58 = vpop.eup %9826  ;;  %v1195_v33 = vmul.f32 0.5, %v9825_v46 }
 0x250   :  { %v1196_v16 = vmul.f32 0.5, %v9827_v58 }
 0x251   :  { %v1197_v50 = vadd.f32 0.5, %v1195_v33 }
 0x252   :  { %v1198_v51 = vadd.f32 0.5, %v1196_v16 }
 0x257   :  { %v1166_v12 = vpop.f32.mrb[12].mxu1 }
 0x258   :  { %v1177_v21 = vrot.slane %v1166_v12, 3  ;;  %v1168_v23 = vpop.f32.mrb[13].mxu1 }
 0x259   :  { %v1178_v31 = vrot.slane %v1168_v23, 3 }
 0x25a   :  { %v1185_v34 = vadd.f32 %v1177_v21, %v1023_v54  ;;  %v1189_v9 = vadd.f32 %v1177_v21, %v1027_v37 }
 0x25b   :  { %v1186_v32 = vadd.f32 %v1178_v31, %v1024_v40  ;;  %v1190_v41 = vadd.f32 %v1178_v31, %v1028_v62 }
 0x25c   :  { %9828 = vtanh.f32 %v1185_v34 }
 0x25d   :  { %9830 = vtanh.f32 %v1189_v9  ;;  %v1209_v42 = vmul.f32 0.5, %v1186_v32  ;;  %v1210_v48 = vmul.f32 0.5, %v1190_v41 }
 0x25f   :  { %9832 = vtanh.f32 %v1209_v42 }
 0x260   :  { %9834 = vtanh.f32 %v1210_v48 }
 0x266   :  { %v9829_v15 = vpop.eup %9828 }
 0x267   :  { %v9831_v12 = vpop.eup %9830  ;;  %v1222_v23 = vmul.f32 %v9829_v15, %v1197_v50 }
 0x268   :  { %v1223_v21 = vmul.f32 %v9831_v12, %v1198_v51 }
 0x269   :  { %v1224_v54 = vadd.f32 %v1222_v23, %v1220_v35  ;;  %v9833_v9 = vpop.eup %9832 }
 0x26a   :  { %v1225_v37 = vadd.f32 %v1223_v21, %v1221_v8  ;;  %v9835_v40 = vpop.eup %9834  ;;  %v1213_v32 = vmul.f32 0.5, %v9833_v9  ;;  %v12869_v21 = vmov 0.0|0.0   ;;  %v12882_v9 = vld [vmem:[#allocation14_spill] sm:$0xff] }
 0x26b   :  { %9836 = vtanh.f32 %v1224_v54  ;;  %v1865_v34 = vrot.slane %v1224_v54, 3  ;;  %v1214_v41 = vmul.f32 0.5, %v9835_v40 }
 0x26c   :  { %9838 = vtanh.f32 %v1225_v37  ;;  %v1866_v31 = vrot.slane %v1225_v37, 3  ;;  %v1215_v46 = vadd.f32 0.5, %v1213_v32  ;;  %v12881_v37 = vld [vmem:[#allocation13_spill] sm:$0xff]  ;;  %v12883_v32 = vld [vmem:[#allocation15_spill] sm:$0xff] }
 0x26d   :  { %v1216_v42 = vadd.f32 0.5, %v1214_v41  ;;  %v1882_v41 = vld [vmem:[%s12746_s4 + $0x30] sm:$0xff] }
 0x26e   :  { %v10837_v62 = vsel %vm1864_vm5, %v1865_v34, %v1866_v31  ;;  %v1880_v34 = vld [vmem:[%s12746_s4 + $0x20] sm:$0xff]  ;;  %v1881_v31 = vld [vmem:[%s12746_s4 + $0x28] sm:$0xff] }
 0x26f   :  { %v10978_v40 = vpack.c.bf16 %v1881_v31, %v1880_v34  ;;  %v1680_v31 = vld [vmem:[#allocation2 + $0x20] sm:$0x7c] }
 0x275   :  { %v9837_v58 = vpop.eup %9836 }
 0x276   :  { %v9839_v48 = vpop.eup %9838  ;;  %v1228_v33 = vmul.f32 %v9837_v58, %v1215_v46  ;;  %v1883_v46 = vld [vmem:[%s12746_s4 + $0x38] sm:$0xff]  ;;  %v12884_v58 = vld [vmem:[#allocation16_spill] sm:$0xff] }
 0x277   :  { %v1229_v16 = vmul.f32 %v9839_v48, %v1216_v42  ;;  %v10990_v42 = vpack.c.bf16 %v1883_v46, %v1882_v41  ;;  %v12885_v48 = vld [vmem:[#allocation17_spill] sm:$0xff] }
 0x278   :  { %9840 = vtanh.f32 %v1228_v33  ;;  %v1884_v33 = vld [vmem:[%s12746_s4 + $0x40] sm:$0xff] }
 0x279   :  { %9842 = vtanh.f32 %v1229_v16  ;;  %v1885_v16 = vld [vmem:[%s12746_s4 + $0x48] sm:$0xff] }
 0x282   :  { %v9841_v35 = vpop.eup %9840 }
 0x283   :  { %v10839_v8 = vpop.eup %9842  ;;  %v1687_v50 = vrot.slane %v9841_v35, 5  ;;  %v10841_v15 = vmax.f32 %v9841_v35, 0.0  ;;  %v12886_v35 = vld [vmem:[#allocation18_spill] sm:$0xff] }
 0x284   :  { %v1688_v51 = vrot.slane %v10839_v8, 5 }
 0x285   :  { %v1251_v12 = vrot.slane %v10841_v15, 5 }
 0x286   :  { %v1689_v23 = vsel %vm1686_vm6, %v1687_v50, %v1688_v51  ;;  %v12887_v50 = vld [vmem:[#allocation19_spill] sm:$0xff] }
 0x287   :  { %1756 = vmatmul.mubr.f32.vlgmr.msra.gmra.mrb[16].mxu0 %v1689_v23  ;;  %7028 = vmatmul.mubr.f32.vlgmr.msra.gmra.mrb[14].mxu1 %v1251_v12  ;;  %v1887_v51 = vld [vmem:[%s12746_s4 + $0x58] sm:$0xff]  ;;  %v1888_v12 = vld [vmem:[%s12746_s4 + $0x60] sm:$0xff] }
 0x288   :  { %8659 = vmatpush1.bf16.msra.mxu0 %v10270_v53  ;;  %8530 = vmatpush3.bf16.msra.mxu1 %v10443_v52  ;;  %v1340_v52 = vrot.slane %v10841_v15, 6 }
 0x289   :  { %8661 = vmatprep.subr.bf16.mxu0 %v10275_v44  ;;  %8531 = vmatprep.subr.bf16.mxu1 %v12869_v21 }
 0x28a   :  { %1826 = vmatprep.mubr.f32.mxu0 %v12865_v20  ;;  %7062 = vmatprep.mubr.msk.f32.mxu1 %vm10009_vm4, %v12865_v20 }
 0x28c   :  { %8663 = vmatpush1.bf16.msra.mxu0 %v10282_v59  ;;  %8533 = vmatpush3.bf16.msra.mxu1 %v10460_v6  ;;  %v10896_v6 = vld [vmem:[%s12747_s5] sm:$0x1] }
 0x28d   :  { %8665 = vmatprep.subr.bf16.mxu0 %v10286_v60  ;;  %8534 = vmatprep.subr.bf16.mxu1 %v12869_v21 }
 0x290   :  { %8667 = vmatpush1.bf16.msra.mxu0 %v10294_v3  ;;  %8536 = vmatpush3.bf16.msra.mxu1 %v10478_v36 }
 0x291   :  { %8669 = vmatprep.subr.bf16.mxu0 %v10297_v4  ;;  %8537 = vmatprep.subr.bf16.mxu1 %v12869_v21 }
 0x294   :  { %8671 = vmatpush1.bf16.msra.mxu0 %v10305_v10  ;;  %8539 = vmatpush3.bf16.msra.mxu1 %v10494_v47 }
 0x295   :  { %8673 = vmatprep.subr.bf16.mxu0 %v10308_v11  ;;  %8540 = vmatprep.subr.bf16.mxu1 %v12869_v21 }
 0x298   :  { %8675 = vmatpush1.bf16.msra.mxu0 %v10313_v17  ;;  %8542 = vmatpush3.bf16.msra.mxu1 %v10506_v63 }
 0x299   :  { %8677 = vmatprep.subr.bf16.mxu0 %v10316_v18  ;;  %8543 = vmatprep.subr.bf16.mxu1 %v12869_v21 }
 0x29c   :  { %8679 = vmatpush1.bf16.msra.mxu0 %v10321_v26  ;;  %8545 = vmatpush3.bf16.msra.mxu1 %v10518_v29  ;;  %v1429_v29 = vrot.slane %v10841_v15, 7  ;;  %v1886_v15 = vld [vmem:[%s12746_s4 + $0x50] sm:$0xff] }
 0x29d   :  { %8681 = vmatprep.subr.bf16.mxu0 %v10324_v27  ;;  %8546 = vmatprep.subr.bf16.mxu1 %v12869_v21 }
 0x2a0   :  { %8683 = vmatpush1.bf16.msra.mxu0 %v10329_v38  ;;  %8548 = vmatpush3.bf16.msra.mxu1 %v10530_v1  ;;  %v12870_v1 = vld [vmem:[#allocation26_spill] sm:$0xff] }
 0x2a1   :  { %8685 = vmatprep.subr.bf16.mxu0 %v10332_v39  ;;  %8549 = vmatprep.subr.bf16.mxu1 %v12869_v21 }
 0x2a4   :  { %8687 = vmatpush1.bf16.msra.mxu0 %v10335_v24  ;;  %8551 = vmatpush3.bf16.msra.mxu1 %v10542_v13  ;;  %v12871_v13 = vld [vmem:[#allocation27_spill] sm:$0xff] }
 0x2a5   :  { %8552 = vmatprep.subr.bf16.mxu1 %v12869_v21  ;;  %8688 = vmatprep.subr.bf16.mxu0 %v12869_v21 }
 0x2a7   :  { %1827 = vmatmul.mubr.f32.vlgmr.msra.gmra.mrb[18].mxu0 %v1689_v23  ;;  %7063 = vmatmul.mubr.f32.vlgmr.msra.gmra.mrb[14].mxu1 %v1340_v52  ;;  %v12888_v23 = vld [vmem:[#allocation20_spill] sm:$0xff]  ;;  %v11017_v52 = vpack.c.bf16 %v1887_v51, %v1886_v15 }
 0x2a8   :  { %8554 = vmatpush3.bf16.msra.mxu1 %v10554_v45  ;;  %7097 = vmatprep.mubr.msk.f32.mxu1 %vm10009_vm4, %v12865_v20  ;;  %v12872_v45 = vld [vmem:[#allocation28_spill] sm:$0xff] }
 0x2a9   :  { %8555 = vmatprep.subr.bf16.mxu1 %v12869_v21  ;;  %7202 = vmatprep.mubr.msk.f32.mxu0 %vm10009_vm4, %v12865_v20 }
 0x2ac   :  { %8557 = vmatpush3.bf16.msra.mxu1 %v10570_v49  ;;  %v1233_v49 = vmax.f32 %v10839_v8, 0.0  ;;  %v11002_v8 = vpack.c.bf16 %v1885_v16, %v1884_v33 }
 0x2ad   :  { %8558 = vmatprep.subr.bf16.mxu1 %v12869_v21 }
 0x2b0   :  { %8560 = vmatpush3.bf16.msra.mxu1 %v10584_v43  ;;  %v12873_v43 = vld [vmem:[#allocation29_spill] sm:$0xff] }
 0x2b1   :  { %8561 = vmatprep.subr.bf16.mxu1 %v12869_v21 }
 0x2b4   :  { %8563 = vmatpush3.bf16.msra.mxu1 %v10596_v55  ;;  %v12874_v55 = vld [vmem:[#allocation30_spill] sm:$0xff] }
 0x2b5   :  { %8564 = vmatprep.subr.bf16.mxu1 %v12869_v21 }
 0x2b8   :  { %8566 = vmatpush3.bf16.msra.mxu1 %v10608_v61  ;;  %v12875_v61 = vld [vmem:[#allocation31_spill] sm:$0xff] }
 0x2b9   :  { %v1014_v36 = vpop.f32.mrb[14].mxu0  ;;  %8567 = vmatprep.subr.bf16.mxu1 %v12869_v21 }
 0x2ba   :  { %v9728_v47 = vadd.f32 %v1014_v36, %v10896_v6  ;;  %v6994_v63 = vpop.f32.mrb[15].mxu0  ;;  %v1889_v36 = vld [vmem:[%s12746_s4 + $0x68] sm:$0xff] }
 0x2bb   :  { %v11024_v63 = vpack.c.bf16 %v1889_v36, %v1888_v12  ;;  %v1682_v36 = vld [vmem:[#allocation2 + $0x30] sm:$0x7c] }
 0x2bc   :  { %1020 = vst.msk [vmem:[#allocation6] sm:$0x1] %vm1019_vm7, %v9728_v47  ;;  %8569 = vmatpush3.bf16.msra.mxu1 %v10620_v2  ;;  %v12876_v2 = vld [vmem:[#allocation32_spill] sm:$0xff]  ;;  %v12889_v47 = vld [vmem:[#allocation21_spill] sm:$0xff] }
 0x2bd   :  { %8570 = vmatprep.subr.bf16.mxu1 %v12869_v21 }
 0x2c0   :  { %8572 = vmatpush3.bf16.msra.mxu1 %v10632_v7  ;;  %v12877_v7 = vld [vmem:[#allocation33_spill] sm:$0xff] }
 0x2c1   :  { %8573 = vmatprep.subr.bf16.mxu1 %v12869_v21 }
 0x2c4   :  { %8575 = vmatpush3.bf16.msra.mxu1 %v10644_v14  ;;  %v1606_v14 = vrot.slane %v1233_v49, 1 }
 0x2c5   :  { %8576 = vmatprep.subr.bf16.mxu1 %v12869_v21 }
 0x2c7   :  { %7098 = vmatmul.mubr.f32.vlgmr.msra.gmra.mrb[14].mxu1 %v1429_v29  ;;  %v1890_v29 = vld [vmem:[%s12746_s4 + $0x70] sm:$0xff] }
 0x2c8   :  { %8578 = vmatpush3.bf16.msra.mxu1 %v10656_v19  ;;  %7132 = vmatprep.mubr.msk.f32.mxu1 %vm10009_vm4, %v12865_v20  ;;  %v1876_v19 = vld [vmem:[%s12746_s4] sm:$0xff] }
 0x2c9   :  { %8579 = vmatprep.subr.bf16.mxu1 %v12869_v21 }
 0x2cc   :  { %8581 = vmatpush3.bf16.msra.mxu1 %v10667_v25  ;;  %v1877_v25 = vld [vmem:[%s12746_s4 + $0x8] sm:$0xff] }
 0x2cd   :  { %8582 = vmatprep.subr.bf16.mxu1 %v12869_v21 }
 0x2d0   :  { %8584 = vmatpush3.bf16.msra.mxu1 %v10679_v22  ;;  %v12878_v22 = vld [vmem:[#allocation10_spill] sm:$0xff] }
 0x2d1   :  { %8585 = vmatprep.subr.bf16.mxu1 %v12869_v21 }
 0x2d4   :  { %8587 = vmatpush3.bf16.msra.mxu1 %v10689_v56  ;;  %v10953_v56 = vpack.c.bf16 %v1877_v25, %v1876_v19 }
 0x2d5   :  { %8588 = vmatprep.subr.bf16.mxu1 %v12869_v21 }
 0x2d6   :  { %8690 = vmatpush3.bf16.msra.mxu0 %v10953_v56 }
 0x2d7   :  { %8691 = vmatprep.subr.bf16.mxu0 %v12869_v21 }
 0x2d8   :  { %8590 = vmatpush3.bf16.msra.mxu1 %v10699_v30  ;;  %v1878_v30 = vld [vmem:[%s12746_s4 + $0x10] sm:$0xff] }
 0x2d9   :  { %8591 = vmatprep.subr.bf16.mxu1 %v12869_v21 }
 0x2dc   :  { %8593 = vmatpush3.bf16.msra.mxu1 %v12870_v1  ;;  %v1891_v1 = vld [vmem:[%s12746_s4 + $0x78] sm:$0xff] }
 0x2dd   :  { %8594 = vmatprep.subr.bf16.mxu1 %v12869_v21 }
 0x2e0   :  { %8596 = vmatpush3.bf16.msra.mxu1 %v12871_v13  ;;  %v12890_v13 = vld [vmem:[#allocation22_spill] sm:$0xff] }
 0x2e1   :  { %8597 = vmatprep.subr.bf16.mxu1 %v12869_v21 }
 0x2e4   :  { %8599 = vmatpush3.bf16.msra.mxu1 %v12872_v45  ;;  %v12891_v45 = vld [vmem:[#allocation23_spill] sm:$0xff] }
 0x2e5   :  { %8600 = vmatprep.subr.bf16.mxu1 %v12869_v21 }
 0x2e7   :  { %7133 = vmatmul.mubr.f32.vlgmr.msra.gmra.mrb[14].mxu1 %v1233_v49  ;;  %v11036_v49 = vpack.c.bf16 %v1891_v1, %v1890_v29 }
 0x2e8   :  { %8602 = vmatpush3.bf16.msra.mxu1 %v12873_v43  ;;  %7167 = vmatprep.mubr.msk.f32.mxu1 %vm10009_vm4, %v12865_v20  ;;  %v12892_v43 = vld [vmem:[#allocation24_spill] sm:$0xff] }
 0x2e9   :  { %8603 = vmatprep.subr.bf16.mxu1 %v12869_v21 }
 0x2ec   :  { %8605 = vmatpush3.bf16.msra.mxu1 %v12874_v55  ;;  %v12893_v55 = vld [vmem:[#allocation25_spill] sm:$0xff] }
 0x2ed   :  { %8606 = vmatprep.subr.bf16.mxu1 %v12869_v21 }
 0x2f0   :  { %8608 = vmatpush3.bf16.msra.mxu1 %v12875_v61 }
 0x2f1   :  { %8609 = vmatprep.subr.bf16.mxu1 %v12869_v21 }
 0x2f4   :  { %8611 = vmatpush3.bf16.msra.mxu1 %v12876_v2 }
 0x2f5   :  { %8612 = vmatprep.subr.bf16.mxu1 %v12869_v21 }
 0x2f8   :  { %8614 = vmatpush3.bf16.msra.mxu1 %v12877_v7 }
 0x2f9   :  { %8615 = vmatprep.subr.bf16.mxu1 %v12869_v21 }
 0x2fc   :  { %8617 = vmatpush3.bf16.msra.mxu1 %v10792_v57  ;;  %v12880_v57 = vld [vmem:[#allocation12_spill] sm:$0xff] }
 0x2fd   :  { %8618 = vmatprep.subr.bf16.mxu1 %v12869_v21 }
 0x300   :  { %8620 = vmatpush3.bf16.msra.mxu1 %v10802_v0  ;;  %v12879_v0 = vld [vmem:[#allocation11_spill] sm:$0xff] }
 0x301   :  { %8621 = vmatprep.subr.bf16.mxu1 %v12869_v21 }
 0x304   :  { %8623 = vmatpush3.bf16.msra.mxu1 %v10812_v5  ;;  %v1879_v5 = vld [vmem:[%s12746_s4 + $0x18] sm:$0xff] }
 0x305   :  { %8809 = vmatprep.subr.bf16.mxu1 %v10115_v28  ;;  %v10966_v54 = vpack.c.bf16 %v1879_v5, %v1878_v30 }
 0x307   :  { %7168 = vmatmul.mubr.f32.vlgmr.msra.gmra.mrb[14].mxu1 %v1606_v14  ;;  %8693 = vmatpush3.bf16.msra.mxu0 %v10966_v54  ;;  %v1681_v14 = vld [vmem:[#allocation2 + $0x28] sm:$0x7c] }
 0x308   :  { %8811 = vmatpush1.bf16.msra.mxu1 %v12878_v22  ;;  %2398 = vmatprep.mubr.f32.mxu1 %v12865_v20 }
 0x309   :  { %8813 = vmatprep.subr.bf16.mxu1 %v12879_v0  ;;  %8694 = vmatprep.subr.bf16.mxu0 %v12869_v21 }
 0x30b   :  { %8696 = vmatpush3.bf16.msra.mxu0 %v10978_v40 }
 0x30c   :  { %8815 = vmatpush1.bf16.msra.mxu1 %v12880_v57  ;;  %8697 = vmatprep.subr.bf16.mxu0 %v12869_v21 }
 0x30d   :  { %8817 = vmatprep.subr.bf16.mxu1 %v12881_v37 }
 0x30f   :  { %8699 = vmatpush3.bf16.msra.mxu0 %v10990_v42 }
 0x310   :  { %8819 = vmatpush1.bf16.msra.mxu1 %v12882_v9  ;;  %8700 = vmatprep.subr.bf16.mxu0 %v12869_v21 }
 0x311   :  { %8821 = vmatprep.subr.bf16.mxu1 %v12883_v32 }
 0x313   :  { %8702 = vmatpush3.bf16.msra.mxu0 %v11002_v8 }
 0x314   :  { %8823 = vmatpush1.bf16.msra.mxu1 %v12884_v58  ;;  %8703 = vmatprep.subr.bf16.mxu0 %v12869_v21 }
 0x315   :  { %8825 = vmatprep.subr.bf16.mxu1 %v12885_v48 }
 0x317   :  { %8705 = vmatpush3.bf16.msra.mxu0 %v11017_v52 }
 0x318   :  { %8827 = vmatpush1.bf16.msra.mxu1 %v12886_v35  ;;  %8706 = vmatprep.subr.bf16.mxu0 %v12869_v21 }
 0x319   :  { %8829 = vmatprep.subr.bf16.mxu1 %v12887_v50 }
 0x31b   :  { %8708 = vmatpush3.bf16.msra.mxu0 %v11024_v63 }
 0x31c   :  { %8831 = vmatpush1.bf16.msra.mxu1 %v12888_v23  ;;  %8709 = vmatprep.subr.bf16.mxu0 %v12869_v21 }
 0x31d   :  { %8833 = vmatprep.subr.bf16.mxu1 %v12889_v47 }
 0x31f   :  { %8711 = vmatpush3.bf16.msra.mxu0 %v11036_v49 }
 0x320   :  { %8835 = vmatpush1.bf16.msra.mxu1 %v12890_v13  ;;  %8712 = vmatprep.subr.bf16.mxu0 %v12869_v21 }
 0x321   :  { %8837 = vmatprep.subr.bf16.mxu1 %v12891_v45 }
 0x324   :  { %8839 = vmatpush1.bf16.msra.mxu1 %v12892_v43 }
 0x325   :  { %8841 = vmatprep.subr.bf16.mxu1 %v12893_v55 }
 0x35a   :  { %v1757_v61 = vpop.f32.mrb[16].mxu0 }
 0x35b   :  { %v1759_v2 = vpop.f32.mrb[17].mxu0  ;;  %v1837_v30 = vrot.slane %v1757_v61, 6 }
 0x35c   :  { %v1838_v7 = vrot.slane %v1759_v2, 6  ;;  %v1683_v2 = vld [vmem:[#allocation2 + $0x38] sm:$0x7c] }
 0x35d   :  { %v1845_v41 = vadd.f32 %v1837_v30, %v1680_v31 }
 0x35e   :  { %v1846_v19 = vadd.f32 %v1838_v7, %v1681_v14 }
 0x35f   :  { %v1849_v16 = vmul.f32 0.5, %v1845_v41 }
 0x360   :  { %v1853_v25 = vmul.f32 0.5, %v1846_v19 }
 0x362   :  { %9844 = vtanh.f32 %v1853_v25 }
 0x363   :  { %9846 = vtanh.f32 %v1849_v16 }
 0x36c   :  { %v9845_v5 = vpop.eup %9844 }
 0x36d   :  { %v1855_v34 = vmul.f32 0.5, %v9845_v5  ;;  %v9847_v14 = vpop.eup %9846 }
 0x36e   :  { %v1851_v19 = vmul.f32 0.5, %v9847_v14 }
 0x36f   :  { %v1856_v46 = vadd.f32 0.5, %v1855_v34 }
 0x370   :  { %v1852_v25 = vadd.f32 0.5, %v1851_v19  ;;  %v5761_v19 = vld [vmem:[%s12746_s4 + $0xa8] sm:$0xff] }
 0x371   :  { %v1869_v33 = vmul.f32 %v10837_v62, %v1856_v46 }
 0x37a   :  { %v1828_v15 = vpop.f32.mrb[18].mxu0 }
 0x37b   :  { %v1839_v51 = vrot.slane %v1828_v15, 6  ;;  %v1830_v12 = vpop.f32.mrb[19].mxu0  ;;  %v5756_v15 = vld [vmem:[%s12746_s4 + $0x80] sm:$0xff] }
 0x37c   :  { %v1840_v29 = vrot.slane %v1830_v12, 6 }
 0x37d   :  { %v1847_v1 = vadd.f32 %v1839_v51, %v1682_v36  ;;  %v5757_v51 = vld [vmem:[%s12746_s4 + $0x88] sm:$0xff] }
 0x37e   :  { %v1848_v7 = vadd.f32 %v1840_v29, %v1683_v2  ;;  %v11059_v29 = vpack.c.bf16 %v5757_v51, %v5756_v15  ;;  %v5758_v2 = vld [vmem:[%s12746_s4 + $0x90] sm:$0xff]  ;;  %v5767_v15 = vld [vmem:[%s12746_s4 + $0xd8] sm:$0xff] }
 0x37f   :  { %9848 = vtanh.f32 %v1847_v1 }
 0x380   :  { %v1858_v61 = vmul.f32 0.5, %v1848_v7  ;;  %v5759_v7 = vld [vmem:[%s12746_s4 + $0x98] sm:$0xff] }
 0x381   :  { %v11074_v14 = vpack.c.bf16 %v5759_v7, %v5758_v2  ;;  %v5769_v2 = vld [vmem:[%s12746_s4 + $0xe8] sm:$0xff] }
 0x382   :  { %9850 = vtanh.f32 %v1858_v61  ;;  %v5760_v61 = vld [vmem:[%s12746_s4 + $0xa0] sm:$0xff] }
 0x389   :  { %v9849_v30 = vpop.eup %9848 }
 0x38a   :  { %v1870_v5 = vmul.f32 %v9849_v30, %v1852_v25  ;;  %v11088_v25 = vpack.c.bf16 %v5761_v19, %v5760_v61  ;;  %v5762_v30 = vld [vmem:[%s12746_s4 + $0xb0] sm:$0xff]  ;;  %v5771_v19 = vld [vmem:[%s12746_s4 + $0xf8] sm:$0xff] }
 0x38b   :  { %v5770_v61 = vld [vmem:[%s12746_s4 + $0xf0] sm:$0xff] }
 0x38c   :  { %v11044_v34 = vadd.f32 %v1870_v5, %v1869_v33  ;;  %v9851_v62 = vpop.eup %9850  ;;  %v5763_v5 = vld [vmem:[%s12746_s4 + $0xb8] sm:$0xff] }
 0x38d   :  { %v1860_v31 = vmul.f32 0.5, %v9851_v62  ;;  %v11100_v62 = vpack.c.bf16 %v5763_v5, %v5762_v30  ;;  %v11148_v30 = vpack.c.bf16 %v5771_v19, %v5770_v61  ;;  %v5772_v5 = vld [vmem:[%s12746_s4 + $0x100] sm:$0xff]  ;;  %v5778_v61 = vld [vmem:[%s12746_s4 + $0x130] sm:$0xff]  ;;  %v5779_v19 = vld [vmem:[%s12746_s4 + $0x138] sm:$0xff] }
 0x38e   :  { %9852 = vtanh.f32 %v11044_v34 }
 0x38f   :  { %v1861_v41 = vadd.f32 0.5, %v1860_v31  ;;  %v5764_v31 = vld [vmem:[%s12746_s4 + $0xc0] sm:$0xff] }
 0x398   :  { %v9853_v46 = vpop.eup %9852 }
 0x399   :  { %v1873_v16 = vmul.f32 %v9853_v46, %v1861_v41  ;;  %v5765_v41 = vld [vmem:[%s12746_s4 + $0xc8] sm:$0xff] }
 0x39a   :  { %v11112_v46 = vpack.c.bf16 %v5765_v41, %v5764_v31  ;;  %v5773_v31 = vld [vmem:[%s12746_s4 + $0x108] sm:$0xff] }
 0x39b   :  { %9854 = vtanh.f32 %v1873_v16  ;;  %v5766_v16 = vld [vmem:[%s12746_s4 + $0xd0] sm:$0xff]  ;;  %v11160_v41 = vpack.c.bf16 %v5773_v31, %v5772_v5  ;;  %v5780_v5 = vld [vmem:[%s12746_s4 + $0x140] sm:$0xff]  ;;  %v5781_v31 = vld [vmem:[%s12746_s4 + $0x148] sm:$0xff] }
 0x39c   :  { %v11124_v51 = vpack.c.bf16 %v5767_v15, %v5766_v16  ;;  %v5774_v15 = vld [vmem:[%s12746_s4 + $0x110] sm:$0xff] }
 0x3a5   :  { %v11053_v12 = vpop.eup %9854 }
 0x3a6   :  { %v2332_v33 = vrot.slane %v11053_v12, 2  ;;  %v11057_v36 = vmax.f32 %v11053_v12, 0.0 }
 0x3a8   :  { %2399 = vmatmul.mubr.f32.vlgmr.msra.gmra.mrb[16].mxu1 %v2332_v33  ;;  %v1893_v1 = vrot.slane %v11057_v36, 2  ;;  %v1982_v16 = vrot.slane %v11057_v36, 3 }
 0x3a9   :  { %8843 = vmatpush1.bf16.msra.mxu1 %v10270_v53  ;;  %2469 = vmatprep.mubr.f32.mxu1 %v12865_v20 }
 0x3aa   :  { %7203 = vmatmul.mubr.f32.vlgmr.msra.gmra.mrb[20].mxu0 %v1893_v1  ;;  %8845 = vmatprep.subr.bf16.mxu1 %v10275_v44  ;;  %v5768_v1 = vld [vmem:[%s12746_s4 + $0xe0] sm:$0xff] }
 0x3ab   :  { %8714 = vmatpush3.bf16.msra.mxu0 %v11059_v29  ;;  %7237 = vmatprep.mubr.msk.f32.mxu0 %vm10009_vm4, %v12865_v20  ;;  %v11136_v7 = vpack.c.bf16 %v5769_v2, %v5768_v1  ;;  %v5775_v1 = vld [vmem:[%s12746_s4 + $0x118] sm:$0xff] }
 0x3ac   :  { %8715 = vmatprep.subr.bf16.mxu0 %v12869_v21  ;;  %v11177_v12 = vpack.c.bf16 %v5775_v1, %v5774_v15  ;;  %v5783_v15 = vld [vmem:[%s12746_s4 + $0x158] sm:$0xff] }
 0x3ad   :  { %8847 = vmatpush1.bf16.msra.mxu1 %v10282_v59 }
 0x3ae   :  { %8849 = vmatprep.subr.bf16.mxu1 %v10286_v60 }
 0x3af   :  { %8717 = vmatpush3.bf16.msra.mxu0 %v11074_v14 }
 0x3b0   :  { %8718 = vmatprep.subr.bf16.mxu0 %v12869_v21 }
 0x3b1   :  { %8851 = vmatpush1.bf16.msra.mxu1 %v10294_v3 }
 0x3b2   :  { %8853 = vmatprep.subr.bf16.mxu1 %v10297_v4 }
 0x3b3   :  { %8720 = vmatpush3.bf16.msra.mxu0 %v11088_v25 }
 0x3b4   :  { %8721 = vmatprep.subr.bf16.mxu0 %v12869_v21 }
 0x3b5   :  { %8855 = vmatpush1.bf16.msra.mxu1 %v10305_v10 }
 0x3b6   :  { %8857 = vmatprep.subr.bf16.mxu1 %v10308_v11 }
 0x3b7   :  { %8723 = vmatpush3.bf16.msra.mxu0 %v11100_v62 }
 0x3b8   :  { %8724 = vmatprep.subr.bf16.mxu0 %v12869_v21 }
 0x3b9   :  { %8859 = vmatpush1.bf16.msra.mxu1 %v10313_v17 }
 0x3ba   :  { %8861 = vmatprep.subr.bf16.mxu1 %v10316_v18 }
 0x3bb   :  { %8726 = vmatpush3.bf16.msra.mxu0 %v11112_v46 }
 0x3bc   :  { %8727 = vmatprep.subr.bf16.mxu0 %v12869_v21 }
 0x3bd   :  { %8863 = vmatpush1.bf16.msra.mxu1 %v10321_v26 }
 0x3be   :  { %8865 = vmatprep.subr.bf16.mxu1 %v10324_v27 }
 0x3bf   :  { %8729 = vmatpush3.bf16.msra.mxu0 %v11124_v51 }
 0x3c0   :  { %8730 = vmatprep.subr.bf16.mxu0 %v12869_v21 }
 0x3c1   :  { %8867 = vmatpush1.bf16.msra.mxu1 %v10329_v38 }
 0x3c2   :  { %8869 = vmatprep.subr.bf16.mxu1 %v10332_v39 }
 0x3c3   :  { %8732 = vmatpush3.bf16.msra.mxu0 %v11136_v7 }
 0x3c4   :  { %8733 = vmatprep.subr.bf16.mxu0 %v12869_v21 }
 0x3c5   :  { %8871 = vmatpush1.bf16.msra.mxu1 %v10335_v24 }
 0x3c6   :  { %8872 = vmatprep.subr.bf16.mxu1 %v12869_v21 }
 0x3c7   :  { %8735 = vmatpush3.bf16.msra.mxu0 %v11148_v30 }
 0x3c8   :  { %2470 = vmatmul.mubr.f32.vlgmr.msra.gmra.mrb[18].mxu1 %v2332_v33  ;;  %8736 = vmatprep.subr.bf16.mxu0 %v12869_v21  ;;  %v5776_v33 = vld [vmem:[%s12746_s4 + $0x120] sm:$0xff] }
 0x3c9   :  { %8874 = vmatpush3.bf16.msra.mxu1 %v10953_v56  ;;  %7377 = vmatprep.mubr.msk.f32.mxu1 %vm10009_vm4, %v12865_v20  ;;  %v5777_v56 = vld [vmem:[%s12746_s4 + $0x128] sm:$0xff] }
 0x3ca   :  { %7238 = vmatmul.mubr.f32.vlgmr.msra.gmra.mrb[20].mxu0 %v1982_v16  ;;  %8875 = vmatprep.subr.bf16.mxu1 %v12869_v21  ;;  %v11191_v2 = vpack.c.bf16 %v5777_v56, %v5776_v33  ;;  %v5782_v16 = vld [vmem:[%s12746_s4 + $0x150] sm:$0xff] }
 0x3cb   :  { %8738 = vmatpush3.bf16.msra.mxu0 %v11160_v41  ;;  %7272 = vmatprep.mubr.msk.f32.mxu0 %vm10009_vm4, %v12865_v20  ;;  %v11228_v56 = vpack.c.bf16 %v5783_v15, %v5782_v16  ;;  %v5789_v16 = vld [vmem:[%s12746_s4 + $0x188] sm:$0xff]  ;;  %v2071_v15 = vrot.slane %v11057_v36, 4 }
 0x3cc   :  { %8739 = vmatprep.subr.bf16.mxu0 %v12869_v21 }
 0x3cd   :  { %8877 = vmatpush3.bf16.msra.mxu1 %v10966_v54  ;;  %v11203_v54 = vpack.c.bf16 %v5779_v19, %v5778_v61  ;;  %v5784_v61 = vld [vmem:[%s12746_s4 + $0x160] sm:$0xff]  ;;  %v5786_v19 = vld [vmem:[%s12746_s4 + $0x170] sm:$0xff] }
 0x3ce   :  { %8878 = vmatprep.subr.bf16.mxu1 %v12869_v21 }
 0x3cf   :  { %8741 = vmatpush3.bf16.msra.mxu0 %v11177_v12 }
 0x3d0   :  { %8742 = vmatprep.subr.bf16.mxu0 %v12869_v21 }
 0x3d1   :  { %8880 = vmatpush3.bf16.msra.mxu1 %v10978_v40  ;;  %v11215_v40 = vpack.c.bf16 %v5781_v31, %v5780_v5  ;;  %v5787_v5 = vld [vmem:[%s12746_s4 + $0x178] sm:$0xff]  ;;  %v5788_v31 = vld [vmem:[%s12746_s4 + $0x180] sm:$0xff] }
 0x3d2   :  { %8881 = vmatprep.subr.bf16.mxu1 %v12869_v21 }
 0x3d3   :  { %8744 = vmatpush3.bf16.msra.mxu0 %v11191_v2 }
 0x3d4   :  { %8745 = vmatprep.subr.bf16.mxu0 %v12869_v21 }
 0x3d5   :  { %8883 = vmatpush3.bf16.msra.mxu1 %v10990_v42 }
 0x3d6   :  { %8884 = vmatprep.subr.bf16.mxu1 %v12869_v21 }
 0x3d7   :  { %8747 = vmatpush3.bf16.msra.mxu0 %v11203_v54 }
 0x3d8   :  { %8748 = vmatprep.subr.bf16.mxu0 %v12869_v21 }
 0x3d9   :  { %8886 = vmatpush3.bf16.msra.mxu1 %v11002_v8  ;;  %v5785_v8 = vld [vmem:[%s12746_s4 + $0x168] sm:$0xff] }
 0x3da   :  { %v1674_v1 = vpop.f32.mrb[14].mxu1  ;;  %8887 = vmatprep.subr.bf16.mxu1 %v12869_v21 }
 0x3db   :  { %8750 = vmatpush3.bf16.msra.mxu0 %v11215_v40  ;;  %v9729_v42 = vadd.f32 %v1674_v1, %v10896_v6  ;;  %v7169_v33 = vpop.f32.mrb[15].mxu1  ;;  %v11241_v6 = vpack.c.bf16 %v5785_v8, %v5784_v61  ;;  %v5790_v1 = vld [vmem:[%s12746_s4 + $0x190] sm:$0xff]  ;;  %v5793_v61 = vld [vmem:[%s12746_s4 + $0x1a8] sm:$0xff] }
 0x3dc   :  { %8751 = vmatprep.subr.bf16.mxu0 %v12869_v21  ;;  %v5792_v33 = vld [vmem:[%s12746_s4 + $0x1a0] sm:$0xff] }
 0x3dd   :  { %1679 = vst.msk [vmem:[#allocation6 + $0x1] sm:$0x1] %vm1019_vm7, %v9729_v42  ;;  %8889 = vmatpush3.bf16.msra.mxu1 %v11017_v52  ;;  %v11253_v52 = vpack.c.bf16 %v5787_v5, %v5786_v19  ;;  %v5791_v42 = vld [vmem:[%s12746_s4 + $0x198] sm:$0xff]  ;;  %v11288_v8 = vpack.c.bf16 %v5793_v61, %v5792_v33  ;;  %v5794_v19 = vld [vmem:[%s12746_s4 + $0x1b0] sm:$0xff] }
 0x3de   :  { %8890 = vmatprep.subr.bf16.mxu1 %v12869_v21  ;;  %v5795_v5 = vld [vmem:[%s12746_s4 + $0x1b8] sm:$0xff] }
 0x3df   :  { %8753 = vmatpush3.bf16.msra.mxu0 %v11228_v56  ;;  %v5799_v33 = vld [vmem:[%s12746_s4 + $0x1d8] sm:$0xff] }
 0x3e0   :  { %8754 = vmatprep.subr.bf16.mxu0 %v12869_v21 }
 0x3e1   :  { %8892 = vmatpush3.bf16.msra.mxu1 %v11024_v63  ;;  %v11265_v63 = vpack.c.bf16 %v5789_v16, %v5788_v31  ;;  %v11298_v31 = vpack.c.bf16 %v5795_v5, %v5794_v19  ;;  %v5796_v16 = vld [vmem:[%s12746_s4 + $0x1c0] sm:$0xff]  ;;  %v5801_v5 = vld [vmem:[%s12746_s4 + $0x1e8] sm:$0xff] }
 0x3e2   :  { %8893 = vmatprep.subr.bf16.mxu1 %v12869_v21  ;;  %v5800_v19 = vld [vmem:[%s12746_s4 + $0x1e0] sm:$0xff] }
 0x3e3   :  { %8756 = vmatpush3.bf16.msra.mxu0 %v11241_v6 }
 0x3e4   :  { %8757 = vmatprep.subr.bf16.mxu0 %v12869_v21 }
 0x3e5   :  { %8895 = vmatpush3.bf16.msra.mxu1 %v11036_v49  ;;  %v11276_v49 = vpack.c.bf16 %v5791_v42, %v5790_v1  ;;  %v5798_v42 = vld [vmem:[%s12746_s4 + $0x1d0] sm:$0xff] }
 0x3e6   :  { %8896 = vmatprep.subr.bf16.mxu1 %v12869_v21  ;;  %v11318_v61 = vpack.c.bf16 %v5799_v33, %v5798_v42  ;;  %v5803_v42 = vld [vmem:[%s12746_s4 + $0x1f8] sm:$0xff] }
 0x3e7   :  { %8759 = vmatpush3.bf16.msra.mxu0 %v11253_v52 }
 0x3e8   :  { %8760 = vmatprep.subr.bf16.mxu0 %v12869_v21  ;;  %12895 = vst [vmem:[#allocation27_spill] sm:$0xff] %v11318_v61 }
 0x3ea   :  { %7273 = vmatmul.mubr.f32.vlgmr.msra.gmra.mrb[20].mxu0 %v2071_v15  ;;  %v5797_v15 = vld [vmem:[%s12746_s4 + $0x1c8] sm:$0xff] }
 0x3eb   :  { %8762 = vmatpush3.bf16.msra.mxu0 %v11265_v63  ;;  %7307 = vmatprep.mubr.msk.f32.mxu0 %vm10009_vm4, %v12865_v20  ;;  %v11308_v1 = vpack.c.bf16 %v5797_v15, %v5796_v16  ;;  %v11328_v16 = vpack.c.bf16 %v5801_v5, %v5800_v19  ;;  %v5802_v15 = vld [vmem:[%s12746_s4 + $0x1f0] sm:$0xff]  ;;  %v5804_v19 = vld [vmem:[%s12746_s4 + $0x200] sm:$0xff]  ;;  %v5805_v5 = vld [vmem:[%s12746_s4 + $0x208] sm:$0xff] }
 0x3ec   :  { %8763 = vmatprep.subr.bf16.mxu0 %v12869_v21  ;;  %v11338_v33 = vpack.c.bf16 %v5803_v42, %v5802_v15  ;;  %v5806_v15 = vld [vmem:[%s12746_s4 + $0x210] sm:$0xff]  ;;  %v5807_v42 = vld [vmem:[%s12746_s4 + $0x218] sm:$0xff] }
 0x3ed   :  { %12894 = vst [vmem:[#allocation26_spill] sm:$0xff] %v11308_v1  ;;  %12896 = vst [vmem:[#allocation28_spill] sm:$0xff] %v11328_v16 }
 0x3ef   :  { %8765 = vmatpush3.bf16.msra.mxu0 %v11276_v49 }
 0x3f0   :  { %8766 = vmatprep.subr.bf16.mxu0 %v12869_v21 }
 0x3f3   :  { %8768 = vmatpush3.bf16.msra.mxu0 %v11288_v8 }
 0x3f4   :  { %8769 = vmatprep.subr.bf16.mxu0 %v12869_v21 }
 0x3f7   :  { %8771 = vmatpush3.bf16.msra.mxu0 %v11298_v31 }
 0x3f8   :  { %8772 = vmatprep.subr.bf16.mxu0 %v12869_v21 }
 0x3fb   :  { %8774 = vmatpush3.bf16.msra.mxu0 %v11308_v1  ;;  %v2160_v1 = vrot.slane %v11057_v36, 5 }
 0x3fc   :  { %8775 = vmatprep.subr.bf16.mxu0 %v12869_v21 }
 0x3ff   :  { %8777 = vmatpush3.bf16.msra.mxu0 %v11318_v61  ;;  %v11348_v61 = vpack.c.bf16 %v5805_v5, %v5804_v19  ;;  %v5808_v19 = vld [vmem:[%s12746_s4 + $0x220] sm:$0xff]  ;;  %v5809_v5 = vld [vmem:[%s12746_s4 + $0x228] sm:$0xff] }
 0x400   :  { %8778 = vmatprep.subr.bf16.mxu0 %v12869_v21 }
 0x401   :  { %12897 = vst [vmem:[#allocation29_spill] sm:$0xff] %v11348_v61 }
 0x403   :  { %8780 = vmatpush3.bf16.msra.mxu0 %v11328_v16  ;;  %v11359_v16 = vpack.c.bf16 %v5807_v42, %v5806_v15  ;;  %v5810_v15 = vld [vmem:[%s12746_s4 + $0x230] sm:$0xff]  ;;  %v5811_v42 = vld [vmem:[%s12746_s4 + $0x238] sm:$0xff] }
 0x404   :  { %8781 = vmatprep.subr.bf16.mxu0 %v12869_v21 }
 0x405   :  { %12898 = vst [vmem:[#allocation30_spill] sm:$0xff] %v11359_v16 }
 0x407   :  { %8783 = vmatpush3.bf16.msra.mxu0 %v11338_v33 }
 0x408   :  { %8784 = vmatprep.subr.bf16.mxu0 %v12869_v21 }
 0x40a   :  { %7308 = vmatmul.mubr.f32.vlgmr.msra.gmra.mrb[20].mxu0 %v2160_v1  ;;  %v11371_v1 = vpack.c.bf16 %v5809_v5, %v5808_v19  ;;  %v5812_v19 = vld [vmem:[%s12746_s4 + $0x240] sm:$0xff]  ;;  %v5813_v5 = vld [vmem:[%s12746_s4 + $0x248] sm:$0xff] }
 0x40b   :  { %8786 = vmatpush3.bf16.msra.mxu0 %v11348_v61  ;;  %7342 = vmatprep.mubr.msk.f32.mxu0 %vm10009_vm4, %v12865_v20  ;;  %v11381_v61 = vpack.c.bf16 %v5811_v42, %v5810_v15  ;;  %v5814_v15 = vld [vmem:[%s12746_s4 + $0x250] sm:$0xff]  ;;  %v5815_v42 = vld [vmem:[%s12746_s4 + $0x258] sm:$0xff] }
 0x40c   :  { %8787 = vmatprep.subr.bf16.mxu0 %v12869_v21  ;;  %12899 = vst [vmem:[#allocation31_spill] sm:$0xff] %v11371_v1 }
 0x40d   :  { %12900 = vst [vmem:[#allocation32_spill] sm:$0xff] %v11381_v61 }
 0x40f   :  { %8789 = vmatpush3.bf16.msra.mxu0 %v11359_v16  ;;  %v11391_v16 = vpack.c.bf16 %v5813_v5, %v5812_v19  ;;  %v5816_v19 = vld [vmem:[%s12746_s4 + $0x260] sm:$0xff]  ;;  %v5817_v5 = vld [vmem:[%s12746_s4 + $0x268] sm:$0xff] }
 0x410   :  { %8790 = vmatprep.subr.bf16.mxu0 %v12869_v21 }
 0x411   :  { %12901 = vst [vmem:[#allocation33_spill] sm:$0xff] %v11391_v16 }
 0x413   :  { %8792 = vmatpush3.bf16.msra.mxu0 %v11371_v1  ;;  %v11401_v1 = vpack.c.bf16 %v5815_v42, %v5814_v15  ;;  %v5818_v15 = vld [vmem:[%s12746_s4 + $0x270] sm:$0xff]  ;;  %v5819_v42 = vld [vmem:[%s12746_s4 + $0x278] sm:$0xff] }
 0x414   :  { %8793 = vmatprep.subr.bf16.mxu0 %v12869_v21 }
 0x417   :  { %8795 = vmatpush3.bf16.msra.mxu0 %v11381_v61  ;;  %v11411_v61 = vpack.c.bf16 %v5817_v5, %v5816_v19  ;;  %v2249_v19 = vrot.slane %v11057_v36, 6 }
 0x418   :  { %8796 = vmatprep.subr.bf16.mxu0 %v12869_v21 }
 0x41b   :  { %8798 = vmatpush3.bf16.msra.mxu0 %v11391_v16  ;;  %v11421_v16 = vpack.c.bf16 %v5819_v42, %v5818_v15  ;;  %v2324_v42 = vld [vmem:[#allocation2 + $0x28] sm:$0x80] }
 0x41c   :  { %8799 = vmatprep.subr.bf16.mxu0 %v12869_v21 }
 0x41f   :  { %8801 = vmatpush3.bf16.msra.mxu0 %v11401_v1 }
 0x420   :  { %8802 = vmatprep.subr.bf16.mxu0 %v12869_v21 }
 0x423   :  { %8804 = vmatpush3.bf16.msra.mxu0 %v11411_v61 }
 0x424   :  { %8805 = vmatprep.subr.bf16.mxu0 %v12869_v21 }
 0x427   :  { %8807 = vmatpush3.bf16.msra.mxu0 %v11421_v16 }
 0x428   :  { %8993 = vmatprep.subr.bf16.mxu0 %v10115_v28 }
 0x42a   :  { %7343 = vmatmul.mubr.f32.vlgmr.msra.gmra.mrb[20].mxu0 %v2249_v19  ;;  %v2328_v19 = vld [vmem:[#allocation2 + $0x48] sm:$0xf] }
 0x42b   :  { %8995 = vmatpush1.bf16.msra.mxu0 %v12878_v22  ;;  %3064 = vmatprep.mubr.f32.mxu0 %v12865_v20 }
 0x42c   :  { %8997 = vmatprep.subr.bf16.mxu0 %v12879_v0 }
 0x42f   :  { %8999 = vmatpush1.bf16.msra.mxu0 %v12880_v57 }
 0x430   :  { %9001 = vmatprep.subr.bf16.mxu0 %v12881_v37 }
 0x433   :  { %9003 = vmatpush1.bf16.msra.mxu0 %v12882_v9  ;;  %v2327_v9 = vld [vmem:[#allocation2 + $0x40] sm:$0xf] }
 0x434   :  { %9005 = vmatprep.subr.bf16.mxu0 %v12883_v32  ;;  %v2323_v32 = vld [vmem:[#allocation2 + $0x20] sm:$0x80] }
 0x437   :  { %9007 = vmatpush1.bf16.msra.mxu0 %v12884_v58 }
 0x438   :  { %9009 = vmatprep.subr.bf16.mxu0 %v12885_v48 }
 0x43b   :  { %9011 = vmatpush1.bf16.msra.mxu0 %v12886_v35 }
 0x43c   :  { %9013 = vmatprep.subr.bf16.mxu0 %v12887_v50 }
 0x43f   :  { %9015 = vmatpush1.bf16.msra.mxu0 %v12888_v23 }
 0x440   :  { %9017 = vmatprep.subr.bf16.mxu0 %v12889_v47 }
 0x443   :  { %9019 = vmatpush1.bf16.msra.mxu0 %v12890_v13 }
 0x444   :  { %9021 = vmatprep.subr.bf16.mxu0 %v12891_v45 }
 0x447   :  { %9023 = vmatpush1.bf16.msra.mxu0 %v12892_v43 }
 0x448   :  { %9025 = vmatprep.subr.bf16.mxu0 %v12893_v55 }
 0x47b   :  { %v2400_v36 = vpop.f32.mrb[16].mxu1 }
 0x47c   :  { %v2402_v5 = vpop.f32.mrb[17].mxu1  ;;  %v2480_v47 = vrot.slane %v2400_v36, 1  ;;  %v2325_v36 = vld [vmem:[#allocation2 + $0x30] sm:$0x80] }
 0x47d   :  { %v2481_v15 = vrot.slane %v2402_v5, 1  ;;  %v2523_v5 = vrot.slane %v11044_v34, 3 }
 0x47e   :  { %v2488_v43 = vadd.f32 %v2480_v47, %v2323_v32  ;;  %v2492_v55 = vadd.f32 %v2480_v47, %v2327_v9  ;;  %v2330_v9 = vld [vmem:[#allocation2 + $0x58] sm:$0xf] }
 0x47f   :  { %v2489_v35 = vadd.f32 %v2481_v15, %v2324_v42  ;;  %v2493_v48 = vadd.f32 %v2481_v15, %v2328_v19  ;;  %v2329_v19 = vld [vmem:[#allocation2 + $0x50] sm:$0xf] }
 0x480   :  { %v2496_v42 = vmul.f32 0.5, %v2488_v43 }
 0x481   :  { %v2504_v50 = vmul.f32 0.5, %v2489_v35  ;;  %v2505_v58 = vmul.f32 0.5, %v2493_v48  ;;  %v2497_v35 = vmul.f32 0.5, %v2492_v55 }
 0x483   :  { %9856 = vtanh.f32 %v2504_v50 }
 0x484   :  { %9858 = vtanh.f32 %v2505_v58 }
 0x485   :  { %9860 = vtanh.f32 %v2496_v42 }
 0x486   :  { %9862 = vtanh.f32 %v2497_v35 }
 0x48d   :  { %v9857_v23 = vpop.eup %9856 }
 0x48e   :  { %v9859_v13 = vpop.eup %9858  ;;  %v2508_v45 = vmul.f32 0.5, %v9857_v23 }
 0x48f   :  { %v2509_v37 = vmul.f32 0.5, %v9859_v13  ;;  %v2326_v13 = vld [vmem:[#allocation2 + $0x38] sm:$0x80] }
 0x490   :  { %v2510_v57 = vadd.f32 0.5, %v2508_v45 }
 0x491   :  { %v2511_v0 = vadd.f32 0.5, %v2509_v37 }
 0x492   :  { %v2525_v22 = vmul.f32 %v2523_v5, %v2510_v57  ;;  %v9861_v57 = vpop.eup %9860 }
 0x493   :  { %v2526_v15 = vmul.f32 %v2523_v5, %v2511_v0  ;;  %v9863_v37 = vpop.eup %9862  ;;  %v2500_v55 = vmul.f32 0.5, %v9861_v57 }
 0x494   :  { %v2501_v34 = vmul.f32 0.5, %v9863_v37 }
 0x495   :  { %v2502_v5 = vadd.f32 0.5, %v2500_v55 }
 0x496   :  { %v2503_v35 = vadd.f32 0.5, %v2501_v34 }
 0x49b   :  { %v2471_v58 = vpop.f32.mrb[18].mxu1 }
 0x49c   :  { %v2482_v48 = vrot.slane %v2471_v58, 1  ;;  %v2473_v50 = vpop.f32.mrb[19].mxu1 }
 0x49d   :  { %v2483_v23 = vrot.slane %v2473_v50, 1 }
 0x49e   :  { %v2490_v28 = vadd.f32 %v2482_v48, %v2325_v36  ;;  %v2494_v32 = vadd.f32 %v2482_v48, %v2329_v19 }
 0x49f   :  { %v2491_v47 = vadd.f32 %v2483_v23, %v2326_v13  ;;  %v2495_v45 = vadd.f32 %v2483_v23, %v2330_v9 }
 0x4a0   :  { %9864 = vtanh.f32 %v2490_v28 }
 0x4a1   :  { %9866 = vtanh.f32 %v2494_v32  ;;  %v2514_v0 = vmul.f32 0.5, %v2491_v47  ;;  %v2515_v43 = vmul.f32 0.5, %v2495_v45 }
 0x4a3   :  { %9868 = vtanh.f32 %v2514_v0 }
 0x4a4   :  { %9870 = vtanh.f32 %v2515_v43 }
 0x4aa   :  { %v9865_v42 = vpop.eup %9864 }
 0x4ab   :  { %v9867_v58 = vpop.eup %9866  ;;  %v2527_v50 = vmul.f32 %v9865_v42, %v2502_v5 }
 0x4ac   :  { %v2528_v48 = vmul.f32 %v9867_v58, %v2503_v35 }
 0x4ad   :  { %v2529_v36 = vadd.f32 %v2527_v50, %v2525_v22  ;;  %v9869_v32 = vpop.eup %9868 }
 0x4ae   :  { %v11445_v19 = vadd.f32 %v2528_v48, %v2526_v15  ;;  %v9871_v13 = vpop.eup %9870  ;;  %v2518_v47 = vmul.f32 0.5, %v9869_v32  ;;  %v3212_v48 = vld [vmem:[%s12746_s4 + $0x18] sm:$0xff]  ;;  %v12915_v32 = vld [vmem:[#allocation14_spill] sm:$0xff] }
 0x4af   :  { %9872 = vtanh.f32 %v2529_v36  ;;  %v3190_v28 = vrot.slane %v2529_v36, 3  ;;  %v2519_v45 = vmul.f32 0.5, %v9871_v13  ;;  %v3213_v13 = vld [vmem:[%s12746_s4 + $0x20] sm:$0xff] }
 0x4b0   :  { %9874 = vtanh.f32 %v11445_v19  ;;  %v12819_v23 = vrot.slane %v11445_v19, 3  ;;  %v2520_v57 = vadd.f32 0.5, %v2518_v47  ;;  %v3214_v47 = vld [vmem:[%s12746_s4 + $0x28] sm:$0xff] }
 0x4b1   :  { %v2521_v22 = vadd.f32 0.5, %v2519_v45  ;;  %v11590_v45 = vpack.c.bf16 %v3214_v47, %v3213_v13 }
 0x4b2   :  { %v11452_v9 = vsel %vm1864_vm5, %v3190_v28, %v12819_v23  ;;  %v12914_v28 = vld [vmem:[#allocation13_spill] sm:$0xff] }
 0x4b9   :  { %v9873_v37 = vpop.eup %9872 }
 0x4ba   :  { %v9875_v15 = vpop.eup %9874  ;;  %v2533_v0 = vmul.f32 %v9873_v37, %v2520_v57  ;;  %v12916_v57 = vld [vmem:[#allocation15_spill] sm:$0xff]  ;;  %v12917_v37 = vld [vmem:[#allocation16_spill] sm:$0xff] }
 0x4bb   :  { %v2534_v43 = vmul.f32 %v9875_v15, %v2521_v22  ;;  %v3215_v22 = vld [vmem:[%s12746_s4 + $0x30] sm:$0xff]  ;;  %v3216_v15 = vld [vmem:[%s12746_s4 + $0x38] sm:$0xff] }
 0x4bc   :  { %9876 = vtanh.f32 %v2533_v0  ;;  %v11602_v0 = vpack.c.bf16 %v3216_v15, %v3215_v22 }
 0x4bd   :  { %9878 = vtanh.f32 %v2534_v43  ;;  %v12918_v43 = vld [vmem:[#allocation17_spill] sm:$0xff] }
 0x4c6   :  { %v9877_v55 = vpop.eup %9876 }
 0x4c7   :  { %v9879_v34 = vpop.eup %9878  ;;  %v2996_v5 = vrot.slane %v9877_v55, 7  ;;  %v2537_v42 = vmax.f32 %v9877_v55, 0.0  ;;  %v12919_v55 = vld [vmem:[#allocation18_spill] sm:$0xff] }
 0x4c8   :  { %v2997_v35 = vrot.slane %v9879_v34, 7 }
 0x4c9   :  { %v2556_v58 = vrot.slane %v2537_v42, 7 }
 0x4ca   :  { %v2998_v50 = vsel %vm2995_vm8, %v2996_v5, %v2997_v35  ;;  %v3218_v5 = vld [vmem:[%s12746_s4 + $0x48] sm:$0xff]  ;;  %v12920_v35 = vld [vmem:[#allocation19_spill] sm:$0xff] }
 0x4cb   :  { %3065 = vmatmul.mubr.f32.vlgmr.msra.gmra.mrb[22].mxu0 %v2998_v50  ;;  %7378 = vmatmul.mubr.f32.vlgmr.msra.gmra.mrb[20].mxu1 %v2556_v58  ;;  %v12921_v58 = vld [vmem:[#allocation20_spill] sm:$0xff] }
 0x4cc   :  { %9027 = vmatpush1.bf16.msra.mxu0 %v10270_v53  ;;  %8898 = vmatpush3.bf16.msra.mxu1 %v11059_v29  ;;  %v11487_v29 = vmax.f32 %v9879_v34, 0.0  ;;  %v3217_v34 = vld [vmem:[%s12746_s4 + $0x40] sm:$0xff] }
 0x4cd   :  { %9029 = vmatprep.subr.bf16.mxu0 %v10275_v44  ;;  %8899 = vmatprep.subr.bf16.mxu1 %v12869_v21  ;;  %v11614_v42 = vpack.c.bf16 %v3218_v5, %v3217_v34 }
 0x4ce   :  { %3135 = vmatprep.mubr.f32.mxu0 %v12865_v20  ;;  %7412 = vmatprep.mubr.msk.f32.mxu1 %vm10009_vm4, %v12865_v20 }
 0x4d0   :  { %9031 = vmatpush1.bf16.msra.mxu0 %v10282_v59  ;;  %8901 = vmatpush3.bf16.msra.mxu1 %v11074_v14 }
 0x4d1   :  { %9033 = vmatprep.subr.bf16.mxu0 %v10286_v60  ;;  %8902 = vmatprep.subr.bf16.mxu1 %v12869_v21 }
 0x4d4   :  { %9035 = vmatpush1.bf16.msra.mxu0 %v10294_v3  ;;  %8904 = vmatpush3.bf16.msra.mxu1 %v11088_v25  ;;  %v11509_v25 = vld [vmem:[%s12747_s5] sm:$0x1] }
 0x4d5   :  { %9037 = vmatprep.subr.bf16.mxu0 %v10297_v4  ;;  %8905 = vmatprep.subr.bf16.mxu1 %v12869_v21 }
 0x4d8   :  { %9039 = vmatpush1.bf16.msra.mxu0 %v10305_v10  ;;  %8907 = vmatpush3.bf16.msra.mxu1 %v11100_v62 }
 0x4d9   :  { %9041 = vmatprep.subr.bf16.mxu0 %v10308_v11  ;;  %8908 = vmatprep.subr.bf16.mxu1 %v12869_v21 }
 0x4dc   :  { %9043 = vmatpush1.bf16.msra.mxu0 %v10313_v17  ;;  %8910 = vmatpush3.bf16.msra.mxu1 %v11112_v46 }
 0x4dd   :  { %9045 = vmatprep.subr.bf16.mxu0 %v10316_v18  ;;  %8911 = vmatprep.subr.bf16.mxu1 %v12869_v21 }
 0x4e0   :  { %9047 = vmatpush1.bf16.msra.mxu0 %v10321_v26  ;;  %8913 = vmatpush3.bf16.msra.mxu1 %v11124_v51  ;;  %v2733_v51 = vrot.slane %v11487_v29, 1 }
 0x4e1   :  { %9049 = vmatprep.subr.bf16.mxu0 %v10324_v27  ;;  %8914 = vmatprep.subr.bf16.mxu1 %v12869_v21 }
 0x4e4   :  { %9051 = vmatpush1.bf16.msra.mxu0 %v10329_v38  ;;  %8916 = vmatpush3.bf16.msra.mxu1 %v11136_v7  ;;  %v12902_v7 = vld [vmem:[#allocation26_spill] sm:$0xff] }
 0x4e5   :  { %9053 = vmatprep.subr.bf16.mxu0 %v10332_v39  ;;  %8917 = vmatprep.subr.bf16.mxu1 %v12869_v21 }
 0x4e8   :  { %9055 = vmatpush1.bf16.msra.mxu0 %v10335_v24  ;;  %8919 = vmatpush3.bf16.msra.mxu1 %v11148_v30  ;;  %v12903_v30 = vld [vmem:[#allocation27_spill] sm:$0xff] }
 0x4e9   :  { %8920 = vmatprep.subr.bf16.mxu1 %v12869_v21  ;;  %9056 = vmatprep.subr.bf16.mxu0 %v12869_v21 }
 0x4eb   :  { %3136 = vmatmul.mubr.f32.vlgmr.msra.gmra.mrb[24].mxu0 %v2998_v50  ;;  %7413 = vmatmul.mubr.f32.vlgmr.msra.gmra.mrb[20].mxu1 %v11487_v29  ;;  %v3219_v50 = vld [vmem:[%s12746_s4 + $0x50] sm:$0xff] }
 0x4ec   :  { %8922 = vmatpush3.bf16.msra.mxu1 %v11160_v41  ;;  %7447 = vmatprep.mubr.msk.f32.mxu1 %vm10009_vm4, %v12865_v20  ;;  %v12904_v41 = vld [vmem:[#allocation28_spill] sm:$0xff] }
 0x4ed   :  { %8923 = vmatprep.subr.bf16.mxu1 %v12869_v21  ;;  %7552 = vmatprep.mubr.msk.f32.mxu0 %vm10009_vm4, %v12865_v20 }
 0x4f0   :  { %8925 = vmatpush3.bf16.msra.mxu1 %v11177_v12  ;;  %v2822_v12 = vrot.slane %v11487_v29, 2 }
 0x4f1   :  { %8926 = vmatprep.subr.bf16.mxu1 %v12869_v21 }
 0x4f4   :  { %8928 = vmatpush3.bf16.msra.mxu1 %v11191_v2  ;;  %v12905_v2 = vld [vmem:[#allocation29_spill] sm:$0xff] }
 0x4f5   :  { %8929 = vmatprep.subr.bf16.mxu1 %v12869_v21 }
 0x4f8   :  { %8931 = vmatpush3.bf16.msra.mxu1 %v11203_v54  ;;  %v12906_v54 = vld [vmem:[#allocation30_spill] sm:$0xff] }
 0x4f9   :  { %8932 = vmatprep.subr.bf16.mxu1 %v12869_v21 }
 0x4fc   :  { %8934 = vmatpush3.bf16.msra.mxu1 %v11215_v40  ;;  %v12907_v40 = vld [vmem:[#allocation31_spill] sm:$0xff] }
 0x4fd   :  { %v2317_v14 = vpop.f32.mrb[20].mxu0  ;;  %8935 = vmatprep.subr.bf16.mxu1 %v12869_v21 }
 0x4fe   :  { %v9730_v62 = vadd.f32 %v11509_v25, %v2317_v14  ;;  %v7344_v46 = vpop.f32.mrb[21].mxu0  ;;  %v3221_v14 = vld [vmem:[%s12746_s4 + $0x60] sm:$0xff] }
 0x4ff   :  { %v12922_v46 = vld [vmem:[#allocation21_spill] sm:$0xff] }
 0x500   :  { %2322 = vst.msk [vmem:[#allocation6 + $0x2] sm:$0x1] %vm1019_vm7, %v9730_v62  ;;  %8937 = vmatpush3.bf16.msra.mxu1 %v11228_v56  ;;  %v12908_v56 = vld [vmem:[#allocation32_spill] sm:$0xff] }
 0x501   :  { %8938 = vmatprep.subr.bf16.mxu1 %v12869_v21 }
 0x504   :  { %8940 = vmatpush3.bf16.msra.mxu1 %v11241_v6  ;;  %v12909_v6 = vld [vmem:[#allocation33_spill] sm:$0xff] }
 0x505   :  { %8941 = vmatprep.subr.bf16.mxu1 %v12869_v21 }
 0x508   :  { %8943 = vmatpush3.bf16.msra.mxu1 %v11253_v52  ;;  %v2911_v52 = vrot.slane %v11487_v29, 3  ;;  %v3220_v29 = vld [vmem:[%s12746_s4 + $0x58] sm:$0xff] }
 0x509   :  { %8944 = vmatprep.subr.bf16.mxu1 %v12869_v21  ;;  %v11629_v62 = vpack.c.bf16 %v3220_v29, %v3219_v50  ;;  %v2985_v50 = vld [vmem:[#allocation2 + $0x40] sm:$0xf0] }
 0x50b   :  { %7448 = vmatmul.mubr.f32.vlgmr.msra.gmra.mrb[20].mxu1 %v2733_v51  ;;  %v3222_v51 = vld [vmem:[%s12746_s4 + $0x68] sm:$0xff] }
 0x50c   :  { %8946 = vmatpush3.bf16.msra.mxu1 %v11265_v63  ;;  %7482 = vmatprep.mubr.msk.f32.mxu1 %vm10009_vm4, %v12865_v20  ;;  %v12910_v63 = vld [vmem:[#allocation9_spill] sm:$0xff] }
 0x50d   :  { %8947 = vmatprep.subr.bf16.mxu1 %v12869_v21 }
 0x510   :  { %8949 = vmatpush3.bf16.msra.mxu1 %v11276_v49  ;;  %v12911_v49 = vld [vmem:[#allocation10_spill] sm:$0xff] }
 0x511   :  { %8950 = vmatprep.subr.bf16.mxu1 %v12869_v21 }
 0x514   :  { %8952 = vmatpush3.bf16.msra.mxu1 %v11288_v8  ;;  %v3209_v8 = vld [vmem:[%s12746_s4] sm:$0xff] }
 0x515   :  { %8953 = vmatprep.subr.bf16.mxu1 %v12869_v21 }
 0x518   :  { %8955 = vmatpush3.bf16.msra.mxu1 %v11298_v31  ;;  %v3210_v31 = vld [vmem:[%s12746_s4 + $0x8] sm:$0xff] }
 0x519   :  { %8956 = vmatprep.subr.bf16.mxu1 %v12869_v21 }
 0x51c   :  { %8958 = vmatpush3.bf16.msra.mxu1 %v12902_v7  ;;  %v11636_v7 = vpack.c.bf16 %v3222_v51, %v3221_v14  ;;  %v2989_v14 = vld [vmem:[#allocation2 + $0x60] sm:$0x1] }
 0x51d   :  { %8959 = vmatprep.subr.bf16.mxu1 %v12869_v21 }
 0x520   :  { %8961 = vmatpush3.bf16.msra.mxu1 %v12903_v30  ;;  %v12923_v30 = vld [vmem:[#allocation22_spill] sm:$0xff] }
 0x521   :  { %8962 = vmatprep.subr.bf16.mxu1 %v12869_v21 }
 0x524   :  { %8964 = vmatpush3.bf16.msra.mxu1 %v12904_v41  ;;  %v3223_v41 = vld [vmem:[%s12746_s4 + $0x70] sm:$0xff] }
 0x525   :  { %8965 = vmatprep.subr.bf16.mxu1 %v12869_v21 }
 0x528   :  { %8967 = vmatpush3.bf16.msra.mxu1 %v11338_v33  ;;  %v12913_v33 = vld [vmem:[#allocation12_spill] sm:$0xff] }
 0x529   :  { %8968 = vmatprep.subr.bf16.mxu1 %v12869_v21 }
 0x52b   :  { %7483 = vmatmul.mubr.f32.vlgmr.msra.gmra.mrb[20].mxu1 %v2822_v12  ;;  %v3224_v12 = vld [vmem:[%s12746_s4 + $0x78] sm:$0xff] }
 0x52c   :  { %8970 = vmatpush3.bf16.msra.mxu1 %v12905_v2  ;;  %7517 = vmatprep.mubr.msk.f32.mxu1 %vm10009_vm4, %v12865_v20  ;;  %v12924_v2 = vld [vmem:[#allocation23_spill] sm:$0xff] }
 0x52d   :  { %8971 = vmatprep.subr.bf16.mxu1 %v12869_v21 }
 0x530   :  { %8973 = vmatpush3.bf16.msra.mxu1 %v12906_v54  ;;  %v11648_v54 = vpack.c.bf16 %v3224_v12, %v3223_v41 }
 0x531   :  { %8974 = vmatprep.subr.bf16.mxu1 %v12869_v21 }
 0x534   :  { %8976 = vmatpush3.bf16.msra.mxu1 %v12907_v40  ;;  %v12925_v40 = vld [vmem:[#allocation24_spill] sm:$0xff] }
 0x535   :  { %8977 = vmatprep.subr.bf16.mxu1 %v12869_v21 }
 0x538   :  { %8979 = vmatpush3.bf16.msra.mxu1 %v12908_v56  ;;  %v12926_v56 = vld [vmem:[#allocation25_spill] sm:$0xff] }
 0x539   :  { %8980 = vmatprep.subr.bf16.mxu1 %v12869_v21 }
 0x53c   :  { %8982 = vmatpush3.bf16.msra.mxu1 %v12909_v6 }
 0x53d   :  { %8983 = vmatprep.subr.bf16.mxu1 %v12869_v21 }
 0x540   :  { %8985 = vmatpush3.bf16.msra.mxu1 %v11401_v1  ;;  %v3211_v1 = vld [vmem:[%s12746_s4 + $0x10] sm:$0xff] }
 0x541   :  { %8986 = vmatprep.subr.bf16.mxu1 %v12869_v21  ;;  %v11578_v36 = vpack.c.bf16 %v3212_v48, %v3211_v1  ;;  %v2990_v1 = vld [vmem:[#allocation2 + $0x68] sm:$0x1] }
 0x544   :  { %8988 = vmatpush3.bf16.msra.mxu1 %v11411_v61  ;;  %v11566_v61 = vpack.c.bf16 %v3210_v31, %v3209_v8  ;;  %v2986_v31 = vld [vmem:[#allocation2 + $0x48] sm:$0xf0] }
 0x545   :  { %8989 = vmatprep.subr.bf16.mxu1 %v12869_v21 }
 0x546   :  { %9058 = vmatpush3.bf16.msra.mxu0 %v11566_v61 }
 0x547   :  { %9059 = vmatprep.subr.bf16.mxu0 %v12869_v21 }
 0x548   :  { %8991 = vmatpush3.bf16.msra.mxu1 %v11421_v16  ;;  %v12912_v16 = vld [vmem:[#allocation11_spill] sm:$0xff] }
 0x549   :  { %9177 = vmatprep.subr.bf16.mxu1 %v12910_v63 }
 0x54a   :  { %9061 = vmatpush3.bf16.msra.mxu0 %v11578_v36 }
 0x54b   :  { %7518 = vmatmul.mubr.f32.vlgmr.msra.gmra.mrb[20].mxu1 %v2911_v52  ;;  %9062 = vmatprep.subr.bf16.mxu0 %v12869_v21 }
 0x54c   :  { %9179 = vmatpush1.bf16.msra.mxu1 %v12911_v49  ;;  %3728 = vmatprep.mubr.f32.mxu1 %v12865_v20 }
 0x54d   :  { %9181 = vmatprep.subr.bf16.mxu1 %v12912_v16 }
 0x54e   :  { %9064 = vmatpush3.bf16.msra.mxu0 %v11590_v45 }
 0x54f   :  { %9065 = vmatprep.subr.bf16.mxu0 %v12869_v21 }
 0x550   :  { %9183 = vmatpush1.bf16.msra.mxu1 %v12913_v33 }
 0x551   :  { %9185 = vmatprep.subr.bf16.mxu1 %v12914_v28 }
 0x552   :  { %9067 = vmatpush3.bf16.msra.mxu0 %v11602_v0 }
 0x553   :  { %9068 = vmatprep.subr.bf16.mxu0 %v12869_v21 }
 0x554   :  { %9187 = vmatpush1.bf16.msra.mxu1 %v12915_v32 }
 0x555   :  { %9189 = vmatprep.subr.bf16.mxu1 %v12916_v57 }
 0x556   :  { %9070 = vmatpush3.bf16.msra.mxu0 %v11614_v42 }
 0x557   :  { %9071 = vmatprep.subr.bf16.mxu0 %v12869_v21 }
 0x558   :  { %9191 = vmatpush1.bf16.msra.mxu1 %v12917_v37 }
 0x559   :  { %9193 = vmatprep.subr.bf16.mxu1 %v12918_v43 }
 0x55a   :  { %9073 = vmatpush3.bf16.msra.mxu0 %v11629_v62 }
 0x55b   :  { %9074 = vmatprep.subr.bf16.mxu0 %v12869_v21 }
 0x55c   :  { %9195 = vmatpush1.bf16.msra.mxu1 %v12919_v55 }
 0x55d   :  { %9197 = vmatprep.subr.bf16.mxu1 %v12920_v35 }
 0x55e   :  { %9076 = vmatpush3.bf16.msra.mxu0 %v11636_v7 }
 0x55f   :  { %9077 = vmatprep.subr.bf16.mxu0 %v12869_v21 }
 0x560   :  { %9199 = vmatpush1.bf16.msra.mxu1 %v12921_v58 }
 0x561   :  { %9201 = vmatprep.subr.bf16.mxu1 %v12922_v46 }
 0x562   :  { %9079 = vmatpush3.bf16.msra.mxu0 %v11648_v54 }
 0x563   :  { %9080 = vmatprep.subr.bf16.mxu0 %v12869_v21 }
 0x564   :  { %9203 = vmatpush1.bf16.msra.mxu1 %v12923_v30 }
 0x565   :  { %9205 = vmatprep.subr.bf16.mxu1 %v12924_v2 }
 0x568   :  { %9207 = vmatpush1.bf16.msra.mxu1 %v12925_v40 }
 0x569   :  { %9209 = vmatprep.subr.bf16.mxu1 %v12926_v56 }
 0x59e   :  { %v3066_v6 = vpop.f32.mrb[22].mxu0 }
 0x59f   :  { %v3068_v52 = vpop.f32.mrb[23].mxu0  ;;  %v3146_v15 = vrot.slane %v3066_v6, 4 }
 0x5a0   :  { %v3147_v8 = vrot.slane %v3068_v52, 4 }
 0x5a1   :  { %v3154_v51 = vadd.f32 %v3146_v15, %v2985_v50  ;;  %v3158_v12 = vadd.f32 %v3146_v15, %v2989_v14  ;;  %v2988_v15 = vld [vmem:[#allocation2 + $0x58] sm:$0xf0] }
 0x5a2   :  { %v3155_v48 = vadd.f32 %v3147_v8, %v2986_v31  ;;  %v3159_v13 = vadd.f32 %v3147_v8, %v2990_v1  ;;  %v12927_v8 = vrot.slane %v11445_v19, 3 }
 0x5a3   :  { %v3162_v40 = vmul.f32 0.5, %v3154_v51  ;;  %v3163_v1 = vmul.f32 0.5, %v3158_v12 }
 0x5a4   :  { %v3170_v47 = vmul.f32 0.5, %v3155_v48  ;;  %v3171_v22 = vmul.f32 0.5, %v3159_v13 }
 0x5a6   :  { %9880 = vtanh.f32 %v3170_v47  ;;  %v2987_v47 = vld [vmem:[#allocation2 + $0x50] sm:$0xf0] }
 0x5a7   :  { %9882 = vtanh.f32 %v3171_v22  ;;  %v2991_v22 = vld [vmem:[#allocation2 + $0x70] sm:$0x1] }
 0x5a8   :  { %9884 = vtanh.f32 %v3162_v40 }
 0x5a9   :  { %9886 = vtanh.f32 %v3163_v1 }
 0x5b0   :  { %v9881_v34 = vpop.eup %9880 }
 0x5b1   :  { %v9883_v5 = vpop.eup %9882  ;;  %v3174_v29 = vmul.f32 0.5, %v9881_v34 }
 0x5b2   :  { %v3175_v41 = vmul.f32 0.5, %v9883_v5 }
 0x5b3   :  { %v3176_v23 = vadd.f32 0.5, %v3174_v29  ;;  %v2992_v29 = vld [vmem:[#allocation2 + $0x78] sm:$0x1] }
 0x5b4   :  { %v3177_v56 = vadd.f32 0.5, %v3175_v41 }
 0x5b5   :  { %v3195_v52 = vmul.f32 %v11452_v9, %v3176_v23  ;;  %v9885_v9 = vpop.eup %9884 }
 0x5b6   :  { %v3196_v31 = vmul.f32 %v12927_v8, %v3177_v56  ;;  %v9887_v19 = vpop.eup %9886  ;;  %v3166_v40 = vmul.f32 0.5, %v9885_v9 }
 0x5b7   :  { %v3167_v41 = vmul.f32 0.5, %v9887_v19 }
 0x5b8   :  { %v3168_v12 = vadd.f32 0.5, %v3166_v40 }
 0x5b9   :  { %v3169_v1 = vadd.f32 0.5, %v3167_v41 }
 0x5be   :  { %v3137_v6 = vpop.f32.mrb[24].mxu0 }
 0x5bf   :  { %v3148_v48 = vrot.slane %v3137_v6, 4  ;;  %v3139_v13 = vpop.f32.mrb[25].mxu0 }
 0x5c0   :  { %v3149_v34 = vrot.slane %v3139_v13, 4 }
 0x5c1   :  { %v3156_v50 = vadd.f32 %v3148_v48, %v2987_v47  ;;  %v3160_v5 = vadd.f32 %v3148_v48, %v2991_v22 }
 0x5c2   :  { %v3157_v14 = vadd.f32 %v3149_v34, %v2988_v15  ;;  %v3161_v23 = vadd.f32 %v3149_v34, %v2992_v29 }
 0x5c3   :  { %9888 = vtanh.f32 %v3156_v50 }
 0x5c4   :  { %9890 = vtanh.f32 %v3160_v5  ;;  %v3180_v56 = vmul.f32 0.5, %v3157_v14  ;;  %v3181_v51 = vmul.f32 0.5, %v3161_v23 }
 0x5c6   :  { %9892 = vtanh.f32 %v3180_v56 }
 0x5c7   :  { %9894 = vtanh.f32 %v3181_v51 }
 0x5cd   :  { %v9889_v8 = vpop.eup %9888 }
 0x5ce   :  { %v9891_v6 = vpop.eup %9890  ;;  %v3197_v13 = vmul.f32 %v9889_v8, %v3168_v12 }
 0x5cf   :  { %v3198_v48 = vmul.f32 %v9891_v6, %v3169_v1 }
 0x5d0   :  { %v3199_v47 = vadd.f32 %v3197_v13, %v3195_v52  ;;  %v9893_v5 = vpop.eup %9892  ;;  %v5884_v52 = vld [vmem:[%s12746_s4 + $0x80] sm:$0xff] }
 0x5d1   :  { %v3200_v22 = vadd.f32 %v3198_v48, %v3196_v31  ;;  %v9895_v15 = vpop.eup %9894  ;;  %v3184_v14 = vmul.f32 0.5, %v9893_v5  ;;  %v5885_v31 = vld [vmem:[%s12746_s4 + $0x88] sm:$0xff] }
 0x5d2   :  { %9896 = vtanh.f32 %v3199_v47  ;;  %v3837_v50 = vrot.slane %v3199_v47, 3  ;;  %v3185_v23 = vmul.f32 0.5, %v9895_v15  ;;  %v11672_v48 = vpack.c.bf16 %v5885_v31, %v5884_v52  ;;  %v5888_v15 = vld [vmem:[%s12746_s4 + $0xa0] sm:$0xff]  ;;  %v5894_v52 = vld [vmem:[%s12746_s4 + $0xd0] sm:$0xff]  ;;  %v5895_v31 = vld [vmem:[%s12746_s4 + $0xd8] sm:$0xff] }
 0x5d3   :  { %9898 = vtanh.f32 %v3200_v22  ;;  %v3838_v34 = vrot.slane %v3200_v22, 3  ;;  %v3186_v9 = vadd.f32 0.5, %v3184_v14  ;;  %v5886_v22 = vld [vmem:[%s12746_s4 + $0x90] sm:$0xff]  ;;  %v5889_v14 = vld [vmem:[%s12746_s4 + $0xa8] sm:$0xff] }
 0x5d4   :  { %v3187_v56 = vadd.f32 0.5, %v3185_v23  ;;  %v11699_v23 = vpack.c.bf16 %v5889_v14, %v5888_v15  ;;  %v5900_v14 = vld [vmem:[%s12746_s4 + $0x100] sm:$0xff] }
 0x5d5   :  { %v11659_v29 = vsel %vm1864_vm5, %v3837_v50, %v3838_v34  ;;  %v5887_v50 = vld [vmem:[%s12746_s4 + $0x98] sm:$0xff] }
 0x5d6   :  { %v11684_v5 = vpack.c.bf16 %v5887_v50, %v5886_v22  ;;  %v5898_v22 = vld [vmem:[%s12746_s4 + $0xf0] sm:$0xff]  ;;  %v5899_v50 = vld [vmem:[%s12746_s4 + $0xf8] sm:$0xff] }
 0x5d7   :  { %v11759_v15 = vpack.c.bf16 %v5899_v50, %v5898_v22  ;;  %v5906_v22 = vld [vmem:[%s12746_s4 + $0x130] sm:$0xff]  ;;  %v5907_v50 = vld [vmem:[%s12746_s4 + $0x138] sm:$0xff] }
 0x5dc   :  { %v9897_v19 = vpop.eup %9896 }
 0x5dd   :  { %v9899_v51 = vpop.eup %9898  ;;  %v3203_v40 = vmul.f32 %v9897_v19, %v3186_v9  ;;  %v5890_v9 = vld [vmem:[%s12746_s4 + $0xb0] sm:$0xff]  ;;  %v5891_v19 = vld [vmem:[%s12746_s4 + $0xb8] sm:$0xff] }
 0x5de   :  { %v3204_v41 = vmul.f32 %v9899_v51, %v3187_v56  ;;  %v11711_v56 = vpack.c.bf16 %v5891_v19, %v5890_v9  ;;  %v5892_v51 = vld [vmem:[%s12746_s4 + $0xc0] sm:$0xff]  ;;  %v5901_v9 = vld [vmem:[%s12746_s4 + $0x108] sm:$0xff] }
 0x5df   :  { %9900 = vtanh.f32 %v3203_v40  ;;  %v5893_v40 = vld [vmem:[%s12746_s4 + $0xc8] sm:$0xff]  ;;  %v11771_v19 = vpack.c.bf16 %v5901_v9, %v5900_v14  ;;  %v5908_v14 = vld [vmem:[%s12746_s4 + $0x140] sm:$0xff] }
 0x5e0   :  { %9902 = vtanh.f32 %v3204_v41  ;;  %v11723_v41 = vpack.c.bf16 %v5893_v40, %v5892_v51  ;;  %v5902_v40 = vld [vmem:[%s12746_s4 + $0x110] sm:$0xff]  ;;  %v5909_v9 = vld [vmem:[%s12746_s4 + $0x148] sm:$0xff] }
 0x5e9   :  { %v9901_v12 = vpop.eup %9900 }
 0x5ea   :  { %v11667_v8 = vpop.eup %9902  ;;  %v3660_v1 = vrot.slane %v9901_v12, 4  ;;  %v11669_v6 = vmax.f32 %v9901_v12, 0.0  ;;  %v11735_v12 = vpack.c.bf16 %v5895_v31, %v5894_v52  ;;  %v5903_v52 = vld [vmem:[%s12746_s4 + $0x118] sm:$0xff] }
 0x5eb   :  { %v3661_v13 = vrot.slane %v11667_v8, 4  ;;  %v11783_v31 = vpack.c.bf16 %v5903_v52, %v5902_v40  ;;  %v5911_v40 = vld [vmem:[%s12746_s4 + $0x158] sm:$0xff] }
 0x5ec   :  { %v3226_v47 = vrot.slane %v11669_v6, 4  ;;  %v3315_v51 = vrot.slane %v11669_v6, 5 }
 0x5ed   :  { %v3662_v34 = vsel %vm113_vm0, %v3660_v1, %v3661_v13  ;;  %v5896_v1 = vld [vmem:[%s12746_s4 + $0xe0] sm:$0xff]  ;;  %v5897_v13 = vld [vmem:[%s12746_s4 + $0xe8] sm:$0xff] }
 0x5ee   :  { %3729 = vmatmul.mubr.f32.vlgmr.msra.gmra.mrb[22].mxu1 %v3662_v34  ;;  %7553 = vmatmul.mubr.f32.vlgmr.msra.gmra.mrb[26].mxu0 %v3226_v47  ;;  %v11747_v47 = vpack.c.bf16 %v5897_v13, %v5896_v1  ;;  %v5904_v1 = vld [vmem:[%s12746_s4 + $0x120] sm:$0xff]  ;;  %v5905_v13 = vld [vmem:[%s12746_s4 + $0x128] sm:$0xff] }
 0x5ef   :  { %9211 = vmatpush1.bf16.msra.mxu1 %v10270_v53  ;;  %9082 = vmatpush3.bf16.msra.mxu0 %v11672_v48 }
 0x5f0   :  { %9213 = vmatprep.subr.bf16.mxu1 %v10275_v44  ;;  %9083 = vmatprep.subr.bf16.mxu0 %v12869_v21 }
 0x5f1   :  { %3799 = vmatprep.mubr.f32.mxu1 %v12865_v20  ;;  %7587 = vmatprep.mubr.msk.f32.mxu0 %vm10009_vm4, %v12865_v20 }
 0x5f3   :  { %9215 = vmatpush1.bf16.msra.mxu1 %v10282_v59  ;;  %9085 = vmatpush3.bf16.msra.mxu0 %v11684_v5 }
 0x5f4   :  { %9217 = vmatprep.subr.bf16.mxu1 %v10286_v60  ;;  %9086 = vmatprep.subr.bf16.mxu0 %v12869_v21 }
 0x5f7   :  { %9219 = vmatpush1.bf16.msra.mxu1 %v10294_v3  ;;  %9088 = vmatpush3.bf16.msra.mxu0 %v11699_v23 }
 0x5f8   :  { %9221 = vmatprep.subr.bf16.mxu1 %v10297_v4  ;;  %9089 = vmatprep.subr.bf16.mxu0 %v12869_v21 }
 0x5fb   :  { %9223 = vmatpush1.bf16.msra.mxu1 %v10305_v10  ;;  %9091 = vmatpush3.bf16.msra.mxu0 %v11711_v56 }
 0x5fc   :  { %9225 = vmatprep.subr.bf16.mxu1 %v10308_v11  ;;  %9092 = vmatprep.subr.bf16.mxu0 %v12869_v21 }
 0x5ff   :  { %9227 = vmatpush1.bf16.msra.mxu1 %v10313_v17  ;;  %9094 = vmatpush3.bf16.msra.mxu0 %v11723_v41 }
 0x600   :  { %9229 = vmatprep.subr.bf16.mxu1 %v10316_v18  ;;  %9095 = vmatprep.subr.bf16.mxu0 %v12869_v21 }
 0x603   :  { %9231 = vmatpush1.bf16.msra.mxu1 %v10321_v26  ;;  %9097 = vmatpush3.bf16.msra.mxu0 %v11735_v12 }
 0x604   :  { %9233 = vmatprep.subr.bf16.mxu1 %v10324_v27  ;;  %9098 = vmatprep.subr.bf16.mxu0 %v12869_v21 }
 0x607   :  { %9235 = vmatpush1.bf16.msra.mxu1 %v10329_v38  ;;  %9100 = vmatpush3.bf16.msra.mxu0 %v11747_v47 }
 0x608   :  { %9237 = vmatprep.subr.bf16.mxu1 %v10332_v39  ;;  %9101 = vmatprep.subr.bf16.mxu0 %v12869_v21 }
 0x60b   :  { %9239 = vmatpush1.bf16.msra.mxu1 %v10335_v24  ;;  %9103 = vmatpush3.bf16.msra.mxu0 %v11759_v15 }
 0x60c   :  { %9104 = vmatprep.subr.bf16.mxu0 %v12869_v21  ;;  %9240 = vmatprep.subr.bf16.mxu1 %v12869_v21 }
 0x60e   :  { %3800 = vmatmul.mubr.f32.vlgmr.msra.gmra.mrb[24].mxu1 %v3662_v34  ;;  %7588 = vmatmul.mubr.f32.vlgmr.msra.gmra.mrb[26].mxu0 %v3315_v51  ;;  %v11799_v34 = vpack.c.bf16 %v5905_v13, %v5904_v1  ;;  %v5910_v51 = vld [vmem:[%s12746_s4 + $0x150] sm:$0xff] }
 0x60f   :  { %9106 = vmatpush3.bf16.msra.mxu0 %v11771_v19  ;;  %7622 = vmatprep.mubr.msk.f32.mxu0 %vm10009_vm4, %v12865_v20  ;;  %v11836_v13 = vpack.c.bf16 %v5911_v40, %v5910_v51  ;;  %v5917_v51 = vld [vmem:[%s12746_s4 + $0x188] sm:$0xff]  ;;  %v3404_v40 = vrot.slane %v11669_v6, 6 }
 0x610   :  { %9107 = vmatprep.subr.bf16.mxu0 %v12869_v21  ;;  %9242 = vmatpush3.bf16.msra.mxu1 %v11566_v61  ;;  %v11811_v61 = vpack.c.bf16 %v5907_v50, %v5906_v22  ;;  %v5912_v22 = vld [vmem:[%s12746_s4 + $0x160] sm:$0xff]  ;;  %v5914_v50 = vld [vmem:[%s12746_s4 + $0x170] sm:$0xff] }
 0x611   :  { %9243 = vmatprep.subr.bf16.mxu1 %v12869_v21  ;;  %7727 = vmatprep.mubr.msk.f32.mxu1 %vm10009_vm4, %v12865_v20 }
 0x613   :  { %9109 = vmatpush3.bf16.msra.mxu0 %v11783_v31 }
 0x614   :  { %9110 = vmatprep.subr.bf16.mxu0 %v12869_v21  ;;  %9245 = vmatpush3.bf16.msra.mxu1 %v11578_v36  ;;  %v11823_v36 = vpack.c.bf16 %v5909_v9, %v5908_v14  ;;  %v5915_v14 = vld [vmem:[%s12746_s4 + $0x178] sm:$0xff]  ;;  %v5916_v9 = vld [vmem:[%s12746_s4 + $0x180] sm:$0xff] }
 0x615   :  { %9246 = vmatprep.subr.bf16.mxu1 %v12869_v21 }
 0x617   :  { %9112 = vmatpush3.bf16.msra.mxu0 %v11799_v34 }
 0x618   :  { %9113 = vmatprep.subr.bf16.mxu0 %v12869_v21  ;;  %9248 = vmatpush3.bf16.msra.mxu1 %v11590_v45 }
 0x619   :  { %9249 = vmatprep.subr.bf16.mxu1 %v12869_v21 }
 0x61b   :  { %9115 = vmatpush3.bf16.msra.mxu0 %v11811_v61 }
 0x61c   :  { %9116 = vmatprep.subr.bf16.mxu0 %v12869_v21  ;;  %9251 = vmatpush3.bf16.msra.mxu1 %v11602_v0  ;;  %v5913_v0 = vld [vmem:[%s12746_s4 + $0x168] sm:$0xff] }
 0x61d   :  { %9252 = vmatprep.subr.bf16.mxu1 %v12869_v21 }
 0x61e   :  { %v2979_v45 = vpop.f32.mrb[20].mxu1 }
 0x61f   :  { %9118 = vmatpush3.bf16.msra.mxu0 %v11823_v36  ;;  %v9731_v52 = vadd.f32 %v11509_v25, %v2979_v45  ;;  %v7519_v1 = vpop.f32.mrb[21].mxu1  ;;  %v11849_v25 = vpack.c.bf16 %v5913_v0, %v5912_v22  ;;  %v5918_v45 = vld [vmem:[%s12746_s4 + $0x190] sm:$0xff] }
 0x620   :  { %9119 = vmatprep.subr.bf16.mxu0 %v12869_v21  ;;  %9254 = vmatpush3.bf16.msra.mxu1 %v11614_v42  ;;  %v11861_v42 = vpack.c.bf16 %v5915_v14, %v5914_v50  ;;  %v5920_v1 = vld [vmem:[%s12746_s4 + $0x1a0] sm:$0xff]  ;;  %v5922_v0 = vld [vmem:[%s12746_s4 + $0x1b0] sm:$0xff]  ;;  %v5923_v50 = vld [vmem:[%s12746_s4 + $0x1b8] sm:$0xff] }
 0x621   :  { %2984 = vst.msk [vmem:[#allocation6 + $0x3] sm:$0x1] %vm1019_vm7, %v9731_v52  ;;  %9255 = vmatprep.subr.bf16.mxu1 %v12869_v21  ;;  %v5919_v52 = vld [vmem:[%s12746_s4 + $0x198] sm:$0xff]  ;;  %v11908_v14 = vpack.c.bf16 %v5923_v50, %v5922_v0  ;;  %v5929_v0 = vld [vmem:[%s12746_s4 + $0x1e8] sm:$0xff] }
 0x623   :  { %9121 = vmatpush3.bf16.msra.mxu0 %v11836_v13 }
 0x624   :  { %9122 = vmatprep.subr.bf16.mxu0 %v12869_v21  ;;  %9257 = vmatpush3.bf16.msra.mxu1 %v11629_v62  ;;  %v11873_v62 = vpack.c.bf16 %v5917_v51, %v5916_v9  ;;  %v5924_v9 = vld [vmem:[%s12746_s4 + $0x1c0] sm:$0xff]  ;;  %v5925_v51 = vld [vmem:[%s12746_s4 + $0x1c8] sm:$0xff] }
 0x625   :  { %9258 = vmatprep.subr.bf16.mxu1 %v12869_v21 }
 0x627   :  { %9124 = vmatpush3.bf16.msra.mxu0 %v11849_v25 }
 0x628   :  { %9125 = vmatprep.subr.bf16.mxu0 %v12869_v21  ;;  %9260 = vmatpush3.bf16.msra.mxu1 %v11636_v7  ;;  %v11886_v7 = vpack.c.bf16 %v5919_v52, %v5918_v45  ;;  %v5926_v45 = vld [vmem:[%s12746_s4 + $0x1d0] sm:$0xff]  ;;  %v5927_v52 = vld [vmem:[%s12746_s4 + $0x1d8] sm:$0xff] }
 0x629   :  { %9261 = vmatprep.subr.bf16.mxu1 %v12869_v21 }
 0x62b   :  { %9127 = vmatpush3.bf16.msra.mxu0 %v11861_v42 }
 0x62c   :  { %9128 = vmatprep.subr.bf16.mxu0 %v12869_v21  ;;  %9263 = vmatpush3.bf16.msra.mxu1 %v11648_v54  ;;  %v5921_v54 = vld [vmem:[%s12746_s4 + $0x1a8] sm:$0xff] }
 0x62d   :  { %9264 = vmatprep.subr.bf16.mxu1 %v12869_v21  ;;  %v11898_v22 = vpack.c.bf16 %v5921_v54, %v5920_v1  ;;  %v11928_v1 = vpack.c.bf16 %v5927_v52, %v5926_v45  ;;  %v5928_v54 = vld [vmem:[%s12746_s4 + $0x1e0] sm:$0xff] }
 0x62e   :  { %7623 = vmatmul.mubr.f32.vlgmr.msra.gmra.mrb[26].mxu0 %v3404_v40  ;;  %v11918_v40 = vpack.c.bf16 %v5925_v51, %v5924_v9  ;;  %v11938_v50 = vpack.c.bf16 %v5929_v0, %v5928_v54  ;;  %v5930_v9 = vld [vmem:[%s12746_s4 + $0x1f0] sm:$0xff]  ;;  %v5931_v51 = vld [vmem:[%s12746_s4 + $0x1f8] sm:$0xff]  ;;  %v5932_v52 = vld [vmem:[%s12746_s4 + $0x200] sm:$0xff] }
 0x62f   :  { %9130 = vmatpush3.bf16.msra.mxu0 %v11873_v62  ;;  %7657 = vmatprep.mubr.msk.f32.mxu0 %vm10009_vm4, %v12865_v20  ;;  %12928 = vst [vmem:[#allocation26_spill] sm:$0xff] %v11928_v1  ;;  %v11948_v45 = vpack.c.bf16 %v5931_v51, %v5930_v9  ;;  %v5933_v54 = vld [vmem:[%s12746_s4 + $0x208] sm:$0xff]  ;;  %v5934_v9 = vld [vmem:[%s12746_s4 + $0x210] sm:$0xff]  ;;  %v5935_v51 = vld [vmem:[%s12746_s4 + $0x218] sm:$0xff] }
 0x630   :  { %9131 = vmatprep.subr.bf16.mxu0 %v12869_v21  ;;  %12929 = vst [vmem:[#allocation27_spill] sm:$0xff] %v11938_v50  ;;  %v11958_v0 = vpack.c.bf16 %v5933_v54, %v5932_v52  ;;  %v5937_v52 = vld [vmem:[%s12746_s4 + $0x228] sm:$0xff]  ;;  %v5938_v54 = vld [vmem:[%s12746_s4 + $0x230] sm:$0xff] }
 0x633   :  { %9133 = vmatpush3.bf16.msra.mxu0 %v11886_v7 }
 0x634   :  { %9134 = vmatprep.subr.bf16.mxu0 %v12869_v21 }
 0x637   :  { %9136 = vmatpush3.bf16.msra.mxu0 %v11898_v22 }
 0x638   :  { %9137 = vmatprep.subr.bf16.mxu0 %v12869_v21 }
 0x63b   :  { %9139 = vmatpush3.bf16.msra.mxu0 %v11908_v14 }
 0x63c   :  { %9140 = vmatprep.subr.bf16.mxu0 %v12869_v21 }
 0x63f   :  { %9142 = vmatpush3.bf16.msra.mxu0 %v11918_v40 }
 0x640   :  { %9143 = vmatprep.subr.bf16.mxu0 %v12869_v21 }
 0x643   :  { %9145 = vmatpush3.bf16.msra.mxu0 %v11928_v1  ;;  %v3493_v1 = vrot.slane %v11669_v6, 7  ;;  %v5936_v6 = vld [vmem:[%s12746_s4 + $0x220] sm:$0xff] }
 0x644   :  { %9146 = vmatprep.subr.bf16.mxu0 %v12869_v21 }
 0x647   :  { %9148 = vmatpush3.bf16.msra.mxu0 %v11938_v50  ;;  %v11969_v50 = vpack.c.bf16 %v5935_v51, %v5934_v9  ;;  %v5939_v9 = vld [vmem:[%s12746_s4 + $0x238] sm:$0xff] }
 0x648   :  { %9149 = vmatprep.subr.bf16.mxu0 %v12869_v21  ;;  %v11991_v51 = vpack.c.bf16 %v5939_v9, %v5938_v54  ;;  %v5942_v54 = vld [vmem:[%s12746_s4 + $0x250] sm:$0xff]  ;;  %v5943_v9 = vld [vmem:[%s12746_s4 + $0x258] sm:$0xff] }
 0x649   :  { %12930 = vst [vmem:[#allocation28_spill] sm:$0xff] %v11969_v50 }
 0x64a   :  { %12932 = vst [vmem:[#allocation30_spill] sm:$0xff] %v11991_v51 }
 0x64b   :  { %9151 = vmatpush3.bf16.msra.mxu0 %v11948_v45 }
 0x64c   :  { %9152 = vmatprep.subr.bf16.mxu0 %v12869_v21 }
 0x64e   :  { %7658 = vmatmul.mubr.f32.vlgmr.msra.gmra.mrb[26].mxu0 %v3493_v1  ;;  %v11981_v1 = vpack.c.bf16 %v5937_v52, %v5936_v6  ;;  %v5940_v6 = vld [vmem:[%s12746_s4 + $0x240] sm:$0xff]  ;;  %v5941_v52 = vld [vmem:[%s12746_s4 + $0x248] sm:$0xff] }
 0x64f   :  { %9154 = vmatpush3.bf16.msra.mxu0 %v11958_v0  ;;  %7692 = vmatprep.mubr.msk.f32.mxu0 %vm10009_vm4, %v12865_v20 }
 0x650   :  { %9155 = vmatprep.subr.bf16.mxu0 %v12869_v21  ;;  %12931 = vst [vmem:[#allocation29_spill] sm:$0xff] %v11981_v1 }
 0x653   :  { %9157 = vmatpush3.bf16.msra.mxu0 %v11969_v50  ;;  %v12001_v50 = vpack.c.bf16 %v5941_v52, %v5940_v6  ;;  %v5944_v6 = vld [vmem:[%s12746_s4 + $0x260] sm:$0xff]  ;;  %v5945_v52 = vld [vmem:[%s12746_s4 + $0x268] sm:$0xff] }
 0x654   :  { %9158 = vmatprep.subr.bf16.mxu0 %v12869_v21 }
 0x655   :  { %12933 = vst [vmem:[#allocation31_spill] sm:$0xff] %v12001_v50 }
 0x657   :  { %9160 = vmatpush3.bf16.msra.mxu0 %v11981_v1  ;;  %v12011_v1 = vpack.c.bf16 %v5943_v9, %v5942_v54  ;;  %v5946_v54 = vld [vmem:[%s12746_s4 + $0x270] sm:$0xff]  ;;  %v5947_v9 = vld [vmem:[%s12746_s4 + $0x278] sm:$0xff] }
 0x658   :  { %9161 = vmatprep.subr.bf16.mxu0 %v12869_v21 }
 0x65b   :  { %9163 = vmatpush3.bf16.msra.mxu0 %v11991_v51  ;;  %v12021_v51 = vpack.c.bf16 %v5945_v52, %v5944_v6  ;;  %v3208_v6 = vmax.f32 %v11667_v8, 0.0  ;;  %v12934_v8 = vld [vmem:[#allocation24_spill] sm:$0xff]  ;;  %v12935_v52 = vld [vmem:[#allocation25_spill] sm:$0xff] }
 0x65c   :  { %9164 = vmatprep.subr.bf16.mxu0 %v12869_v21 }
 0x65f   :  { %9166 = vmatpush3.bf16.msra.mxu0 %v12001_v50  ;;  %v12031_v50 = vpack.c.bf16 %v5947_v9, %v5946_v54 }
 0x660   :  { %9167 = vmatprep.subr.bf16.mxu0 %v12869_v21 }
 0x663   :  { %9169 = vmatpush3.bf16.msra.mxu0 %v12011_v1 }
 0x664   :  { %9170 = vmatprep.subr.bf16.mxu0 %v12869_v21 }
 0x667   :  { %9172 = vmatpush3.bf16.msra.mxu0 %v12021_v51 }
 0x668   :  { %9173 = vmatprep.subr.bf16.mxu0 %v12869_v21 }
 0x66b   :  { %9175 = vmatpush3.bf16.msra.mxu0 %v12031_v50 }
 0x66c   :  { %9361 = vmatprep.subr.bf16.mxu0 %v12910_v63  ;;  %v3657_v63 = vld [vmem:[#allocation2 + $0x78] sm:$0x3e] }
 0x66e   :  { %7693 = vmatmul.mubr.f32.vlgmr.msra.gmra.mrb[26].mxu0 %v3208_v6 }
 0x66f   :  { %9363 = vmatpush1.bf16.msra.mxu0 %v12911_v49  ;;  %4370 = vmatprep.mubr.f32.mxu0 %v12865_v20 }
 0x670   :  { %9365 = vmatprep.subr.bf16.mxu0 %v12912_v16  ;;  %v3656_v16 = vld [vmem:[#allocation2 + $0x70] sm:$0x3e] }
 0x673   :  { %9367 = vmatpush1.bf16.msra.mxu0 %v12913_v33 }
 0x674   :  { %9369 = vmatprep.subr.bf16.mxu0 %v12914_v28 }
 0x677   :  { %9371 = vmatpush1.bf16.msra.mxu0 %v12915_v32  ;;  %v3654_v32 = vld [vmem:[#allocation2 + $0x60] sm:$0x3e] }
 0x678   :  { %9373 = vmatprep.subr.bf16.mxu0 %v12916_v57 }
 0x67b   :  { %9375 = vmatpush1.bf16.msra.mxu0 %v12917_v37 }
 0x67c   :  { %9377 = vmatprep.subr.bf16.mxu0 %v12918_v43  ;;  %v3655_v43 = vld [vmem:[#allocation2 + $0x68] sm:$0x3e] }
 0x67f   :  { %9379 = vmatpush1.bf16.msra.mxu0 %v12919_v55 }
 0x680   :  { %9381 = vmatprep.subr.bf16.mxu0 %v12920_v35 }
 0x683   :  { %9383 = vmatpush1.bf16.msra.mxu0 %v12921_v58 }
 0x684   :  { %9385 = vmatprep.subr.bf16.mxu0 %v12922_v46 }
 0x687   :  { %9387 = vmatpush1.bf16.msra.mxu0 %v12923_v30 }
 0x688   :  { %9389 = vmatprep.subr.bf16.mxu0 %v12924_v2 }
 0x68b   :  { %9391 = vmatpush1.bf16.msra.mxu0 %v12934_v8 }
 0x68c   :  { %9393 = vmatprep.subr.bf16.mxu0 %v12935_v52 }
 0x6c1   :  { %v3730_v54 = vpop.f32.mrb[22].mxu1 }
 0x6c2   :  { %v3732_v9 = vpop.f32.mrb[23].mxu1  ;;  %v3810_v35 = vrot.slane %v3730_v54, 7 }
 0x6c3   :  { %v3811_v6 = vrot.slane %v3732_v9, 7 }
 0x6c4   :  { %v3818_v46 = vadd.f32 %v3810_v35, %v3654_v32 }
 0x6c5   :  { %v3819_v37 = vadd.f32 %v3811_v6, %v3655_v43  ;;  %v12947_v6 = vld [vmem:[#allocation14_spill] sm:$0xff] }
 0x6c6   :  { %v3822_v2 = vmul.f32 0.5, %v3818_v46 }
 0x6c7   :  { %v3826_v55 = vmul.f32 0.5, %v3819_v37 }
 0x6c9   :  { %9904 = vtanh.f32 %v3826_v55 }
 0x6ca   :  { %9906 = vtanh.f32 %v3822_v2 }
 0x6d3   :  { %v9905_v57 = vpop.eup %9904 }
 0x6d4   :  { %v3828_v58 = vmul.f32 0.5, %v9905_v57  ;;  %v9907_v37 = vpop.eup %9906 }
 0x6d5   :  { %v3824_v54 = vmul.f32 0.5, %v9907_v37  ;;  %v4518_v37 = vld [vmem:[%s12746_s4 + $0x38] sm:$0xff] }
 0x6d6   :  { %v3829_v28 = vadd.f32 0.5, %v3828_v58 }
 0x6d7   :  { %v3825_v57 = vadd.f32 0.5, %v3824_v54  ;;  %v12949_v54 = vld [vmem:[#allocation16_spill] sm:$0xff] }
 0x6d8   :  { %v3841_v30 = vmul.f32 %v11659_v29, %v3829_v28 }
 0x6e1   :  { %v3801_v8 = vpop.f32.mrb[24].mxu1 }
 0x6e2   :  { %v3812_v33 = vrot.slane %v3801_v8, 7  ;;  %v3803_v52 = vpop.f32.mrb[25].mxu1 }
 0x6e3   :  { %v3813_v49 = vrot.slane %v3803_v52, 7 }
 0x6e4   :  { %v3820_v9 = vadd.f32 %v3812_v33, %v3656_v16 }
 0x6e5   :  { %v3821_v43 = vadd.f32 %v3813_v49, %v3657_v63 }
 0x6e6   :  { %9908 = vtanh.f32 %v3820_v9  ;;  %v12948_v9 = vld [vmem:[#allocation15_spill] sm:$0xff] }
 0x6e7   :  { %v3831_v55 = vmul.f32 0.5, %v3821_v43  ;;  %v4517_v43 = vld [vmem:[%s12746_s4 + $0x30] sm:$0xff] }
 0x6e9   :  { %9910 = vtanh.f32 %v3831_v55  ;;  %v12206_v55 = vpack.c.bf16 %v4518_v37, %v4517_v43 }
 0x6f0   :  { %v9909_v32 = vpop.eup %9908 }
 0x6f1   :  { %v3842_v35 = vmul.f32 %v9909_v32, %v3825_v57  ;;  %v12950_v57 = vld [vmem:[#allocation17_spill] sm:$0xff]  ;;  %v4519_v32 = vld [vmem:[%s12746_s4 + $0x40] sm:$0xff] }
 0x6f3   :  { %v12055_v58 = vadd.f32 %v3842_v35, %v3841_v30  ;;  %v9911_v28 = vpop.eup %9910  ;;  %v4520_v35 = vld [vmem:[%s12746_s4 + $0x48] sm:$0xff] }
 0x6f4   :  { %v3833_v46 = vmul.f32 0.5, %v9911_v28  ;;  %v12218_v28 = vpack.c.bf16 %v4520_v35, %v4519_v32 }
 0x6f5   :  { %9912 = vtanh.f32 %v12055_v58 }
 0x6f6   :  { %v3834_v2 = vadd.f32 0.5, %v3833_v46  ;;  %v12951_v46 = vld [vmem:[#allocation18_spill] sm:$0xff] }
 0x6ff   :  { %v9913_v29 = vpop.eup %9912 }
 0x700   :  { %v3845_v8 = vmul.f32 %v9913_v29, %v3834_v2  ;;  %v12952_v2 = vld [vmem:[#allocation19_spill] sm:$0xff]  ;;  %v4521_v29 = vld [vmem:[%s12746_s4 + $0x50] sm:$0xff] }
 0x702   :  { %9914 = vtanh.f32 %v3845_v8  ;;  %v4522_v8 = vld [vmem:[%s12746_s4 + $0x58] sm:$0xff] }
 0x70c   :  { %v9915_v16 = vpop.eup %9914 }
 0x70d   :  { %v4304_v63 = vrot.slane %v9915_v16, 1  ;;  %v12058_v49 = vmax.f32 %v9915_v16, 0.0  ;;  %v4523_v16 = vld [vmem:[%s12746_s4 + $0x60] sm:$0xff] }
 0x70f   :  { %4371 = vmatmul.mubr.f32.vlgmr.msra.gmra.mrb[28].mxu0 %v4304_v63  ;;  %v3865_v33 = vrot.slane %v12058_v49, 1  ;;  %v3954_v30 = vrot.slane %v12058_v49, 2 }
 0x710   :  { %9395 = vmatpush1.bf16.msra.mxu0 %v10270_v53  ;;  %4441 = vmatprep.mubr.f32.mxu0 %v12865_v20 }
 0x711   :  { %7728 = vmatmul.mubr.f32.vlgmr.msra.gmra.mrb[26].mxu1 %v3865_v33  ;;  %9397 = vmatprep.subr.bf16.mxu0 %v10275_v44  ;;  %v12953_v33 = vld [vmem:[#allocation20_spill] sm:$0xff] }
 0x712   :  { %9266 = vmatpush3.bf16.msra.mxu1 %v11672_v48  ;;  %7762 = vmatprep.mubr.msk.f32.mxu1 %vm10009_vm4, %v12865_v20 }
 0x713   :  { %9267 = vmatprep.subr.bf16.mxu1 %v12869_v21 }
 0x714   :  { %9399 = vmatpush1.bf16.msra.mxu0 %v10282_v59 }
 0x715   :  { %9401 = vmatprep.subr.bf16.mxu0 %v10286_v60 }
 0x716   :  { %9269 = vmatpush3.bf16.msra.mxu1 %v11684_v5  ;;  %v12113_v5 = vld [vmem:[%s12747_s5] sm:$0x1] }
 0x717   :  { %9270 = vmatprep.subr.bf16.mxu1 %v12869_v21 }
 0x718   :  { %9403 = vmatpush1.bf16.msra.mxu0 %v10294_v3 }
 0x719   :  { %9405 = vmatprep.subr.bf16.mxu0 %v10297_v4 }
 0x71a   :  { %9272 = vmatpush3.bf16.msra.mxu1 %v11699_v23 }
 0x71b   :  { %9273 = vmatprep.subr.bf16.mxu1 %v12869_v21 }
 0x71c   :  { %9407 = vmatpush1.bf16.msra.mxu0 %v10305_v10 }
 0x71d   :  { %9409 = vmatprep.subr.bf16.mxu0 %v10308_v11 }
 0x71e   :  { %9275 = vmatpush3.bf16.msra.mxu1 %v11711_v56 }
 0x71f   :  { %9276 = vmatprep.subr.bf16.mxu1 %v12869_v21 }
 0x720   :  { %9411 = vmatpush1.bf16.msra.mxu0 %v10313_v17 }
 0x721   :  { %9413 = vmatprep.subr.bf16.mxu0 %v10316_v18 }
 0x722   :  { %9278 = vmatpush3.bf16.msra.mxu1 %v11723_v41  ;;  %v4043_v41 = vrot.slane %v12058_v49, 3 }
 0x723   :  { %9279 = vmatprep.subr.bf16.mxu1 %v12869_v21 }
 0x724   :  { %9415 = vmatpush1.bf16.msra.mxu0 %v10321_v26 }
 0x725   :  { %9417 = vmatprep.subr.bf16.mxu0 %v10324_v27 }
 0x726   :  { %9281 = vmatpush3.bf16.msra.mxu1 %v11735_v12  ;;  %v12936_v12 = vld [vmem:[#allocation26_spill] sm:$0xff] }
 0x727   :  { %9282 = vmatprep.subr.bf16.mxu1 %v12869_v21 }
 0x728   :  { %9419 = vmatpush1.bf16.msra.mxu0 %v10329_v38 }
 0x729   :  { %9421 = vmatprep.subr.bf16.mxu0 %v10332_v39 }
 0x72a   :  { %9284 = vmatpush3.bf16.msra.mxu1 %v11747_v47  ;;  %v12937_v47 = vld [vmem:[#allocation27_spill] sm:$0xff] }
 0x72b   :  { %9285 = vmatprep.subr.bf16.mxu1 %v12869_v21 }
 0x72c   :  { %9423 = vmatpush1.bf16.msra.mxu0 %v10335_v24 }
 0x72d   :  { %9424 = vmatprep.subr.bf16.mxu0 %v12869_v21 }
 0x72e   :  { %9287 = vmatpush3.bf16.msra.mxu1 %v11759_v15  ;;  %v4132_v15 = vrot.slane %v12058_v49, 4 }
 0x72f   :  { %4442 = vmatmul.mubr.f32.vlgmr.msra.gmra.mrb[30].mxu0 %v4304_v63  ;;  %9288 = vmatprep.subr.bf16.mxu1 %v12869_v21  ;;  %v12233_v63 = vpack.c.bf16 %v4522_v8, %v4521_v29 }
 0x730   :  { %7902 = vmatprep.mubr.msk.f32.mxu0 %vm10009_vm4, %v12865_v20 }
 0x731   :  { %7763 = vmatmul.mubr.f32.vlgmr.msra.gmra.mrb[26].mxu1 %v3954_v30  ;;  %v12954_v30 = vld [vmem:[#allocation21_spill] sm:$0xff] }
 0x732   :  { %9290 = vmatpush3.bf16.msra.mxu1 %v11771_v19  ;;  %7797 = vmatprep.mubr.msk.f32.mxu1 %vm10009_vm4, %v12865_v20  ;;  %v12938_v19 = vld [vmem:[#allocation28_spill] sm:$0xff] }
 0x733   :  { %9291 = vmatprep.subr.bf16.mxu1 %v12869_v21 }
 0x736   :  { %9293 = vmatpush3.bf16.msra.mxu1 %v11783_v31  ;;  %v12939_v31 = vld [vmem:[#allocation29_spill] sm:$0xff] }
 0x737   :  { %9294 = vmatprep.subr.bf16.mxu1 %v12869_v21 }
 0x73a   :  { %9296 = vmatpush3.bf16.msra.mxu1 %v11799_v34  ;;  %v12940_v34 = vld [vmem:[#allocation30_spill] sm:$0xff] }
 0x73b   :  { %9297 = vmatprep.subr.bf16.mxu1 %v12869_v21 }
 0x73e   :  { %9299 = vmatpush3.bf16.msra.mxu1 %v11811_v61  ;;  %v12941_v61 = vld [vmem:[#allocation31_spill] sm:$0xff] }
 0x73f   :  { %9300 = vmatprep.subr.bf16.mxu1 %v12869_v21 }
 0x741   :  { %v3648_v48 = vpop.f32.mrb[26].mxu0 }
 0x742   :  { %9302 = vmatpush3.bf16.msra.mxu1 %v11823_v36  ;;  %v9732_v23 = vadd.f32 %v12113_v5, %v3648_v48  ;;  %v7694_v56 = vpop.f32.mrb[27].mxu0  ;;  %v4221_v36 = vrot.slane %v12058_v49, 5  ;;  %v4524_v49 = vld [vmem:[%s12746_s4 + $0x68] sm:$0xff] }
 0x743   :  { %9303 = vmatprep.subr.bf16.mxu1 %v12869_v21  ;;  %v12241_v48 = vpack.c.bf16 %v4524_v49, %v4523_v16  ;;  %v4526_v56 = vld [vmem:[%s12746_s4 + $0x78] sm:$0xff]  ;;  %v4297_v49 = vld [vmem:[#allocation2 + $0x70] sm:$0xc0] }
 0x744   :  { %3653 = vst.msk [vmem:[#allocation6 + $0x4] sm:$0x1] %vm1019_vm7, %v9732_v23  ;;  %v4525_v23 = vld [vmem:[%s12746_s4 + $0x70] sm:$0xff] }
 0x746   :  { %9305 = vmatpush3.bf16.msra.mxu1 %v11836_v13  ;;  %v12942_v13 = vld [vmem:[#allocation9_spill] sm:$0xff] }
 0x747   :  { %9306 = vmatprep.subr.bf16.mxu1 %v12869_v21 }
 0x74a   :  { %9308 = vmatpush3.bf16.msra.mxu1 %v11849_v25  ;;  %v4511_v25 = vld [vmem:[%s12746_s4] sm:$0xff] }
 0x74b   :  { %9309 = vmatprep.subr.bf16.mxu1 %v12869_v21 }
 0x74e   :  { %9311 = vmatpush3.bf16.msra.mxu1 %v11861_v42  ;;  %v4512_v42 = vld [vmem:[%s12746_s4 + $0x8] sm:$0xff] }
 0x74f   :  { %9312 = vmatprep.subr.bf16.mxu1 %v12869_v21 }
 0x751   :  { %7798 = vmatmul.mubr.f32.vlgmr.msra.gmra.mrb[26].mxu1 %v4043_v41  ;;  %v12955_v41 = vld [vmem:[#allocation22_spill] sm:$0xff] }
 0x752   :  { %9314 = vmatpush3.bf16.msra.mxu1 %v11873_v62  ;;  %7832 = vmatprep.mubr.msk.f32.mxu1 %vm10009_vm4, %v12865_v20  ;;  %v12169_v62 = vpack.c.bf16 %v4512_v42, %v4511_v25 }
 0x753   :  { %9315 = vmatprep.subr.bf16.mxu1 %v12869_v21 }
 0x754   :  { %9426 = vmatpush3.bf16.msra.mxu0 %v12169_v62 }
 0x755   :  { %9427 = vmatprep.subr.bf16.mxu0 %v12869_v21 }
 0x756   :  { %9317 = vmatpush3.bf16.msra.mxu1 %v11886_v7  ;;  %v12943_v7 = vld [vmem:[#allocation10_spill] sm:$0xff] }
 0x757   :  { %9318 = vmatprep.subr.bf16.mxu1 %v12869_v21 }
 0x75a   :  { %9320 = vmatpush3.bf16.msra.mxu1 %v11898_v22  ;;  %v12944_v22 = vld [vmem:[#allocation11_spill] sm:$0xff] }
 0x75b   :  { %9321 = vmatprep.subr.bf16.mxu1 %v12869_v21 }
 0x75e   :  { %9323 = vmatpush3.bf16.msra.mxu1 %v11908_v14  ;;  %v4513_v14 = vld [vmem:[%s12746_s4 + $0x10] sm:$0xff] }
 0x75f   :  { %9324 = vmatprep.subr.bf16.mxu1 %v12869_v21 }
 0x762   :  { %9326 = vmatpush3.bf16.msra.mxu1 %v11918_v40  ;;  %v4514_v40 = vld [vmem:[%s12746_s4 + $0x18] sm:$0xff] }
 0x763   :  { %9327 = vmatprep.subr.bf16.mxu1 %v12869_v21 }
 0x766   :  { %9329 = vmatpush3.bf16.msra.mxu1 %v12936_v12  ;;  %v12956_v12 = vld [vmem:[#allocation23_spill] sm:$0xff] }
 0x767   :  { %9330 = vmatprep.subr.bf16.mxu1 %v12869_v21 }
 0x76a   :  { %9332 = vmatpush3.bf16.msra.mxu1 %v12937_v47  ;;  %v12253_v47 = vpack.c.bf16 %v4526_v56, %v4525_v23 }
 0x76b   :  { %9333 = vmatprep.subr.bf16.mxu1 %v12869_v21 }
 0x76e   :  { %9335 = vmatpush3.bf16.msra.mxu1 %v11948_v45  ;;  %v12945_v45 = vld [vmem:[#allocation12_spill] sm:$0xff] }
 0x76f   :  { %9336 = vmatprep.subr.bf16.mxu1 %v12869_v21 }
 0x771   :  { %7833 = vmatmul.mubr.f32.vlgmr.msra.gmra.mrb[26].mxu1 %v4132_v15  ;;  %v12957_v15 = vld [vmem:[#allocation24_spill] sm:$0xff] }
 0x772   :  { %9338 = vmatpush3.bf16.msra.mxu1 %v11958_v0  ;;  %7867 = vmatprep.mubr.msk.f32.mxu1 %vm10009_vm4, %v12865_v20  ;;  %v12946_v0 = vld [vmem:[#allocation13_spill] sm:$0xff] }
 0x773   :  { %9339 = vmatprep.subr.bf16.mxu1 %v12869_v21 }
 0x776   :  { %9341 = vmatpush3.bf16.msra.mxu1 %v12938_v19  ;;  %v12958_v19 = vld [vmem:[#allocation25_spill] sm:$0xff] }
 0x777   :  { %9342 = vmatprep.subr.bf16.mxu1 %v12869_v21 }
 0x77a   :  { %9344 = vmatpush3.bf16.msra.mxu1 %v12939_v31 }
 0x77b   :  { %9345 = vmatprep.subr.bf16.mxu1 %v12869_v21 }
 0x77e   :  { %9347 = vmatpush3.bf16.msra.mxu1 %v12940_v34 }
 0x77f   :  { %9348 = vmatprep.subr.bf16.mxu1 %v12869_v21 }
 0x782   :  { %9350 = vmatpush3.bf16.msra.mxu1 %v12941_v61 }
 0x783   :  { %9351 = vmatprep.subr.bf16.mxu1 %v12869_v21 }
 0x786   :  { %9353 = vmatpush3.bf16.msra.mxu1 %v12011_v1  ;;  %v4515_v1 = vld [vmem:[%s12746_s4 + $0x20] sm:$0xff] }
 0x787   :  { %9354 = vmatprep.subr.bf16.mxu1 %v12869_v21 }
 0x78a   :  { %9356 = vmatpush3.bf16.msra.mxu1 %v12021_v51  ;;  %v4516_v51 = vld [vmem:[%s12746_s4 + $0x28] sm:$0xff] }
 0x78b   :  { %9357 = vmatprep.subr.bf16.mxu1 %v12869_v21  ;;  %v12194_v52 = vpack.c.bf16 %v4516_v51, %v4515_v1  ;;  %v4299_v51 = vld [vmem:[#allocation2 + $0x80] sm:$0x7] }
 0x78e   :  { %9359 = vmatpush3.bf16.msra.mxu1 %v12031_v50  ;;  %v12182_v50 = vpack.c.bf16 %v4514_v40, %v4513_v14 }
 0x78f   :  { %9545 = vmatprep.subr.bf16.mxu1 %v12942_v13  ;;  %v4300_v13 = vld [vmem:[#allocation2 + $0x88] sm:$0x7] }
 0x790   :  { %9429 = vmatpush3.bf16.msra.mxu0 %v12182_v50 }
 0x791   :  { %7868 = vmatmul.mubr.f32.vlgmr.msra.gmra.mrb[26].mxu1 %v4221_v36  ;;  %9430 = vmatprep.subr.bf16.mxu0 %v12869_v21  ;;  %v4296_v36 = vld [vmem:[#allocation2 + $0x68] sm:$0xc0] }
 0x792   :  { %9547 = vmatpush1.bf16.msra.mxu1 %v12943_v7  ;;  %5032 = vmatprep.mubr.f32.mxu1 %v12865_v20 }
 0x793   :  { %9549 = vmatprep.subr.bf16.mxu1 %v12944_v22 }
 0x794   :  { %9432 = vmatpush3.bf16.msra.mxu0 %v12194_v52 }
 0x795   :  { %9433 = vmatprep.subr.bf16.mxu0 %v12869_v21 }
 0x796   :  { %9551 = vmatpush1.bf16.msra.mxu1 %v12945_v45 }
 0x797   :  { %9553 = vmatprep.subr.bf16.mxu1 %v12946_v0  ;;  %v4295_v0 = vld [vmem:[#allocation2 + $0x60] sm:$0xc0] }
 0x798   :  { %9435 = vmatpush3.bf16.msra.mxu0 %v12206_v55 }
 0x799   :  { %9436 = vmatprep.subr.bf16.mxu0 %v12869_v21 }
 0x79a   :  { %9555 = vmatpush1.bf16.msra.mxu1 %v12947_v6 }
 0x79b   :  { %9557 = vmatprep.subr.bf16.mxu1 %v12948_v9 }
 0x79c   :  { %9438 = vmatpush3.bf16.msra.mxu0 %v12218_v28 }
 0x79d   :  { %9439 = vmatprep.subr.bf16.mxu0 %v12869_v21 }
 0x79e   :  { %9559 = vmatpush1.bf16.msra.mxu1 %v12949_v54  ;;  %v4495_v54 = vrot.slane %v12055_v58, 3 }
 0x79f   :  { %9561 = vmatprep.subr.bf16.mxu1 %v12950_v57 }
 0x7a0   :  { %9441 = vmatpush3.bf16.msra.mxu0 %v12233_v63 }
 0x7a1   :  { %9442 = vmatprep.subr.bf16.mxu0 %v12869_v21 }
 0x7a2   :  { %9563 = vmatpush1.bf16.msra.mxu1 %v12951_v46 }
 0x7a3   :  { %9565 = vmatprep.subr.bf16.mxu1 %v12952_v2 }
 0x7a4   :  { %9444 = vmatpush3.bf16.msra.mxu0 %v12241_v48 }
 0x7a5   :  { %9445 = vmatprep.subr.bf16.mxu0 %v12869_v21 }
 0x7a6   :  { %9567 = vmatpush1.bf16.msra.mxu1 %v12953_v33  ;;  %v4301_v33 = vld [vmem:[#allocation2 + $0x90] sm:$0x7] }
 0x7a7   :  { %9569 = vmatprep.subr.bf16.mxu1 %v12954_v30 }
 0x7a8   :  { %9447 = vmatpush3.bf16.msra.mxu0 %v12253_v47 }
 0x7a9   :  { %9448 = vmatprep.subr.bf16.mxu0 %v12869_v21 }
 0x7aa   :  { %9571 = vmatpush1.bf16.msra.mxu1 %v12955_v41  ;;  %v4298_v41 = vld [vmem:[#allocation2 + $0x78] sm:$0xc0] }
 0x7ab   :  { %9573 = vmatprep.subr.bf16.mxu1 %v12956_v12  ;;  %v4302_v12 = vld [vmem:[#allocation2 + $0x98] sm:$0x7] }
 0x7ae   :  { %9575 = vmatpush1.bf16.msra.mxu1 %v12957_v15 }
 0x7af   :  { %9577 = vmatprep.subr.bf16.mxu1 %v12958_v19 }
 0x7e2   :  { %v4372_v31 = vpop.f32.mrb[28].mxu0 }
 0x7e3   :  { %v4374_v34 = vpop.f32.mrb[29].mxu0  ;;  %v4452_v14 = vrot.slane %v4372_v31, 2 }
 0x7e4   :  { %v4453_v61 = vrot.slane %v4374_v34, 2 }
 0x7e5   :  { %v4460_v6 = vadd.f32 %v4452_v14, %v4295_v0  ;;  %v4464_v43 = vadd.f32 %v4452_v14, %v4299_v51 }
 0x7e6   :  { %v4461_v25 = vadd.f32 %v4453_v61, %v4296_v36  ;;  %v4465_v42 = vadd.f32 %v4453_v61, %v4300_v13 }
 0x7e7   :  { %v4468_v35 = vmul.f32 0.5, %v4460_v6  ;;  %v4469_v2 = vmul.f32 0.5, %v4464_v43 }
 0x7e8   :  { %v4476_v7 = vmul.f32 0.5, %v4461_v25  ;;  %v4477_v22 = vmul.f32 0.5, %v4465_v42 }
 0x7ea   :  { %9916 = vtanh.f32 %v4476_v7 }
 0x7eb   :  { %9918 = vtanh.f32 %v4477_v22 }
 0x7ec   :  { %9920 = vtanh.f32 %v4468_v35 }
 0x7ed   :  { %9922 = vtanh.f32 %v4469_v2 }
 0x7f4   :  { %v9917_v40 = vpop.eup %9916 }
 0x7f5   :  { %v9919_v45 = vpop.eup %9918  ;;  %v4480_v1 = vmul.f32 0.5, %v9917_v40 }
 0x7f6   :  { %v4481_v9 = vmul.f32 0.5, %v9919_v45  ;;  %v9921_v19 = vpop.eup %9920 }
 0x7f7   :  { %v4482_v37 = vadd.f32 0.5, %v4480_v1  ;;  %v9923_v31 = vpop.eup %9922  ;;  %v4472_v36 = vmul.f32 0.5, %v9921_v19 }
 0x7f8   :  { %v4483_v57 = vadd.f32 0.5, %v4481_v9  ;;  %v4473_v13 = vmul.f32 0.5, %v9923_v31 }
 0x7f9   :  { %v4497_v32 = vmul.f32 %v4495_v54, %v4482_v37  ;;  %v4474_v25 = vadd.f32 0.5, %v4472_v36  ;;  %v6019_v36 = vld [vmem:[%s12746_s4 + $0xb8] sm:$0xff] }
 0x7fa   :  { %v4498_v46 = vmul.f32 %v4495_v54, %v4483_v57  ;;  %v4475_v7 = vadd.f32 0.5, %v4473_v13  ;;  %v6021_v13 = vld [vmem:[%s12746_s4 + $0xc8] sm:$0xff] }
 0x802   :  { %v4443_v29 = vpop.f32.mrb[30].mxu0 }
 0x803   :  { %v4454_v8 = vrot.slane %v4443_v29, 2  ;;  %v4445_v16 = vpop.f32.mrb[31].mxu0 }
 0x804   :  { %v4455_v30 = vrot.slane %v4445_v16, 2 }
 0x805   :  { %v4462_v23 = vadd.f32 %v4454_v8, %v4297_v49  ;;  %v4466_v56 = vadd.f32 %v4454_v8, %v4301_v33 }
 0x806   :  { %v4463_v15 = vadd.f32 %v4455_v30, %v4298_v41  ;;  %v4467_v58 = vadd.f32 %v4455_v30, %v4302_v12 }
 0x807   :  { %9924 = vtanh.f32 %v4462_v23 }
 0x808   :  { %9926 = vtanh.f32 %v4466_v56  ;;  %v4486_v34 = vmul.f32 0.5, %v4463_v15  ;;  %v4487_v61 = vmul.f32 0.5, %v4467_v58  ;;  %v6014_v15 = vld [vmem:[%s12746_s4 + $0x90] sm:$0xff]  ;;  %v6015_v58 = vld [vmem:[%s12746_s4 + $0x98] sm:$0xff] }
 0x809   :  { %v12289_v31 = vpack.c.bf16 %v6015_v58, %v6014_v15  ;;  %v6050_v58 = vld [vmem:[%s12746_s4 + $0x1b0] sm:$0xff] }
 0x80a   :  { %9928 = vtanh.f32 %v4486_v34  ;;  %v6016_v34 = vld [vmem:[%s12746_s4 + $0xa0] sm:$0xff] }
 0x80b   :  { %9930 = vtanh.f32 %v4487_v61  ;;  %v6017_v61 = vld [vmem:[%s12746_s4 + $0xa8] sm:$0xff] }
 0x811   :  { %v9925_v42 = vpop.eup %9924 }
 0x812   :  { %v9927_v22 = vpop.eup %9926  ;;  %v4499_v14 = vmul.f32 %v9925_v42, %v4474_v25  ;;  %v6023_v25 = vld [vmem:[%s12746_s4 + $0xd8] sm:$0xff]  ;;  %v6025_v42 = vld [vmem:[%s12746_s4 + $0xe8] sm:$0xff] }
 0x813   :  { %v4500_v40 = vmul.f32 %v9927_v22, %v4475_v7  ;;  %v6027_v7 = vld [vmem:[%s12746_s4 + $0xf8] sm:$0xff]  ;;  %v6029_v22 = vld [vmem:[%s12746_s4 + $0x108] sm:$0xff] }
 0x814   :  { %v4501_v45 = vadd.f32 %v4499_v14, %v4497_v32  ;;  %v9929_v6 = vpop.eup %9928  ;;  %v6012_v32 = vld [vmem:[%s12746_s4 + $0x80] sm:$0xff] }
 0x815   :  { %v4502_v0 = vadd.f32 %v4500_v40, %v4498_v46  ;;  %v9931_v9 = vpop.eup %9930  ;;  %v4490_v37 = vmul.f32 0.5, %v9929_v6  ;;  %v6013_v46 = vld [vmem:[%s12746_s4 + $0x88] sm:$0xff]  ;;  %v6031_v40 = vld [vmem:[%s12746_s4 + $0x118] sm:$0xff] }
 0x816   :  { %9932 = vtanh.f32 %v4501_v45  ;;  %v5141_v1 = vrot.slane %v4501_v45, 3  ;;  %v4491_v54 = vmul.f32 0.5, %v9931_v9  ;;  %v12277_v41 = vpack.c.bf16 %v6013_v46, %v6012_v32  ;;  %v6032_v45 = vld [vmem:[%s12746_s4 + $0x120] sm:$0xff]  ;;  %v6035_v6 = vld [vmem:[%s12746_s4 + $0x138] sm:$0xff]  ;;  %v6042_v32 = vld [vmem:[%s12746_s4 + $0x170] sm:$0xff] }
 0x817   :  { %9934 = vtanh.f32 %v4502_v0  ;;  %v5142_v51 = vrot.slane %v4502_v0, 3  ;;  %v4492_v57 = vadd.f32 0.5, %v4490_v37  ;;  %v6033_v0 = vld [vmem:[%s12746_s4 + $0x128] sm:$0xff]  ;;  %v6036_v9 = vld [vmem:[%s12746_s4 + $0x140] sm:$0xff] }
 0x818   :  { %v4493_v2 = vadd.f32 0.5, %v4491_v54  ;;  %v6037_v37 = vld [vmem:[%s12746_s4 + $0x148] sm:$0xff]  ;;  %v6038_v54 = vld [vmem:[%s12746_s4 + $0x150] sm:$0xff] }
 0x819   :  { %v12262_v43 = vsel %vm1864_vm5, %v5141_v1, %v5142_v51  ;;  %v12405_v1 = vpack.c.bf16 %v6033_v0, %v6032_v45  ;;  %v6034_v51 = vld [vmem:[%s12746_s4 + $0x130] sm:$0xff]  ;;  %v6063_v0 = vld [vmem:[%s12746_s4 + $0x218] sm:$0xff] }
 0x81a   :  { %v6062_v45 = vld [vmem:[%s12746_s4 + $0x210] sm:$0xff] }
 0x820   :  { %v9933_v35 = vpop.eup %9932 }
 0x821   :  { %v9935_v29 = vpop.eup %9934  ;;  %v4505_v8 = vmul.f32 %v9933_v35, %v4492_v57  ;;  %v6039_v57 = vld [vmem:[%s12746_s4 + $0x158] sm:$0xff] }
 0x822   :  { %v4506_v16 = vmul.f32 %v9935_v29, %v4493_v2  ;;  %v6040_v2 = vld [vmem:[%s12746_s4 + $0x160] sm:$0xff]  ;;  %v6041_v29 = vld [vmem:[%s12746_s4 + $0x168] sm:$0xff] }
 0x823   :  { %9936 = vtanh.f32 %v4505_v8 }
 0x824   :  { %9938 = vtanh.f32 %v4506_v16  ;;  %v12455_v16 = vpack.c.bf16 %v6041_v29, %v6040_v2  ;;  %v6068_v2 = vld [vmem:[%s12746_s4 + $0x240] sm:$0xff]  ;;  %v6069_v29 = vld [vmem:[%s12746_s4 + $0x248] sm:$0xff] }
 0x82d   :  { %v12270_v49 = vpop.eup %9936 }
 0x82e   :  { %v12272_v33 = vpop.eup %9938  ;;  %v4964_v30 = vrot.slane %v12270_v49, 6  ;;  %v4509_v23 = vmax.f32 %v12270_v49, 0.0  ;;  %v6044_v49 = vld [vmem:[%s12746_s4 + $0x180] sm:$0xff] }
 0x82f   :  { %v4965_v56 = vrot.slane %v12272_v33, 6 }
 0x830   :  { %v4528_v12 = vrot.slane %v4509_v23, 6  ;;  %v4617_v14 = vrot.slane %v4509_v23, 7  ;;  %v12482_v23 = vmax.f32 %v12272_v33, 0.0  ;;  %v6048_v33 = vld [vmem:[%s12746_s4 + $0x1a0] sm:$0xff] }
 0x831   :  { %v4966_v19 = vsel %vm4963_vm9, %v4964_v30, %v4965_v56  ;;  %v6045_v30 = vld [vmem:[%s12746_s4 + $0x188] sm:$0xff]  ;;  %v6046_v56 = vld [vmem:[%s12746_s4 + $0x190] sm:$0xff] }
 0x832   :  { %5033 = vmatmul.mubr.f32.vlgmr.msra.gmra.mrb[28].mxu1 %v4966_v19  ;;  %7903 = vmatmul.mubr.f32.vlgmr.msra.gmra.mrb[32].mxu0 %v4528_v12  ;;  %v6047_v12 = vld [vmem:[%s12746_s4 + $0x198] sm:$0xff] }
 0x833   :  { %9579 = vmatpush1.bf16.msra.mxu1 %v10270_v53  ;;  %9450 = vmatpush3.bf16.msra.mxu0 %v12277_v41  ;;  %v12304_v53 = vpack.c.bf16 %v6017_v61, %v6016_v34  ;;  %v6052_v61 = vld [vmem:[%s12746_s4 + $0x1c0] sm:$0xff] }
 0x834   :  { %9581 = vmatprep.subr.bf16.mxu1 %v10275_v44  ;;  %9451 = vmatprep.subr.bf16.mxu0 %v12869_v21  ;;  %v6018_v44 = vld [vmem:[%s12746_s4 + $0xb0] sm:$0xff] }
 0x835   :  { %5103 = vmatprep.mubr.f32.mxu1 %v12865_v20  ;;  %7937 = vmatprep.mubr.msk.f32.mxu0 %vm10009_vm4, %v12865_v20 }
 0x837   :  { %9583 = vmatpush1.bf16.msra.mxu1 %v10282_v59  ;;  %9453 = vmatpush3.bf16.msra.mxu0 %v12289_v31  ;;  %v12316_v59 = vpack.c.bf16 %v6019_v36, %v6018_v44  ;;  %v6053_v44 = vld [vmem:[%s12746_s4 + $0x1c8] sm:$0xff] }
 0x838   :  { %9585 = vmatprep.subr.bf16.mxu1 %v10286_v60  ;;  %9454 = vmatprep.subr.bf16.mxu0 %v12869_v21  ;;  %v6020_v60 = vld [vmem:[%s12746_s4 + $0xc0] sm:$0xff]  ;;  %v12527_v36 = vpack.c.bf16 %v6053_v44, %v6052_v61 }
 0x83b   :  { %9587 = vmatpush1.bf16.msra.mxu1 %v10294_v3  ;;  %9456 = vmatpush3.bf16.msra.mxu0 %v12304_v53  ;;  %v12328_v3 = vpack.c.bf16 %v6021_v13, %v6020_v60  ;;  %v6054_v60 = vld [vmem:[%s12746_s4 + $0x1d0] sm:$0xff]  ;;  %v6055_v13 = vld [vmem:[%s12746_s4 + $0x1d8] sm:$0xff] }
 0x83c   :  { %9589 = vmatprep.subr.bf16.mxu1 %v10297_v4  ;;  %9457 = vmatprep.subr.bf16.mxu0 %v12869_v21  ;;  %v6022_v4 = vld [vmem:[%s12746_s4 + $0xd0] sm:$0xff] }
 0x83f   :  { %9591 = vmatpush1.bf16.msra.mxu1 %v10305_v10  ;;  %9459 = vmatpush3.bf16.msra.mxu0 %v12316_v59  ;;  %v12340_v10 = vpack.c.bf16 %v6023_v25, %v6022_v4  ;;  %v12537_v4 = vpack.c.bf16 %v6055_v13, %v6054_v60  ;;  %v6056_v25 = vld [vmem:[%s12746_s4 + $0x1e0] sm:$0xff]  ;;  %v4958_v60 = vld [vmem:[#allocation2 + $0x88] sm:$0xf8] }
 0x840   :  { %9593 = vmatprep.subr.bf16.mxu1 %v10308_v11  ;;  %9460 = vmatprep.subr.bf16.mxu0 %v12869_v21  ;;  %v6024_v11 = vld [vmem:[%s12746_s4 + $0xe0] sm:$0xff] }
 0x843   :  { %9595 = vmatpush1.bf16.msra.mxu1 %v10313_v17  ;;  %9462 = vmatpush3.bf16.msra.mxu0 %v12328_v3  ;;  %v12352_v17 = vpack.c.bf16 %v6025_v42, %v6024_v11  ;;  %v6057_v11 = vld [vmem:[%s12746_s4 + $0x1e8] sm:$0xff] }
 0x844   :  { %9597 = vmatprep.subr.bf16.mxu1 %v10316_v18  ;;  %9463 = vmatprep.subr.bf16.mxu0 %v12869_v21  ;;  %v6026_v18 = vld [vmem:[%s12746_s4 + $0xf0] sm:$0xff]  ;;  %v12547_v42 = vpack.c.bf16 %v6057_v11, %v6056_v25 }
 0x847   :  { %9599 = vmatpush1.bf16.msra.mxu1 %v10321_v26  ;;  %9465 = vmatpush3.bf16.msra.mxu0 %v12340_v10  ;;  %v12364_v26 = vpack.c.bf16 %v6027_v7, %v6026_v18  ;;  %v6058_v18 = vld [vmem:[%s12746_s4 + $0x1f0] sm:$0xff]  ;;  %v6059_v7 = vld [vmem:[%s12746_s4 + $0x1f8] sm:$0xff] }
 0x848   :  { %9601 = vmatprep.subr.bf16.mxu1 %v10324_v27  ;;  %9466 = vmatprep.subr.bf16.mxu0 %v12869_v21  ;;  %v6028_v27 = vld [vmem:[%s12746_s4 + $0x100] sm:$0xff] }
 0x84b   :  { %9603 = vmatpush1.bf16.msra.mxu1 %v10329_v38  ;;  %9468 = vmatpush3.bf16.msra.mxu0 %v12352_v17  ;;  %v12376_v38 = vpack.c.bf16 %v6029_v22, %v6028_v27  ;;  %v12557_v27 = vpack.c.bf16 %v6059_v7, %v6058_v18  ;;  %v6060_v22 = vld [vmem:[%s12746_s4 + $0x200] sm:$0xff] }
 0x84c   :  { %9605 = vmatprep.subr.bf16.mxu1 %v10332_v39  ;;  %9469 = vmatprep.subr.bf16.mxu0 %v12869_v21  ;;  %v6030_v39 = vld [vmem:[%s12746_s4 + $0x110] sm:$0xff] }
 0x84f   :  { %9607 = vmatpush1.bf16.msra.mxu1 %v10335_v24  ;;  %9471 = vmatpush3.bf16.msra.mxu0 %v12364_v26  ;;  %v12389_v24 = vpack.c.bf16 %v6031_v40, %v6030_v39  ;;  %v4794_v40 = vrot.slane %v12482_v23, 1 }
 0x850   :  { %9472 = vmatprep.subr.bf16.mxu0 %v12869_v21  ;;  %9608 = vmatprep.subr.bf16.mxu1 %v12869_v21 }
 0x852   :  { %5104 = vmatmul.mubr.f32.vlgmr.msra.gmra.mrb[30].mxu1 %v4966_v19  ;;  %7938 = vmatmul.mubr.f32.vlgmr.msra.gmra.mrb[32].mxu0 %v4617_v14  ;;  %v6051_v19 = vld [vmem:[%s12746_s4 + $0x1b8] sm:$0xff]  ;;  %v6061_v14 = vld [vmem:[%s12746_s4 + $0x208] sm:$0xff] }
 0x853   :  { %9474 = vmatpush3.bf16.msra.mxu0 %v12376_v38  ;;  %7972 = vmatprep.mubr.msk.f32.mxu0 %vm10009_vm4, %v12865_v20  ;;  %v12517_v34 = vpack.c.bf16 %v6051_v19, %v6050_v58  ;;  %v12567_v39 = vpack.c.bf16 %v6061_v14, %v6060_v22  ;;  %v4883_v58 = vrot.slane %v12482_v23, 2  ;;  %v4957_v22 = vld [vmem:[#allocation2 + $0x80] sm:$0xf8] }
 0x854   :  { %9475 = vmatprep.subr.bf16.mxu0 %v12869_v21  ;;  %9610 = vmatpush3.bf16.msra.mxu1 %v12169_v62  ;;  %v12417_v62 = vpack.c.bf16 %v6035_v6, %v6034_v51  ;;  %v12578_v51 = vpack.c.bf16 %v6063_v0, %v6062_v45  ;;  %v6064_v6 = vld [vmem:[%s12746_s4 + $0x220] sm:$0xff] }
 0x855   :  { %9611 = vmatprep.subr.bf16.mxu1 %v12869_v21  ;;  %8077 = vmatprep.mubr.msk.f32.mxu1 %vm10009_vm4, %v12865_v20 }
 0x857   :  { %9477 = vmatpush3.bf16.msra.mxu0 %v12389_v24 }
 0x858   :  { %9478 = vmatprep.subr.bf16.mxu0 %v12869_v21  ;;  %9613 = vmatpush3.bf16.msra.mxu1 %v12182_v50  ;;  %v12429_v50 = vpack.c.bf16 %v6037_v37, %v6036_v9  ;;  %v6065_v9 = vld [vmem:[%s12746_s4 + $0x228] sm:$0xff] }
 0x859   :  { %9614 = vmatprep.subr.bf16.mxu1 %v12869_v21  ;;  %v12590_v37 = vpack.c.bf16 %v6065_v9, %v6064_v6 }
 0x85b   :  { %9480 = vmatpush3.bf16.msra.mxu0 %v12405_v1 }
 0x85c   :  { %9481 = vmatprep.subr.bf16.mxu0 %v12869_v21  ;;  %9616 = vmatpush3.bf16.msra.mxu1 %v12194_v52  ;;  %v12441_v52 = vpack.c.bf16 %v6039_v57, %v6038_v54  ;;  %v6066_v54 = vld [vmem:[%s12746_s4 + $0x230] sm:$0xff]  ;;  %v6067_v57 = vld [vmem:[%s12746_s4 + $0x238] sm:$0xff] }
 0x85d   :  { %9617 = vmatprep.subr.bf16.mxu1 %v12869_v21 }
 0x85f   :  { %9483 = vmatpush3.bf16.msra.mxu0 %v12417_v62 }
 0x860   :  { %9484 = vmatprep.subr.bf16.mxu0 %v12869_v21  ;;  %9619 = vmatpush3.bf16.msra.mxu1 %v12206_v55 }
 0x861   :  { %9620 = vmatprep.subr.bf16.mxu1 %v12869_v21 }
 0x863   :  { %9486 = vmatpush3.bf16.msra.mxu0 %v12429_v50 }
 0x864   :  { %v4289_v35 = vpop.f32.mrb[26].mxu1  ;;  %9487 = vmatprep.subr.bf16.mxu0 %v12869_v21  ;;  %9622 = vmatpush3.bf16.msra.mxu1 %v12218_v28  ;;  %v6043_v28 = vld [vmem:[%s12746_s4 + $0x178] sm:$0xff] }
 0x865   :  { %v9733_v55 = vadd.f32 %v12113_v5, %v4289_v35  ;;  %v7869_v8 = vpop.f32.mrb[27].mxu1  ;;  %9623 = vmatprep.subr.bf16.mxu1 %v12869_v21  ;;  %v12467_v46 = vpack.c.bf16 %v6043_v28, %v6042_v32  ;;  %v12600_v35 = vpack.c.bf16 %v6067_v57, %v6066_v54  ;;  %v6071_v32 = vld [vmem:[%s12746_s4 + $0x258] sm:$0xff]  ;;  %v4959_v54 = vld [vmem:[#allocation2 + $0x90] sm:$0xf8] }
 0x866   :  { %v6070_v8 = vld [vmem:[%s12746_s4 + $0x250] sm:$0xff] }
 0x867   :  { %4294 = vst.msk [vmem:[#allocation6 + $0x5] sm:$0x1] %vm1019_vm7, %v9733_v55  ;;  %9489 = vmatpush3.bf16.msra.mxu0 %v12441_v52  ;;  %v12610_v55 = vpack.c.bf16 %v6069_v29, %v6068_v2  ;;  %v12620_v28 = vpack.c.bf16 %v6071_v32, %v6070_v8  ;;  %v4960_v29 = vld [vmem:[#allocation2 + $0x98] sm:$0xf8] }
 0x868   :  { %9490 = vmatprep.subr.bf16.mxu0 %v12869_v21  ;;  %9625 = vmatpush3.bf16.msra.mxu1 %v12233_v63  ;;  %v12479_v63 = vpack.c.bf16 %v6045_v30, %v6044_v49  ;;  %v6072_v49 = vld [vmem:[%s12746_s4 + $0x260] sm:$0xff]  ;;  %v6073_v30 = vld [vmem:[%s12746_s4 + $0x268] sm:$0xff] }
 0x869   :  { %9626 = vmatprep.subr.bf16.mxu1 %v12869_v21 }
 0x86b   :  { %9492 = vmatpush3.bf16.msra.mxu0 %v12455_v16 }
 0x86c   :  { %9493 = vmatprep.subr.bf16.mxu0 %v12869_v21  ;;  %9628 = vmatpush3.bf16.msra.mxu1 %v12241_v48  ;;  %v12495_v48 = vpack.c.bf16 %v6047_v12, %v6046_v56  ;;  %v12630_v56 = vpack.c.bf16 %v6073_v30, %v6072_v49  ;;  %v6074_v12 = vld [vmem:[%s12746_s4 + $0x270] sm:$0xff] }
 0x86d   :  { %9629 = vmatprep.subr.bf16.mxu1 %v12869_v21 }
 0x86f   :  { %9495 = vmatpush3.bf16.msra.mxu0 %v12467_v46 }
 0x870   :  { %9496 = vmatprep.subr.bf16.mxu0 %v12869_v21  ;;  %9631 = vmatpush3.bf16.msra.mxu1 %v12253_v47  ;;  %v6049_v47 = vld [vmem:[%s12746_s4 + $0x1a8] sm:$0xff] }
 0x871   :  { %9632 = vmatprep.subr.bf16.mxu1 %v12869_v21  ;;  %v12507_v15 = vpack.c.bf16 %v6049_v47, %v6048_v33  ;;  %v6075_v33 = vld [vmem:[%s12746_s4 + $0x278] sm:$0xff]  ;;  %s10010_s4 = smov [#allocation6]  }
 0x872   :  { %7973 = vmatmul.mubr.f32.vlgmr.msra.gmra.mrb[32].mxu0 %v12482_v23  ;;  %v12640_v47 = vpack.c.bf16 %v6075_v33, %v6074_v12  ;;  %s5605_s13 = sshll.u32 %s10010_s4, 4  ;;  %s5606_s13 = int_to_ptr.vmem [resolvable:$true] %s5605_s13 }
 0x873   :  { %9498 = vmatpush3.bf16.msra.mxu0 %v12479_v63  ;;  %8007 = vmatprep.mubr.msk.f32.mxu0 %vm10009_vm4, %v12865_v20  ;;  %s9977_s15 = scalar_lea.vmem %s5606_s13, 128  ;;  %p9982_p9 = scmp.lt.s32.totalorder %s5606_s13, %s5606_s13 }
 0x874   :  { %9499 = vmatprep.subr.bf16.mxu0 %v12869_v21  ;;  %p9978_p8 = scmp.ne.s32.totalorder %s5606_s13, %s9977_s15  ;;  %p9983_p10 = scmp.lt.s32.totalorder %s9977_s15, %s9977_s15 }
 0x876   :  { %p9984_p11 = por %p9983_p10, %p9982_p9 }
 0x877   :  { %9501 = vmatpush3.bf16.msra.mxu0 %v12495_v48 }
 0x878   :  { %9502 = vmatprep.subr.bf16.mxu0 %v12869_v21  ;;  %p9985_p12 = pnand %p9984_p11, %p9978_p8 }
 0x87b   :  { %9504 = vmatpush3.bf16.msra.mxu0 %v12507_v15 }
 0x87c   :  { %9505 = vmatprep.subr.bf16.mxu0 %v12869_v21 }
 0x87f   :  { %9507 = vmatpush3.bf16.msra.mxu0 %v12517_v34 }
 0x880   :  { %9508 = vmatprep.subr.bf16.mxu0 %v12869_v21 }
 0x883   :  { %9510 = vmatpush3.bf16.msra.mxu0 %v12527_v36 }
 0x884   :  { %9511 = vmatprep.subr.bf16.mxu0 %v12869_v21 }
 0x887   :  { %9513 = vmatpush3.bf16.msra.mxu0 %v12537_v4 }
 0x888   :  { %9514 = vmatprep.subr.bf16.mxu0 %v12869_v21 }
 0x88b   :  { %9516 = vmatpush3.bf16.msra.mxu0 %v12547_v42 }
 0x88c   :  { %9517 = vmatprep.subr.bf16.mxu0 %v12869_v21 }
 0x88f   :  { %9519 = vmatpush3.bf16.msra.mxu0 %v12557_v27 }
 0x890   :  { %9520 = vmatprep.subr.bf16.mxu0 %v12869_v21 }
 0x892   :  { %8008 = vmatmul.mubr.f32.vlgmr.msra.gmra.mrb[32].mxu0 %v4794_v40 }
 0x893   :  { %9522 = vmatpush3.bf16.msra.mxu0 %v12567_v39  ;;  %8042 = vmatprep.mubr.msk.f32.mxu0 %vm10009_vm4, %v12865_v20 }
 0x894   :  { %9523 = vmatprep.subr.bf16.mxu0 %v12869_v21 }
 0x897   :  { %9525 = vmatpush3.bf16.msra.mxu0 %v12578_v51 }
 0x898   :  { %9526 = vmatprep.subr.bf16.mxu0 %v12869_v21 }
 0x89b   :  { %9528 = vmatpush3.bf16.msra.mxu0 %v12590_v37 }
 0x89c   :  { %9529 = vmatprep.subr.bf16.mxu0 %v12869_v21 }
 0x89f   :  { %9531 = vmatpush3.bf16.msra.mxu0 %v12600_v35 }
 0x8a0   :  { %9532 = vmatprep.subr.bf16.mxu0 %v12869_v21 }
 0x8a3   :  { %9534 = vmatpush3.bf16.msra.mxu0 %v12610_v55 }
 0x8a4   :  { %9535 = vmatprep.subr.bf16.mxu0 %v12869_v21 }
 0x8a7   :  { %9537 = vmatpush3.bf16.msra.mxu0 %v12620_v28 }
 0x8a8   :  { %9538 = vmatprep.subr.bf16.mxu0 %v12869_v21 }
 0x8ab   :  { %9540 = vmatpush3.bf16.msra.mxu0 %v12630_v56 }
 0x8ac   :  { %9541 = vmatprep.subr.bf16.mxu0 %v12869_v21 }
 0x8af   :  { %9543 = vmatpush3.bf16.msra.mxu0 %v12640_v47 }
 0x8b2   :  { %8043 = vmatmul.mubr.f32.vlgmr.msra.gmra.mrb[32].mxu0 %v4883_v58 }
 0x905   :  { %v5034_v19 = vpop.f32.mrb[28].mxu1 }
 0x906   :  { %v5036_v61 = vpop.f32.mrb[29].mxu1  ;;  %v5114_v11 = vrot.slane %v5034_v19, 5 }
 0x907   :  { %v5115_v44 = vrot.slane %v5036_v61, 5 }
 0x908   :  { %v5122_v14 = vadd.f32 %v5114_v11, %v4957_v22 }
 0x909   :  { %v5123_v13 = vadd.f32 %v5115_v44, %v4958_v60 }
 0x90a   :  { %v5126_v0 = vmul.f32 0.5, %v5122_v14 }
 0x90b   :  { %v5130_v25 = vmul.f32 0.5, %v5123_v13 }
 0x90d   :  { %9940 = vtanh.f32 %v5130_v25 }
 0x90e   :  { %9942 = vtanh.f32 %v5126_v0 }
 0x917   :  { %v9941_v18 = vpop.eup %9940 }
 0x918   :  { %v5132_v7 = vmul.f32 0.5, %v9941_v18  ;;  %v9943_v32 = vpop.eup %9942 }
 0x919   :  { %v5128_v30 = vmul.f32 0.5, %v9943_v32 }
 0x91a   :  { %v5133_v40 = vadd.f32 0.5, %v5132_v7 }
 0x91b   :  { %v5129_v12 = vadd.f32 0.5, %v5128_v30 }
 0x91c   :  { %v5145_v45 = vmul.f32 %v12262_v43, %v5133_v40 }
 0x925   :  { %v5105_v6 = vpop.f32.mrb[30].mxu1 }
 0x926   :  { %v5116_v23 = vrot.slane %v5105_v6, 5  ;;  %v5107_v9 = vpop.f32.mrb[31].mxu1 }
 0x927   :  { %v5117_v57 = vrot.slane %v5107_v9, 5 }
 0x928   :  { %v5124_v2 = vadd.f32 %v5116_v23, %v4959_v54 }
 0x929   :  { %v5125_v8 = vadd.f32 %v5117_v57, %v4960_v29 }
 0x92a   :  { %9944 = vtanh.f32 %v5124_v2 }
 0x92b   :  { %v5135_v49 = vmul.f32 0.5, %v5125_v8 }
 0x92d   :  { %9946 = vtanh.f32 %v5135_v49 }
 0x934   :  { %v9945_v33 = vpop.eup %9944 }
 0x935   :  { %v5146_v58 = vmul.f32 %v9945_v33, %v5129_v12 }
 0x937   :  { %v5147_v19 = vadd.f32 %v5146_v58, %v5145_v45  ;;  %v9947_v43 = vpop.eup %9946 }
 0x938   :  { %v5137_v61 = vmul.f32 0.5, %v9947_v43 }
 0x939   :  { %9948 = vtanh.f32 %v5147_v19 }
 0x93a   :  { %v5138_v44 = vadd.f32 0.5, %v5137_v61 }
 0x943   :  { %v9949_v60 = vpop.eup %9948 }
 0x944   :  { %v5149_v13 = vmul.f32 %v9949_v60, %v5138_v44 }
 0x946   :  { %9950 = vtanh.f32 %v5149_v13 }
 0x950   :  { %v9951_v25 = vpop.eup %9950 }
 0x951   :  { %v12646_v11 = vmax.f32 %v9951_v25, 0.0 }
 0x953   :  { %v5169_v18 = vrot.slane %v12646_v11, 3 }
 0x955   :  { %8078 = vmatmul.mubr.f32.vlgmr.msra.gmra.mrb[32].mxu1 %v5169_v18 }
 0x956   :  { %9634 = vmatpush3.bf16.msra.mxu1 %v12277_v41  ;;  %8112 = vmatprep.mubr.msk.f32.mxu1 %vm10009_vm4, %v12865_v20  ;;  %v5258_v41 = vrot.slane %v12646_v11, 4 }
 0x957   :  { %9635 = vmatprep.subr.bf16.mxu1 %v12869_v21 }
 0x95a   :  { %9637 = vmatpush3.bf16.msra.mxu1 %v12289_v31 }
 0x95b   :  { %9638 = vmatprep.subr.bf16.mxu1 %v12869_v21 }
 0x95e   :  { %9640 = vmatpush3.bf16.msra.mxu1 %v12304_v53 }
 0x95f   :  { %9641 = vmatprep.subr.bf16.mxu1 %v12869_v21 }
 0x962   :  { %9643 = vmatpush3.bf16.msra.mxu1 %v12316_v59 }
 0x963   :  { %9644 = vmatprep.subr.bf16.mxu1 %v12869_v21 }
 0x966   :  { %9646 = vmatpush3.bf16.msra.mxu1 %v12328_v3  ;;  %v5347_v3 = vrot.slane %v12646_v11, 5 }
 0x967   :  { %9647 = vmatprep.subr.bf16.mxu1 %v12869_v21 }
 0x96a   :  { %9649 = vmatpush3.bf16.msra.mxu1 %v12340_v10 }
 0x96b   :  { %9650 = vmatprep.subr.bf16.mxu1 %v12869_v21 }
 0x96e   :  { %9652 = vmatpush3.bf16.msra.mxu1 %v12352_v17  ;;  %v9954_v17 = vld [vmem:[%s12747_s5] sm:$0x1] }
 0x96f   :  { %9653 = vmatprep.subr.bf16.mxu1 %v12869_v21 }
 0x972   :  { %9655 = vmatpush3.bf16.msra.mxu1 %v12364_v26 }
 0x973   :  { %9656 = vmatprep.subr.bf16.mxu1 %v12869_v21 }
 0x975   :  { %8113 = vmatmul.mubr.f32.vlgmr.msra.gmra.mrb[32].mxu1 %v5258_v41 }
 0x976   :  { %9658 = vmatpush3.bf16.msra.mxu1 %v12376_v38  ;;  %8147 = vmatprep.mubr.msk.f32.mxu1 %vm10009_vm4, %v12865_v20 }
 0x977   :  { %9659 = vmatprep.subr.bf16.mxu1 %v12869_v21 }
 0x97a   :  { %9661 = vmatpush3.bf16.msra.mxu1 %v12389_v24 }
 0x97b   :  { %9662 = vmatprep.subr.bf16.mxu1 %v12869_v21 }
 0x97e   :  { %9664 = vmatpush3.bf16.msra.mxu1 %v12405_v1 }
 0x97f   :  { %9665 = vmatprep.subr.bf16.mxu1 %v12869_v21 }
 0x982   :  { %9667 = vmatpush3.bf16.msra.mxu1 %v12417_v62 }
 0x983   :  { %9668 = vmatprep.subr.bf16.mxu1 %v12869_v21 }
 0x985   :  { %v4951_v31 = vpop.f32.mrb[32].mxu0 }
 0x986   :  { %9670 = vmatpush3.bf16.msra.mxu1 %v12429_v50  ;;  %v9734_v53 = vadd.f32 %v12113_v5, %v4951_v31  ;;  %v8044_v59 = vpop.f32.mrb[33].mxu0  ;;  %v5436_v5 = vrot.slane %v12646_v11, 6 }
 0x987   :  { %9671 = vmatprep.subr.bf16.mxu1 %v12869_v21 }
 0x988   :  { %4956 = vst.msk [vmem:[#allocation6 + $0x6] sm:$0x1] %vm1019_vm7, %v9734_v53 }
 0x98a   :  { %9673 = vmatpush3.bf16.msra.mxu1 %v12441_v52 }
 0x98b   :  { %9674 = vmatprep.subr.bf16.mxu1 %v12869_v21 }
 0x98e   :  { %9676 = vmatpush3.bf16.msra.mxu1 %v12455_v16 }
 0x98f   :  { %9677 = vmatprep.subr.bf16.mxu1 %v12869_v21 }
 0x992   :  { %9679 = vmatpush3.bf16.msra.mxu1 %v12467_v46 }
 0x993   :  { %9680 = vmatprep.subr.bf16.mxu1 %v12869_v21 }
 0x995   :  { %8148 = vmatmul.mubr.f32.vlgmr.msra.gmra.mrb[32].mxu1 %v5347_v3 }
 0x996   :  { %9682 = vmatpush3.bf16.msra.mxu1 %v12479_v63  ;;  %8182 = vmatprep.mubr.msk.f32.mxu1 %vm10009_vm4, %v12865_v20 }
 0x997   :  { %9683 = vmatprep.subr.bf16.mxu1 %v12869_v21 }
 0x99a   :  { %9685 = vmatpush3.bf16.msra.mxu1 %v12495_v48 }
 0x99b   :  { %9686 = vmatprep.subr.bf16.mxu1 %v12869_v21 }
 0x99e   :  { %9688 = vmatpush3.bf16.msra.mxu1 %v12507_v15 }
 0x99f   :  { %9689 = vmatprep.subr.bf16.mxu1 %v12869_v21 }
 0x9a2   :  { %9691 = vmatpush3.bf16.msra.mxu1 %v12517_v34 }
 0x9a3   :  { %9692 = vmatprep.subr.bf16.mxu1 %v12869_v21 }
 0x9a6   :  { %9694 = vmatpush3.bf16.msra.mxu1 %v12527_v36 }
 0x9a7   :  { %9695 = vmatprep.subr.bf16.mxu1 %v12869_v21 }
 0x9aa   :  { %9697 = vmatpush3.bf16.msra.mxu1 %v12537_v4 }
 0x9ab   :  { %9698 = vmatprep.subr.bf16.mxu1 %v12869_v21 }
 0x9ae   :  { %9700 = vmatpush3.bf16.msra.mxu1 %v12547_v42 }
 0x9af   :  { %9701 = vmatprep.subr.bf16.mxu1 %v12869_v21 }
 0x9b2   :  { %9703 = vmatpush3.bf16.msra.mxu1 %v12557_v27 }
 0x9b3   :  { %9704 = vmatprep.subr.bf16.mxu1 %v12869_v21 }
 0x9b5   :  { %8183 = vmatmul.mubr.f32.vlgmr.msra.gmra.mrb[32].mxu1 %v5436_v5 }
 0x9b6   :  { %9706 = vmatpush3.bf16.msra.mxu1 %v12567_v39  ;;  %8217 = vmatprep.mubr.msk.f32.mxu1 %vm10009_vm4, %v12865_v20  ;;  %v5525_v20 = vrot.slane %v12646_v11, 7 }
 0x9b7   :  { %9707 = vmatprep.subr.bf16.mxu1 %v12869_v21 }
 0x9ba   :  { %9709 = vmatpush3.bf16.msra.mxu1 %v12578_v51 }
 0x9bb   :  { %9710 = vmatprep.subr.bf16.mxu1 %v12869_v21 }
 0x9be   :  { %9712 = vmatpush3.bf16.msra.mxu1 %v12590_v37 }
 0x9bf   :  { %9713 = vmatprep.subr.bf16.mxu1 %v12869_v21 }
 0x9c2   :  { %9715 = vmatpush3.bf16.msra.mxu1 %v12600_v35 }
 0x9c3   :  { %9716 = vmatprep.subr.bf16.mxu1 %v12869_v21 }
 0x9c6   :  { %9718 = vmatpush3.bf16.msra.mxu1 %v12610_v55 }
 0x9c7   :  { %9719 = vmatprep.subr.bf16.mxu1 %v12869_v21 }
 0x9ca   :  { %9721 = vmatpush3.bf16.msra.mxu1 %v12620_v28 }
 0x9cb   :  { %9722 = vmatprep.subr.bf16.mxu1 %v12869_v21 }
 0x9ce   :  { %9724 = vmatpush3.bf16.msra.mxu1 %v12630_v56 }
 0x9cf   :  { %9725 = vmatprep.subr.bf16.mxu1 %v12869_v21 }
 0x9d2   :  { %9727 = vmatpush3.bf16.msra.mxu1 %v12640_v47 }
 0x9d5   :  { %8218 = vmatmul.mubr.f32.vlgmr.msra.gmra.mrb[32].mxu1 %v5525_v20 }
 0xaa8   :  { %v5593_v10 = vpop.f32.mrb[32].mxu1 }
 0xaa9   :  { %v9735_v26 = vadd.f32 %v9954_v17, %v5593_v10  ;;  %v8219_v38 = vpop.f32.mrb[33].mxu1 }
 0xaab   :  { %5598 = vst.msk [vmem:[#allocation6 + $0x7] sm:$0x1] %vm1019_vm7, %v9735_v26 }
 0xaac   :  { %9988 = shalt.err (!%p9985_p12)
}
 0xaad   :  { %s9989_s17 = scalar_lea.hbm %s12748_s6, 128 }
 0xaae   :  { %p9990_p13 = scmp.ne.s32.totalorder %s12748_s6, %s9989_s17  ;;  %p9993_p0 = scmp.lt.u32.totalorder %s9989_s17, %s12748_s6 }
 0xab0   :  { %p9995_p1 = pnand %p9993_p0, %p9990_p13 }
 0xab2   :  { %9998 = shalt.err (!%p9995_p1)
}
 0xab3   :  { %5608 = dma.vmem_to_hbm [thread:$0]  %s5606_s13, 128, %s12748_s6, [#allocation5]  }
 0xab4   :  { %10001 = dma.done.wait [#allocation5], 128  }
 0xab5   :  { %10002 = vsyncadd [#allocation5], 4294967168 }
 0xab6   :  { %5612 = vsyncpa [#allocation4], 1 }
 0xab7   :  { %5613 = vsyncpa [#allocation5], 1 }

</bundles_post_ra>
